<compile_context>
chip_gen: v7x
topology: tpu7x:2x2x1
jax: 0.10.0
libtpu: 0.0.40
codegen_flags: <defaults>
</compile_context>

<pallas_src>
import functools
import math

import jax
import jax.numpy as jnp
from jax.experimental import pallas as pl
from jax.experimental.pallas import tpu as pltpu

_EPS = 1e-7
_LANES = 128


def _fast_recip(x):
    """EUP approximate reciprocal + one Newton step.

    Gives ~full f32 accuracy while keeping most of the divide off the VALU
    (an exact f32 divide lowers to the same EUP recip plus several VALU
    Newton/correction steps)."""
    y = pl.reciprocal(x, approx=True)
    return y * (2.0 - x * y)


def _atan(x):
    """float32-accurate atan (Cephes atanf polynomial), extended to negative x
    as an odd function; avoids relying on a Mosaic lowering for math.atan."""
    sgn = jnp.where(x < 0.0, -1.0, 1.0)
    axx = jnp.abs(x)
    t3p8 = 2.414213562373095    # tan(3*pi/8)
    tp8 = 0.4142135623730951    # tan(pi/8)
    big = axx > t3p8
    mid = jnp.logical_and(axx > tp8, jnp.logical_not(big))
    x_big = -_fast_recip(jnp.where(big, axx, 1.0))
    x_mid = (axx - 1.0) * _fast_recip(axx + 1.0)
    xr = jnp.where(big, x_big, jnp.where(mid, x_mid, axx))
    y0 = jnp.where(big, jnp.float32(math.pi / 2.0),
                   jnp.where(mid, jnp.float32(math.pi / 4.0), jnp.float32(0.0)))
    z = xr * xr
    p = ((8.05374449538e-2 * z - 1.38776856032e-1) * z
         + 1.99777106478e-1) * z - 3.33329491539e-1
    return sgn * (y0 + p * z * xr + xr)


def _bbox_loss_kernel(pb_ref, tb_ref, *rest, reg_max, use_dfl):
    if use_dfl:
        ap_ref, pd_ref, ciou_ref, dfl_ref = rest
    else:
        (ciou_ref,) = rest

    # Predicted / target box planes, each (TS, 128), anchors sublane-dense.
    b1x1, b1y1, b1x2, b1y2 = (pb_ref[0, i] for i in range(4))
    b2x1, b2y1, b2x2, b2y2 = (tb_ref[0, i] for i in range(4))

    # ---- CIoU (bbox_iou_v6, xywh=False, CIoU=True) on dense (TS, 128) slabs ----
    w1 = b1x2 - b1x1
    h1 = b1y2 - b1y1 + _EPS
    w2 = b2x2 - b2x1
    h2 = b2y2 - b2y1 + _EPS
    inter = (jnp.maximum(jnp.minimum(b1x2, b2x2) - jnp.maximum(b1x1, b2x1), 0.0)
             * jnp.maximum(jnp.minimum(b1y2, b2y2) - jnp.maximum(b1y1, b2y1), 0.0))
    union = w1 * h1 + w2 * h2 - inter + _EPS
    iou = inter / union                                   # exact (1e-4 contract)
    cw = jnp.maximum(b1x2, b2x2) - jnp.minimum(b1x1, b2x1)
    ch = jnp.maximum(b1y2, b2y2) - jnp.minimum(b1y1, b2y1)
    c2 = cw * cw + ch * ch + _EPS
    rho2 = ((b2x1 + b2x2 - b1x1 - b1x2) ** 2
            + (b2y1 + b2y2 - b1y1 - b1y2) ** 2) * 0.25
    # Aspect-ratio term: ratios via Newton-refined EUP reciprocal (full f32
    # accuracy, VALU-cheap); alpha denominator via raw approx reciprocal (its
    # contribution to CIoU is O(v*alpha*eps) -> negligible).
    v = (4.0 / (math.pi ** 2)) * (_atan(w2 * _fast_recip(h2))
                                  - _atan(w1 * _fast_recip(h1))) ** 2
    alpha = v * pl.reciprocal(v - iou + (1.0 + _EPS), approx=True)
    ciou_ref[0] = iou - (rho2 / c2 + v * alpha)           # rho2/c2 exact

    # ---- DFL: per-anchor distribution-focal loss (mean over the 4 sides) ----
    if use_dfl:
        R = reg_max + 1
        ax, ay = ap_ref[0], ap_ref[1]                     # (TS, 128)
        hi = reg_max - 0.01
        # bbox2dist: clamp([ax-x1, ay-y1, x2-ax, y2-ay], 0, reg_max - 0.01)
        sides = (ax - b2x1, ay - b2y1, b2x2 - ax, b2y2 - ay)

        dfl_acc = jnp.zeros_like(ax)
        for s in range(4):
            ltrb = jnp.clip(sides[s], 0.0, hi)            # (TS, 128)

            # Pass 1: running max over the R logits, streamed as bf16 slices
            # (no full-block f32 upcast, live set stays at a few vregs).
            m = pd_ref[0, s, 0].astype(jnp.float32)
            for r in range(1, R):
                m = jnp.maximum(m, pd_ref[0, s, r].astype(jnp.float32))

            # Pass 2: exp-sum + hat-weighted target logit from the same slices.
            # Hat weight w_r = max(0, 1 - |ltrb - r|) equals wl at r=tl,
            # wr at r=tl+1 and 0 elsewhere (wl + wr == 1), so
            # wl*(lse-l_left) + wr*(lse-l_right) == lse - tgt.
            sumexp = jnp.zeros_like(m)
            tgt = jnp.zeros_like(m)
            for r in range(R):
                x = pd_ref[0, s, r].astype(jnp.float32)
                sumexp = sumexp + jnp.exp(x - m)
                w_r = jnp.maximum(1.0 - jnp.abs(ltrb - jnp.float32(r)), 0.0)
                tgt = tgt + x * w_r

            dfl_acc = dfl_acc + (m + jnp.log(sumexp) - tgt)

        dfl_ref[0] = dfl_acc * 0.25                       # mean over 4 sides


def bbox_loss_forward(pred_dist, pred_bboxes, anchor_points, target_bboxes,
                      target_scores, target_scores_sum, fg_mask,
                      *, reg_max, use_dfl=False, tile_anchors=2048,
                      dist_dma_dtype=jnp.bfloat16):
    """Pallas implementation of BboxLoss.forward.

    Returns (loss_iou, loss_dfl, ciou_map); ciou_map is the dense (B, N)
    per-anchor CIoU (the PyTorch module masked-selects the fg entries, which
    is a dynamic shape not expressible on TPU)."""
    f32 = jnp.float32
    B, N, _ = pred_bboxes.shape
    R = reg_max + 1

    # ---- anchor-tile selection --------------------------------------------
    ns_needed = -(-N // _LANES)                    # sublane rows required
    ts_sub = max(min(tile_anchors // _LANES, ns_needed), 1)
    if ts_sub < ns_needed:
        # Multi-tile anchor grid: the sublane block size must be a multiple
        # of 8 (otherwise it must equal the full array dim).
        ts_sub = min(max((ts_sub // 8) * 8, 8), ns_needed)
    if B == 1:
        # v7x megacore: keep >= 2 grid points so both TensorCores get work.
        while ts_sub >= 16 and ts_sub % 16 == 0 and -(-ns_needed // ts_sub) < 2:
            ts_sub //= 2
    tile = ts_sub * _LANES                         # anchors per grid tile
    n_pad = -(-N // tile) * tile
    ns = n_pad // _LANES                           # total sublane rows
    nt = ns // ts_sub                              # N-tile grid extent

    def pack_anchor_planes(x):
        # (..., N, P) -> (..., P, ns, 128): anchor axis packed sublane-dense.
        pad = [(0, 0)] * (x.ndim - 2) + [(0, n_pad - N), (0, 0)]
        x = jnp.pad(x, pad)
        x = jnp.moveaxis(x, -1, -2)                # (..., P, n_pad)
        return x.reshape(*x.shape[:-1], ns, _LANES)

    pb = pack_anchor_planes(pred_bboxes.astype(f32))        # (B, 4, ns, 128)
    tb = pack_anchor_planes(target_bboxes.astype(f32))      # (B, 4, ns, 128)

    in_specs = [
        pl.BlockSpec((1, 4, ts_sub, _LANES), lambda b, n: (b, 0, n, 0)),
        pl.BlockSpec((1, 4, ts_sub, _LANES), lambda b, n: (b, 0, n, 0)),
    ]
    operands = [pb, tb]
    out_shapes = [jax.ShapeDtypeStruct((B, ns, _LANES), f32)]
    out_specs = [pl.BlockSpec((1, ts_sub, _LANES), lambda b, n: (b, n, 0))]

    if use_dfl:
        ap = pack_anchor_planes(anchor_points.astype(f32))  # (2, ns, 128)
        # bf16 DMA of the largest tensor; the cast fuses with the transpose so
        # pred_dist is read once in f32 and written once in bf16 before the
        # kernel.
        # TODO(synk): the biggest remaining end-to-end cost is this wrapper
        # pad/transpose/cast pass over pred_dist; ideally the detection head
        # emits pred_dist already in (B, 4, R, N) layout so it disappears.
        pd = pred_dist.astype(dist_dma_dtype).reshape(B, N, 4, R)
        pd = jnp.pad(pd, ((0, 0), (0, n_pad - N), (0, 0), (0, 0)))
        pd = jnp.transpose(pd, (0, 2, 3, 1)).reshape(B, 4, R, ns, _LANES)
        in_specs += [
            pl.BlockSpec((2, ts_sub, _LANES), lambda b, n: (0, n, 0)),
            pl.BlockSpec((1, 4, R, ts_sub, _LANES), lambda b, n: (b, 0, 0, n, 0)),
        ]
        operands += [ap, pd]
        out_shapes.append(jax.ShapeDtypeStruct((B, ns, _LANES), f32))
        out_specs.append(pl.BlockSpec((1, ts_sub, _LANES), lambda b, n: (b, n, 0)))

    kernel = functools.partial(_bbox_loss_kernel, reg_max=reg_max, use_dfl=use_dfl)
    outs = pl.pallas_call(
        kernel,
        grid_spec=pltpu.PrefetchScalarGridSpec(
            num_scalar_prefetch=0,
            grid=(B, nt),
            in_specs=in_specs,
            out_specs=out_specs,
        ),
        out_shape=tuple(out_shapes),
        compiler_params=pltpu.CompilerParams(
            # No resident accumulators -> every grid point is independent, so
            # both axes can be sharded across TensorCores (v7x megacore).
            dimension_semantics=("parallel", "parallel"),
            # Double-buffered tiles stay in the single-digit-MB range even at
            # ts_sub=32; keep an explicit limit (v5e default scoped is 16 MiB).
            vmem_limit_bytes=32 * 1024 * 1024,
        ),
    )(*operands)

    if use_dfl:
        ciou_pad, dfl_pad = outs
    else:
        (ciou_pad,) = (outs if isinstance(outs, (tuple, list)) else (outs,))

    ciou = ciou_pad.reshape(B, n_pad)[:, :N]       # dense per-anchor CIoU

    # Final reductions in the wrapper on the native layout: the kernel never
    # sees target_scores / fg_mask at all.
    tss = jnp.asarray(target_scores_sum, f32)
    weight = target_scores.astype(f32).sum(-1) * fg_mask.astype(f32)   # (B, N)
    loss_iou = ((1.0 - ciou) * weight).sum() / tss
    if use_dfl:
        dfl = dfl_pad.reshape(B, n_pad)[:, :N]
        loss_dfl = (dfl * weight).sum() / tss
    else:
        loss_dfl = jnp.float32(0.0)
    # TODO(synk): torch.masked_select returns only fg entries (dynamic shape,
    # not expressible on TPU); we return the dense per-anchor CIoU map instead.
    return loss_iou, loss_dfl, ciou


def _reference(pred_dist, pred_bboxes, anchor_points, target_bboxes,
               target_scores, tss, fg_mask, *, reg_max, use_dfl):
    """Pure-JAX reference (same math, jnp.arctan)."""
    eps = 1e-7
    fg = fg_mask.astype(jnp.float32)
    b1x1, b1y1, b1x2, b1y2 = jnp.split(pred_bboxes, 4, -1)
    b2x1, b2y1, b2x2, b2y2 = jnp.split(target_bboxes, 4, -1)
    w1, h1 = b1x2 - b1x1, b1y2 - b1y1 + eps
    w2, h2 = b2x2 - b2x1, b2y2 - b2y1 + eps
    inter = (jnp.clip(jnp.minimum(b1x2, b2x2) - jnp.maximum(b1x1, b2x1), 0.0)
             * jnp.clip(jnp.minimum(b1y2, b2y2) - jnp.maximum(b1y1, b2y1), 0.0))
    union = w1 * h1 + w2 * h2 - inter + eps
    iou = inter / union
    cw = jnp.maximum(b1x2, b2x2) - jnp.minimum(b1x1, b2x1)
    ch = jnp.maximum(b1y2, b2y2) - jnp.minimum(b1y1, b2y1)
    c2 = cw ** 2 + ch ** 2 + eps
    rho2 = ((b2x1 + b2x2 - b1x1 - b1x2) ** 2 + (b2y1 + b2y2 - b1y1 - b1y2) ** 2) / 4
    v = (4.0 / jnp.pi ** 2) * (jnp.arctan(w2 / h2) - jnp.arctan(w1 / h1)) ** 2
    alpha = v / (v - iou + (1 + eps))
    ciou = (iou - (rho2 / c2 + v * alpha))[..., 0]            # (B, N)
    weight = target_scores.sum(-1) * fg
    loss_iou = ((1.0 - ciou) * weight).sum() / tss
    R = reg_max + 1
    ltrb = jnp.clip(jnp.concatenate([anchor_points[None] - target_bboxes[..., :2],
                                     target_bboxes[..., 2:] - anchor_points[None]], -1),
                    0.0, reg_max - 0.01)
    pd = pred_dist.reshape(*pred_dist.shape[:-1], 4, R)
    tl = jnp.floor(ltrb)
    wl = tl + 1.0 - ltrb
    wr = 1.0 - wl
    lse = jax.nn.logsumexp(pd, -1)
    gl = jnp.take_along_axis(pd, tl[..., None].astype(jnp.int32), -1)[..., 0]
    gr = jnp.take_along_axis(pd, (tl + 1.0)[..., None].astype(jnp.int32), -1)[..., 0]
    dfl = ((lse - gl) * wl + (lse - gr) * wr).mean(-1)
    loss_dfl = (dfl * weight).sum() / tss if use_dfl else jnp.float32(0.0)
    return loss_iou, loss_dfl, ciou


if __name__ == "__main__":
    B, N, C, reg_max = 2, 200, 8, 16    # N deliberately not a multiple of 128
    use_dfl = True

    key = jax.random.PRNGKey(0)
    ks = jax.random.split(key, 8)
    anchor_points = jax.random.uniform(ks[0], (N, 2), minval=2.0, maxval=14.0)
    wh = jax.random.uniform(ks[1], (B, N, 2), minval=2.0, maxval=6.0)
    off = jax.random.uniform(ks[2], (B, N, 2), minval=-1.0, maxval=1.0)
    ctr = anchor_points[None] + off
    target_bboxes = jnp.concatenate([ctr - wh / 2, ctr + wh / 2], axis=-1)
    pred_bboxes = target_bboxes + jax.random.uniform(ks[3], (B, N, 4),
                                                     minval=-0.3, maxval=0.3)
    pred_dist = jax.random.normal(ks[4], (B, N, 4 * (reg_max + 1)))
    target_scores = (jax.nn.softmax(jax.random.normal(ks[5], (B, N, C)), axis=-1)
                     * jax.random.uniform(ks[6], (B, N, 1)))
    fg_mask = jax.random.uniform(ks[7], (B, N)) > 0.5
    target_scores_sum = jnp.maximum(target_scores.sum(), 1.0)

    loss_iou, loss_dfl, ciou_map = bbox_loss_forward(
        pred_dist, pred_bboxes, anchor_points, target_bboxes,
        target_scores, target_scores_sum, fg_mask,
        reg_max=reg_max, use_dfl=use_dfl)
    jax.block_until_ready((loss_iou, loss_dfl, ciou_map))

    # Tight check vs. a reference fed the same bf16-rounded pred_dist (the bf16
    # DMA of pred_dist is an intentional bandwidth optimization; the kernel
    # does all math in f32 on those values).
    pred_dist_rounded = pred_dist.astype(jnp.bfloat16).astype(jnp.float32)
    ref_iou, ref_dfl, ref_map = _reference(
        pred_dist_rounded, pred_bboxes, anchor_points, target_bboxes,
        target_scores, target_scores_sum, fg_mask,
        reg_max=reg_max, use_dfl=use_dfl)
    assert jnp.allclose(loss_iou, ref_iou, atol=1e-4, rtol=1e-4), (loss_iou, ref_iou)
    assert jnp.allclose(loss_dfl, ref_dfl, atol=1e-4, rtol=1e-4), (loss_dfl, ref_dfl)
    assert jnp.allclose(ciou_map, ref_map, atol=1e-4, rtol=1e-4)

    # Looser check vs. the full-f32 reference (bounds the bf16 rounding effect).
    ref_iou32, ref_dfl32, _ = _reference(
        pred_dist, pred_bboxes, anchor_points, target_bboxes,
        target_scores, target_scores_sum, fg_mask,
        reg_max=reg_max, use_dfl=use_dfl)
    assert jnp.allclose(loss_iou, ref_iou32, atol=1e-4, rtol=1e-4)
    assert jnp.allclose(loss_dfl, ref_dfl32, atol=2e-2, rtol=2e-2), (loss_dfl, ref_dfl32)

    print("KERNEL_OK")
</pallas_src>

<mosaic_0001>
module attributes {stable_mosaic.version = 11 : i64} {
  func.func @_bbox_loss_kernel(%arg0: i32, %arg1: i32, %arg2: memref<1x4x2x128xf32, #tpu.memory_space<vmem>>, %arg3: memref<1x4x2x128xf32, #tpu.memory_space<vmem>>, %arg4: memref<2x2x128xf32, #tpu.memory_space<vmem>>, %arg5: memref<1x4x17x2x128xbf16, #tpu.memory_space<vmem>>, %arg6: memref<1x2x128xf32, #tpu.memory_space<vmem>>, %arg7: memref<1x2x128xf32, #tpu.memory_space<vmem>>) attributes {dimension_semantics = [#tpu.dimension_semantics<parallel>, #tpu.dimension_semantics<parallel>], iteration_bounds = array<i64: 2, 1>, scalar_prefetch = 0 : i64, scratch_operands = 0 : i64, tpu.core_type = #tpu.core_type<tc>, window_params = [{transform_indices = @transform_0, window_bounds = array<i64: 1, 4, 2, 128>}, {transform_indices = @transform_1, window_bounds = array<i64: 1, 4, 2, 128>}, {transform_indices = @transform_2, window_bounds = array<i64: 2, 2, 128>}, {transform_indices = @transform_3, window_bounds = array<i64: 1, 4, 17, 2, 128>}, {transform_indices = @transform_4, window_bounds = array<i64: 1, 2, 128>}, {transform_indices = @transform_5, window_bounds = array<i64: 1, 2, 128>}]} {
    %c0 = arith.constant 0 : index
    %c0_0 = arith.constant 0 : index
    %c0_1 = arith.constant 0 : index
    %c0_2 = arith.constant 0 : index
    %0 = vector.load %arg2[%c0, %c0_0, %c0_1, %c0_2] : memref<1x4x2x128xf32, #tpu.memory_space<vmem>>, vector<1x1x2x128xf32>
    %1 = vector.shape_cast %0 : vector<1x1x2x128xf32> to vector<2x128xf32>
    %c0_3 = arith.constant 0 : index
    %c1 = arith.constant 1 : index
    %c0_4 = arith.constant 0 : index
    %c0_5 = arith.constant 0 : index
    %2 = vector.load %arg2[%c0_3, %c1, %c0_4, %c0_5] : memref<1x4x2x128xf32, #tpu.memory_space<vmem>>, vector<1x1x2x128xf32>
    %3 = vector.shape_cast %2 : vector<1x1x2x128xf32> to vector<2x128xf32>
    %c0_6 = arith.constant 0 : index
    %c2 = arith.constant 2 : index
    %c0_7 = arith.constant 0 : index
    %c0_8 = arith.constant 0 : index
    %4 = vector.load %arg2[%c0_6, %c2, %c0_7, %c0_8] : memref<1x4x2x128xf32, #tpu.memory_space<vmem>>, vector<1x1x2x128xf32>
    %5 = vector.shape_cast %4 : vector<1x1x2x128xf32> to vector<2x128xf32>
    %c0_9 = arith.constant 0 : index
    %c3 = arith.constant 3 : index
    %c0_10 = arith.constant 0 : index
    %c0_11 = arith.constant 0 : index
    %6 = vector.load %arg2[%c0_9, %c3, %c0_10, %c0_11] : memref<1x4x2x128xf32, #tpu.memory_space<vmem>>, vector<1x1x2x128xf32>
    %7 = vector.shape_cast %6 : vector<1x1x2x128xf32> to vector<2x128xf32>
    %c0_12 = arith.constant 0 : index
    %c0_13 = arith.constant 0 : index
    %c0_14 = arith.constant 0 : index
    %c0_15 = arith.constant 0 : index
    %8 = vector.load %arg3[%c0_12, %c0_13, %c0_14, %c0_15] : memref<1x4x2x128xf32, #tpu.memory_space<vmem>>, vector<1x1x2x128xf32>
    %9 = vector.shape_cast %8 : vector<1x1x2x128xf32> to vector<2x128xf32>
    %c0_16 = arith.constant 0 : index
    %c1_17 = arith.constant 1 : index
    %c0_18 = arith.constant 0 : index
    %c0_19 = arith.constant 0 : index
    %10 = vector.load %arg3[%c0_16, %c1_17, %c0_18, %c0_19] : memref<1x4x2x128xf32, #tpu.memory_space<vmem>>, vector<1x1x2x128xf32>
    %11 = vector.shape_cast %10 : vector<1x1x2x128xf32> to vector<2x128xf32>
    %c0_20 = arith.constant 0 : index
    %c2_21 = arith.constant 2 : index
    %c0_22 = arith.constant 0 : index
    %c0_23 = arith.constant 0 : index
    %12 = vector.load %arg3[%c0_20, %c2_21, %c0_22, %c0_23] : memref<1x4x2x128xf32, #tpu.memory_space<vmem>>, vector<1x1x2x128xf32>
    %13 = vector.shape_cast %12 : vector<1x1x2x128xf32> to vector<2x128xf32>
    %c0_24 = arith.constant 0 : index
    %c3_25 = arith.constant 3 : index
    %c0_26 = arith.constant 0 : index
    %c0_27 = arith.constant 0 : index
    %14 = vector.load %arg3[%c0_24, %c3_25, %c0_26, %c0_27] : memref<1x4x2x128xf32, #tpu.memory_space<vmem>>, vector<1x1x2x128xf32>
    %15 = vector.shape_cast %14 : vector<1x1x2x128xf32> to vector<2x128xf32>
    %16 = arith.subf %5, %1 : vector<2x128xf32>
    %17 = arith.subf %7, %3 : vector<2x128xf32>
    %cst = arith.constant 1.000000e-07 : f32
    %18 = vector.broadcast %cst : f32 to vector<2x128xf32>
    %19 = arith.addf %17, %18 : vector<2x128xf32>
    %20 = arith.subf %13, %9 : vector<2x128xf32>
    %21 = arith.subf %15, %11 : vector<2x128xf32>
    %cst_28 = arith.constant 1.000000e-07 : f32
    %22 = vector.broadcast %cst_28 : f32 to vector<2x128xf32>
    %23 = arith.addf %21, %22 : vector<2x128xf32>
    %24 = arith.minimumf %5, %13 : vector<2x128xf32>
    %25 = arith.maximumf %1, %9 : vector<2x128xf32>
    %26 = arith.subf %24, %25 : vector<2x128xf32>
    %cst_29 = arith.constant 0.000000e+00 : f32
    %27 = vector.broadcast %cst_29 : f32 to vector<2x128xf32>
    %28 = arith.maximumf %26, %27 : vector<2x128xf32>
    %29 = arith.minimumf %7, %15 : vector<2x128xf32>
    %30 = arith.maximumf %3, %11 : vector<2x128xf32>
    %31 = arith.subf %29, %30 : vector<2x128xf32>
    %cst_30 = arith.constant 0.000000e+00 : f32
    %32 = vector.broadcast %cst_30 : f32 to vector<2x128xf32>
    %33 = arith.maximumf %31, %32 : vector<2x128xf32>
    %34 = arith.mulf %28, %33 : vector<2x128xf32>
    %35 = arith.mulf %16, %19 : vector<2x128xf32>
    %36 = arith.mulf %20, %23 : vector<2x128xf32>
    %37 = arith.addf %35, %36 : vector<2x128xf32>
    %38 = arith.subf %37, %34 : vector<2x128xf32>
    %cst_31 = arith.constant 1.000000e-07 : f32
    %39 = vector.broadcast %cst_31 : f32 to vector<2x128xf32>
    %40 = arith.addf %38, %39 : vector<2x128xf32>
    %41 = arith.divf %34, %40 : vector<2x128xf32>
    %42 = arith.maximumf %5, %13 : vector<2x128xf32>
    %43 = arith.minimumf %1, %9 : vector<2x128xf32>
    %44 = arith.subf %42, %43 : vector<2x128xf32>
    %45 = arith.maximumf %7, %15 : vector<2x128xf32>
    %46 = arith.minimumf %3, %11 : vector<2x128xf32>
    %47 = arith.subf %45, %46 : vector<2x128xf32>
    %48 = arith.mulf %44, %44 : vector<2x128xf32>
    %49 = arith.mulf %47, %47 : vector<2x128xf32>
    %50 = arith.addf %48, %49 : vector<2x128xf32>
    %cst_32 = arith.constant 1.000000e-07 : f32
    %51 = vector.broadcast %cst_32 : f32 to vector<2x128xf32>
    %52 = arith.addf %50, %51 : vector<2x128xf32>
    %53 = arith.addf %9, %13 : vector<2x128xf32>
    %54 = arith.subf %53, %1 : vector<2x128xf32>
    %55 = arith.subf %54, %5 : vector<2x128xf32>
    %56 = arith.mulf %55, %55 : vector<2x128xf32>
    %57 = arith.addf %11, %15 : vector<2x128xf32>
    %58 = arith.subf %57, %3 : vector<2x128xf32>
    %59 = arith.subf %58, %7 : vector<2x128xf32>
    %60 = arith.mulf %59, %59 : vector<2x128xf32>
    %61 = arith.addf %56, %60 : vector<2x128xf32>
    %cst_33 = arith.constant 2.500000e-01 : f32
    %62 = vector.broadcast %cst_33 : f32 to vector<2x128xf32>
    %63 = arith.mulf %61, %62 : vector<2x128xf32>
    %64 = tpu.reciprocal %23 {approx = true} : vector<2x128xf32> -> vector<2x128xf32>
    %65 = arith.mulf %23, %64 : vector<2x128xf32>
    %cst_34 = arith.constant 2.000000e+00 : f32
    %66 = vector.broadcast %cst_34 : f32 to vector<2x128xf32>
    %67 = arith.subf %66, %65 : vector<2x128xf32>
    %68 = arith.mulf %64, %67 : vector<2x128xf32>
    %69 = arith.mulf %20, %68 : vector<2x128xf32>
    %cst_35 = arith.constant 0.000000e+00 : f32
    %70 = vector.broadcast %cst_35 : f32 to vector<2x128xf32>
    %71 = arith.cmpf olt, %69, %70 : vector<2x128xf32>
    %cst_36 = arith.constant -1.000000e+00 : f32
    %cst_37 = arith.constant 1.000000e+00 : f32
    %72 = vector.broadcast %cst_36 : f32 to vector<2x128xf32>
    %73 = vector.broadcast %cst_37 : f32 to vector<2x128xf32>
    %74 = arith.select %71, %72, %73 : vector<2x128xi1>, vector<2x128xf32>
    %75 = math.absf %69 : vector<2x128xf32>
    %cst_38 = arith.constant 2.41421366 : f32
    %76 = vector.broadcast %cst_38 : f32 to vector<2x128xf32>
    %77 = arith.cmpf ogt, %75, %76 : vector<2x128xf32>
    %cst_39 = arith.constant 0.414213568 : f32
    %78 = vector.broadcast %cst_39 : f32 to vector<2x128xf32>
    %79 = arith.cmpf ogt, %75, %78 : vector<2x128xf32>
    %cst_40 = arith.constant dense<true> : vector<2x128xi1>
    %80 = arith.xori %77, %cst_40 : vector<2x128xi1>
    %81 = arith.andi %79, %80 : vector<2x128xi1>
    %cst_41 = arith.constant 1.000000e+00 : f32
    %82 = vector.broadcast %cst_41 : f32 to vector<2x128xf32>
    %83 = arith.select %77, %75, %82 : vector<2x128xi1>, vector<2x128xf32>
    %84 = tpu.reciprocal %83 {approx = true} : vector<2x128xf32> -> vector<2x128xf32>
    %85 = arith.mulf %83, %84 : vector<2x128xf32>
    %cst_42 = arith.constant 2.000000e+00 : f32
    %86 = vector.broadcast %cst_42 : f32 to vector<2x128xf32>
    %87 = arith.subf %86, %85 : vector<2x128xf32>
    %88 = arith.mulf %84, %87 : vector<2x128xf32>
    %cst_43 = arith.constant 0.000000e+00 : f32
    %89 = vector.broadcast %cst_43 : f32 to vector<2x128xf32>
    %90 = arith.subf %89, %88 : vector<2x128xf32>
    %cst_44 = arith.constant 1.000000e+00 : f32
    %91 = vector.broadcast %cst_44 : f32 to vector<2x128xf32>
    %92 = arith.subf %75, %91 : vector<2x128xf32>
    %cst_45 = arith.constant 1.000000e+00 : f32
    %93 = vector.broadcast %cst_45 : f32 to vector<2x128xf32>
    %94 = arith.addf %75, %93 : vector<2x128xf32>
    %95 = tpu.reciprocal %94 {approx = true} : vector<2x128xf32> -> vector<2x128xf32>
    %96 = arith.mulf %94, %95 : vector<2x128xf32>
    %cst_46 = arith.constant 2.000000e+00 : f32
    %97 = vector.broadcast %cst_46 : f32 to vector<2x128xf32>
    %98 = arith.subf %97, %96 : vector<2x128xf32>
    %99 = arith.mulf %95, %98 : vector<2x128xf32>
    %100 = arith.mulf %92, %99 : vector<2x128xf32>
    %101 = arith.select %81, %100, %75 : vector<2x128xi1>, vector<2x128xf32>
    %102 = arith.select %77, %90, %101 : vector<2x128xi1>, vector<2x128xf32>
    %cst_47 = arith.constant 0.785398185 : f32
    %cst_48 = arith.constant 0.000000e+00 : f32
    %103 = vector.broadcast %cst_47 : f32 to vector<2x128xf32>
    %104 = vector.broadcast %cst_48 : f32 to vector<2x128xf32>
    %105 = arith.select %81, %103, %104 : vector<2x128xi1>, vector<2x128xf32>
    %cst_49 = arith.constant 1.57079637 : f32
    %106 = vector.broadcast %cst_49 : f32 to vector<2x128xf32>
    %107 = arith.select %77, %106, %105 : vector<2x128xi1>, vector<2x128xf32>
    %108 = arith.mulf %102, %102 : vector<2x128xf32>
    %cst_50 = arith.constant 0.0805374458 : f32
    %109 = vector.broadcast %cst_50 : f32 to vector<2x128xf32>
    %110 = arith.mulf %109, %108 : vector<2x128xf32>
    %cst_51 = arith.constant 0.138776854 : f32
    %111 = vector.broadcast %cst_51 : f32 to vector<2x128xf32>
    %112 = arith.subf %110, %111 : vector<2x128xf32>
    %113 = arith.mulf %112, %108 : vector<2x128xf32>
    %cst_52 = arith.constant 0.199777111 : f32
    %114 = vector.broadcast %cst_52 : f32 to vector<2x128xf32>
    %115 = arith.addf %113, %114 : vector<2x128xf32>
    %116 = arith.mulf %115, %108 : vector<2x128xf32>
    %cst_53 = arith.constant 0.333329499 : f32
    %117 = vector.broadcast %cst_53 : f32 to vector<2x128xf32>
    %118 = arith.subf %116, %117 : vector<2x128xf32>
    %119 = arith.mulf %118, %108 : vector<2x128xf32>
    %120 = arith.mulf %119, %102 : vector<2x128xf32>
    %121 = arith.addf %107, %120 : vector<2x128xf32>
    %122 = arith.addf %121, %102 : vector<2x128xf32>
    %123 = arith.mulf %74, %122 : vector<2x128xf32>
    %124 = tpu.reciprocal %19 {approx = true} : vector<2x128xf32> -> vector<2x128xf32>
    %125 = arith.mulf %19, %124 : vector<2x128xf32>
    %cst_54 = arith.constant 2.000000e+00 : f32
    %126 = vector.broadcast %cst_54 : f32 to vector<2x128xf32>
    %127 = arith.subf %126, %125 : vector<2x128xf32>
    %128 = arith.mulf %124, %127 : vector<2x128xf32>
    %129 = arith.mulf %16, %128 : vector<2x128xf32>
    %cst_55 = arith.constant 0.000000e+00 : f32
    %130 = vector.broadcast %cst_55 : f32 to vector<2x128xf32>
    %131 = arith.cmpf olt, %129, %130 : vector<2x128xf32>
    %cst_56 = arith.constant -1.000000e+00 : f32
    %cst_57 = arith.constant 1.000000e+00 : f32
    %132 = vector.broadcast %cst_56 : f32 to vector<2x128xf32>
    %133 = vector.broadcast %cst_57 : f32 to vector<2x128xf32>
    %134 = arith.select %131, %132, %133 : vector<2x128xi1>, vector<2x128xf32>
    %135 = math.absf %129 : vector<2x128xf32>
    %cst_58 = arith.constant 2.41421366 : f32
    %136 = vector.broadcast %cst_58 : f32 to vector<2x128xf32>
    %137 = arith.cmpf ogt, %135, %136 : vector<2x128xf32>
    %cst_59 = arith.constant 0.414213568 : f32
    %138 = vector.broadcast %cst_59 : f32 to vector<2x128xf32>
    %139 = arith.cmpf ogt, %135, %138 : vector<2x128xf32>
    %cst_60 = arith.constant dense<true> : vector<2x128xi1>
    %140 = arith.xori %137, %cst_60 : vector<2x128xi1>
    %141 = arith.andi %139, %140 : vector<2x128xi1>
    %cst_61 = arith.constant 1.000000e+00 : f32
    %142 = vector.broadcast %cst_61 : f32 to vector<2x128xf32>
    %143 = arith.select %137, %135, %142 : vector<2x128xi1>, vector<2x128xf32>
    %144 = tpu.reciprocal %143 {approx = true} : vector<2x128xf32> -> vector<2x128xf32>
    %145 = arith.mulf %143, %144 : vector<2x128xf32>
    %cst_62 = arith.constant 2.000000e+00 : f32
    %146 = vector.broadcast %cst_62 : f32 to vector<2x128xf32>
    %147 = arith.subf %146, %145 : vector<2x128xf32>
    %148 = arith.mulf %144, %147 : vector<2x128xf32>
    %cst_63 = arith.constant 0.000000e+00 : f32
    %149 = vector.broadcast %cst_63 : f32 to vector<2x128xf32>
    %150 = arith.subf %149, %148 : vector<2x128xf32>
    %cst_64 = arith.constant 1.000000e+00 : f32
    %151 = vector.broadcast %cst_64 : f32 to vector<2x128xf32>
    %152 = arith.subf %135, %151 : vector<2x128xf32>
    %cst_65 = arith.constant 1.000000e+00 : f32
    %153 = vector.broadcast %cst_65 : f32 to vector<2x128xf32>
    %154 = arith.addf %135, %153 : vector<2x128xf32>
    %155 = tpu.reciprocal %154 {approx = true} : vector<2x128xf32> -> vector<2x128xf32>
    %156 = arith.mulf %154, %155 : vector<2x128xf32>
    %cst_66 = arith.constant 2.000000e+00 : f32
    %157 = vector.broadcast %cst_66 : f32 to vector<2x128xf32>
    %158 = arith.subf %157, %156 : vector<2x128xf32>
    %159 = arith.mulf %155, %158 : vector<2x128xf32>
    %160 = arith.mulf %152, %159 : vector<2x128xf32>
    %161 = arith.select %141, %160, %135 : vector<2x128xi1>, vector<2x128xf32>
    %162 = arith.select %137, %150, %161 : vector<2x128xi1>, vector<2x128xf32>
    %cst_67 = arith.constant 0.785398185 : f32
    %cst_68 = arith.constant 0.000000e+00 : f32
    %163 = vector.broadcast %cst_67 : f32 to vector<2x128xf32>
    %164 = vector.broadcast %cst_68 : f32 to vector<2x128xf32>
    %165 = arith.select %141, %163, %164 : vector<2x128xi1>, vector<2x128xf32>
    %cst_69 = arith.constant 1.57079637 : f32
    %166 = vector.broadcast %cst_69 : f32 to vector<2x128xf32>
    %167 = arith.select %137, %166, %165 : vector<2x128xi1>, vector<2x128xf32>
    %168 = arith.mulf %162, %162 : vector<2x128xf32>
    %cst_70 = arith.constant 0.0805374458 : f32
    %169 = vector.broadcast %cst_70 : f32 to vector<2x128xf32>
    %170 = arith.mulf %169, %168 : vector<2x128xf32>
    %cst_71 = arith.constant 0.138776854 : f32
    %171 = vector.broadcast %cst_71 : f32 to vector<2x128xf32>
    %172 = arith.subf %170, %171 : vector<2x128xf32>
    %173 = arith.mulf %172, %168 : vector<2x128xf32>
    %cst_72 = arith.constant 0.199777111 : f32
    %174 = vector.broadcast %cst_72 : f32 to vector<2x128xf32>
    %175 = arith.addf %173, %174 : vector<2x128xf32>
    %176 = arith.mulf %175, %168 : vector<2x128xf32>
    %cst_73 = arith.constant 0.333329499 : f32
    %177 = vector.broadcast %cst_73 : f32 to vector<2x128xf32>
    %178 = arith.subf %176, %177 : vector<2x128xf32>
    %179 = arith.mulf %178, %168 : vector<2x128xf32>
    %180 = arith.mulf %179, %162 : vector<2x128xf32>
    %181 = arith.addf %167, %180 : vector<2x128xf32>
    %182 = arith.addf %181, %162 : vector<2x128xf32>
    %183 = arith.mulf %134, %182 : vector<2x128xf32>
    %184 = arith.subf %123, %183 : vector<2x128xf32>
    %185 = arith.mulf %184, %184 : vector<2x128xf32>
    %cst_74 = arith.constant 0.405284733 : f32
    %186 = vector.broadcast %cst_74 : f32 to vector<2x128xf32>
    %187 = arith.mulf %186, %185 : vector<2x128xf32>
    %188 = arith.subf %187, %41 : vector<2x128xf32>
    %cst_75 = arith.constant 1.00000012 : f32
    %189 = vector.broadcast %cst_75 : f32 to vector<2x128xf32>
    %190 = arith.addf %188, %189 : vector<2x128xf32>
    %191 = tpu.reciprocal %190 {approx = true} : vector<2x128xf32> -> vector<2x128xf32>
    %192 = arith.mulf %187, %191 : vector<2x128xf32>
    %193 = arith.divf %63, %52 : vector<2x128xf32>
    %194 = arith.mulf %187, %192 : vector<2x128xf32>
    %195 = arith.addf %193, %194 : vector<2x128xf32>
    %196 = arith.subf %41, %195 : vector<2x128xf32>
    %c0_76 = arith.constant 0 : index
    %c0_77 = arith.constant 0 : index
    %c0_78 = arith.constant 0 : index
    %197 = vector.load %arg6[%c0_76, %c0_77, %c0_78] : memref<1x2x128xf32, #tpu.memory_space<vmem>>, vector<1x2x128xf32>
    %198 = vector.shape_cast %197 : vector<1x2x128xf32> to vector<2x128xf32>
    %199 = vector.shape_cast %196 : vector<2x128xf32> to vector<1x2x128xf32>
    tpu.vector_store %arg6[%c0_76, %c0_77, %c0_78], %199 {strides = array<i32>} : memref<1x2x128xf32, #tpu.memory_space<vmem>>, vector<1x2x128xf32>,
    %c0_79 = arith.constant 0 : index
    %c0_80 = arith.constant 0 : index
    %c0_81 = arith.constant 0 : index
    %200 = vector.load %arg4[%c0_79, %c0_80, %c0_81] : memref<2x2x128xf32, #tpu.memory_space<vmem>>, vector<1x2x128xf32>
    %201 = vector.shape_cast %200 : vector<1x2x128xf32> to vector<2x128xf32>
    %c1_82 = arith.constant 1 : index
    %c0_83 = arith.constant 0 : index
    %c0_84 = arith.constant 0 : index
    %202 = vector.load %arg4[%c1_82, %c0_83, %c0_84] : memref<2x2x128xf32, #tpu.memory_space<vmem>>, vector<1x2x128xf32>
    %203 = vector.shape_cast %202 : vector<1x2x128xf32> to vector<2x128xf32>
    %204 = arith.subf %201, %9 : vector<2x128xf32>
    %205 = arith.subf %203, %11 : vector<2x128xf32>
    %206 = arith.subf %13, %201 : vector<2x128xf32>
    %207 = arith.subf %15, %203 : vector<2x128xf32>
    %cst_85 = arith.constant 0.000000e+00 : f32
    %208 = vector.broadcast %cst_85 : f32 to vector<2x128xf32>
    %cst_86 = arith.constant 0.000000e+00 : f32
    %cst_87 = arith.constant 1.599000e+01 : f32
    %209 = vector.broadcast %cst_86 : f32 to vector<2x128xf32>
    %210 = arith.maximumf %209, %204 : vector<2x128xf32>
    %211 = vector.broadcast %cst_87 : f32 to vector<2x128xf32>
    %212 = arith.minimumf %211, %210 : vector<2x128xf32>
    %c0_88 = arith.constant 0 : index
    %c0_89 = arith.constant 0 : index
    %c0_90 = arith.constant 0 : index
    %c0_91 = arith.constant 0 : index
    %c0_92 = arith.constant 0 : index
    %213 = vector.load %arg5[%c0_88, %c0_89, %c0_90, %c0_91, %c0_92] : memref<1x4x17x2x128xbf16, #tpu.memory_space<vmem>>, vector<1x1x1x2x128xbf16>
    %214 = vector.shape_cast %213 : vector<1x1x1x2x128xbf16> to vector<2x128xbf16>
    %215 = arith.extf %214 : vector<2x128xbf16> to vector<2x128xf32>
    %c0_93 = arith.constant 0 : index
    %c0_94 = arith.constant 0 : index
    %c1_95 = arith.constant 1 : index
    %c0_96 = arith.constant 0 : index
    %c0_97 = arith.constant 0 : index
    %216 = vector.load %arg5[%c0_93, %c0_94, %c1_95, %c0_96, %c0_97] : memref<1x4x17x2x128xbf16, #tpu.memory_space<vmem>>, vector<1x1x1x2x128xbf16>
    %217 = vector.shape_cast %216 : vector<1x1x1x2x128xbf16> to vector<2x128xbf16>
    %218 = arith.extf %217 : vector<2x128xbf16> to vector<2x128xf32>
    %219 = arith.maximumf %215, %218 : vector<2x128xf32>
    %c0_98 = arith.constant 0 : index
    %c0_99 = arith.constant 0 : index
    %c2_100 = arith.constant 2 : index
    %c0_101 = arith.constant 0 : index
    %c0_102 = arith.constant 0 : index
    %220 = vector.load %arg5[%c0_98, %c0_99, %c2_100, %c0_101, %c0_102] : memref<1x4x17x2x128xbf16, #tpu.memory_space<vmem>>, vector<1x1x1x2x128xbf16>
    %221 = vector.shape_cast %220 : vector<1x1x1x2x128xbf16> to vector<2x128xbf16>
    %222 = arith.extf %221 : vector<2x128xbf16> to vector<2x128xf32>
    %223 = arith.maximumf %219, %222 : vector<2x128xf32>
    %c0_103 = arith.constant 0 : index
    %c0_104 = arith.constant 0 : index
    %c3_105 = arith.constant 3 : index
    %c0_106 = arith.constant 0 : index
    %c0_107 = arith.constant 0 : index
    %224 = vector.load %arg5[%c0_103, %c0_104, %c3_105, %c0_106, %c0_107] : memref<1x4x17x2x128xbf16, #tpu.memory_space<vmem>>, vector<1x1x1x2x128xbf16>
    %225 = vector.shape_cast %224 : vector<1x1x1x2x128xbf16> to vector<2x128xbf16>
    %226 = arith.extf %225 : vector<2x128xbf16> to vector<2x128xf32>
    %227 = arith.maximumf %223, %226 : vector<2x128xf32>
    %c0_108 = arith.constant 0 : index
    %c0_109 = arith.constant 0 : index
    %c4 = arith.constant 4 : index
    %c0_110 = arith.constant 0 : index
    %c0_111 = arith.constant 0 : index
    %228 = vector.load %arg5[%c0_108, %c0_109, %c4, %c0_110, %c0_111] : memref<1x4x17x2x128xbf16, #tpu.memory_space<vmem>>, vector<1x1x1x2x128xbf16>
    %229 = vector.shape_cast %228 : vector<1x1x1x2x128xbf16> to vector<2x128xbf16>
    %230 = arith.extf %229 : vector<2x128xbf16> to vector<2x128xf32>
    %231 = arith.maximumf %227, %230 : vector<2x128xf32>
    %c0_112 = arith.constant 0 : index
    %c0_113 = arith.constant 0 : index
    %c5 = arith.constant 5 : index
    %c0_114 = arith.constant 0 : index
    %c0_115 = arith.constant 0 : index
    %232 = vector.load %arg5[%c0_112, %c0_113, %c5, %c0_114, %c0_115] : memref<1x4x17x2x128xbf16, #tpu.memory_space<vmem>>, vector<1x1x1x2x128xbf16>
    %233 = vector.shape_cast %232 : vector<1x1x1x2x128xbf16> to vector<2x128xbf16>
    %234 = arith.extf %233 : vector<2x128xbf16> to vector<2x128xf32>
    %235 = arith.maximumf %231, %234 : vector<2x128xf32>
    %c0_116 = arith.constant 0 : index
    %c0_117 = arith.constant 0 : index
    %c6 = arith.constant 6 : index
    %c0_118 = arith.constant 0 : index
    %c0_119 = arith.constant 0 : index
    %236 = vector.load %arg5[%c0_116, %c0_117, %c6, %c0_118, %c0_119] : memref<1x4x17x2x128xbf16, #tpu.memory_space<vmem>>, vector<1x1x1x2x128xbf16>
    %237 = vector.shape_cast %236 : vector<1x1x1x2x128xbf16> to vector<2x128xbf16>
    %238 = arith.extf %237 : vector<2x128xbf16> to vector<2x128xf32>
    %239 = arith.maximumf %235, %238 : vector<2x128xf32>
    %c0_120 = arith.constant 0 : index
    %c0_121 = arith.constant 0 : index
    %c7 = arith.constant 7 : index
    %c0_122 = arith.constant 0 : index
    %c0_123 = arith.constant 0 : index
    %240 = vector.load %arg5[%c0_120, %c0_121, %c7, %c0_122, %c0_123] : memref<1x4x17x2x128xbf16, #tpu.memory_space<vmem>>, vector<1x1x1x2x128xbf16>
    %241 = vector.shape_cast %240 : vector<1x1x1x2x128xbf16> to vector<2x128xbf16>
    %242 = arith.extf %241 : vector<2x128xbf16> to vector<2x128xf32>
    %243 = arith.maximumf %239, %242 : vector<2x128xf32>
    %c0_124 = arith.constant 0 : index
    %c0_125 = arith.constant 0 : index
    %c8 = arith.constant 8 : index
    %c0_126 = arith.constant 0 : index
    %c0_127 = arith.constant 0 : index
    %244 = vector.load %arg5[%c0_124, %c0_125, %c8, %c0_126, %c0_127] : memref<1x4x17x2x128xbf16, #tpu.memory_space<vmem>>, vector<1x1x1x2x128xbf16>
    %245 = vector.shape_cast %244 : vector<1x1x1x2x128xbf16> to vector<2x128xbf16>
    %246 = arith.extf %245 : vector<2x128xbf16> to vector<2x128xf32>
    %247 = arith.maximumf %243, %246 : vector<2x128xf32>
    %c0_128 = arith.constant 0 : index
    %c0_129 = arith.constant 0 : index
    %c9 = arith.constant 9 : index
    %c0_130 = arith.constant 0 : index
    %c0_131 = arith.constant 0 : index
    %248 = vector.load %arg5[%c0_128, %c0_129, %c9, %c0_130, %c0_131] : memref<1x4x17x2x128xbf16, #tpu.memory_space<vmem>>, vector<1x1x1x2x128xbf16>
    %249 = vector.shape_cast %248 : vector<1x1x1x2x128xbf16> to vector<2x128xbf16>
    %250 = arith.extf %249 : vector<2x128xbf16> to vector<2x128xf32>
    %251 = arith.maximumf %247, %250 : vector<2x128xf32>
    %c0_132 = arith.constant 0 : index
    %c0_133 = arith.constant 0 : index
    %c10 = arith.constant 10 : index
    %c0_134 = arith.constant 0 : index
    %c0_135 = arith.constant 0 : index
    %252 = vector.load %arg5[%c0_132, %c0_133, %c10, %c0_134, %c0_135] : memref<1x4x17x2x128xbf16, #tpu.memory_space<vmem>>, vector<1x1x1x2x128xbf16>
    %253 = vector.shape_cast %252 : vector<1x1x1x2x128xbf16> to vector<2x128xbf16>
    %254 = arith.extf %253 : vector<2x128xbf16> to vector<2x128xf32>
    %255 = arith.maximumf %251, %254 : vector<2x128xf32>
    %c0_136 = arith.constant 0 : index
    %c0_137 = arith.constant 0 : index
    %c11 = arith.constant 11 : index
    %c0_138 = arith.constant 0 : index
    %c0_139 = arith.constant 0 : index
    %256 = vector.load %arg5[%c0_136, %c0_137, %c11, %c0_138, %c0_139] : memref<1x4x17x2x128xbf16, #tpu.memory_space<vmem>>, vector<1x1x1x2x128xbf16>
    %257 = vector.shape_cast %256 : vector<1x1x1x2x128xbf16> to vector<2x128xbf16>
    %258 = arith.extf %257 : vector<2x128xbf16> to vector<2x128xf32>
    %259 = arith.maximumf %255, %258 : vector<2x128xf32>
    %c0_140 = arith.constant 0 : index
    %c0_141 = arith.constant 0 : index
    %c12 = arith.constant 12 : index
    %c0_142 = arith.constant 0 : index
    %c0_143 = arith.constant 0 : index
    %260 = vector.load %arg5[%c0_140, %c0_141, %c12, %c0_142, %c0_143] : memref<1x4x17x2x128xbf16, #tpu.memory_space<vmem>>, vector<1x1x1x2x128xbf16>
    %261 = vector.shape_cast %260 : vector<1x1x1x2x128xbf16> to vector<2x128xbf16>
    %262 = arith.extf %261 : vector<2x128xbf16> to vector<2x128xf32>
    %263 = arith.maximumf %259, %262 : vector<2x128xf32>
    %c0_144 = arith.constant 0 : index
    %c0_145 = arith.constant 0 : index
    %c13 = arith.constant 13 : index
    %c0_146 = arith.constant 0 : index
    %c0_147 = arith.constant 0 : index
    %264 = vector.load %arg5[%c0_144, %c0_145, %c13, %c0_146, %c0_147] : memref<1x4x17x2x128xbf16, #tpu.memory_space<vmem>>, vector<1x1x1x2x128xbf16>
    %265 = vector.shape_cast %264 : vector<1x1x1x2x128xbf16> to vector<2x128xbf16>
    %266 = arith.extf %265 : vector<2x128xbf16> to vector<2x128xf32>
    %267 = arith.maximumf %263, %266 : vector<2x128xf32>
    %c0_148 = arith.constant 0 : index
    %c0_149 = arith.constant 0 : index
    %c14 = arith.constant 14 : index
    %c0_150 = arith.constant 0 : index
    %c0_151 = arith.constant 0 : index
    %268 = vector.load %arg5[%c0_148, %c0_149, %c14, %c0_150, %c0_151] : memref<1x4x17x2x128xbf16, #tpu.memory_space<vmem>>, vector<1x1x1x2x128xbf16>
    %269 = vector.shape_cast %268 : vector<1x1x1x2x128xbf16> to vector<2x128xbf16>
    %270 = arith.extf %269 : vector<2x128xbf16> to vector<2x128xf32>
    %271 = arith.maximumf %267, %270 : vector<2x128xf32>
    %c0_152 = arith.constant 0 : index
    %c0_153 = arith.constant 0 : index
    %c15 = arith.constant 15 : index
    %c0_154 = arith.constant 0 : index
    %c0_155 = arith.constant 0 : index
    %272 = vector.load %arg5[%c0_152, %c0_153, %c15, %c0_154, %c0_155] : memref<1x4x17x2x128xbf16, #tpu.memory_space<vmem>>, vector<1x1x1x2x128xbf16>
    %273 = vector.shape_cast %272 : vector<1x1x1x2x128xbf16> to vector<2x128xbf16>
    %274 = arith.extf %273 : vector<2x128xbf16> to vector<2x128xf32>
    %275 = arith.maximumf %271, %274 : vector<2x128xf32>
    %c0_156 = arith.constant 0 : index
    %c0_157 = arith.constant 0 : index
    %c16 = arith.constant 16 : index
    %c0_158 = arith.constant 0 : index
    %c0_159 = arith.constant 0 : index
    %276 = vector.load %arg5[%c0_156, %c0_157, %c16, %c0_158, %c0_159] : memref<1x4x17x2x128xbf16, #tpu.memory_space<vmem>>, vector<1x1x1x2x128xbf16>
    %277 = vector.shape_cast %276 : vector<1x1x1x2x128xbf16> to vector<2x128xbf16>
    %278 = arith.extf %277 : vector<2x128xbf16> to vector<2x128xf32>
    %279 = arith.maximumf %275, %278 : vector<2x128xf32>
    %cst_160 = arith.constant 0.000000e+00 : f32
    %280 = vector.broadcast %cst_160 : f32 to vector<2x128xf32>
    %cst_161 = arith.constant 0.000000e+00 : f32
    %281 = vector.broadcast %cst_161 : f32 to vector<2x128xf32>
    %c0_162 = arith.constant 0 : index
    %c0_163 = arith.constant 0 : index
    %c0_164 = arith.constant 0 : index
    %c0_165 = arith.constant 0 : index
    %c0_166 = arith.constant 0 : index
    %282 = vector.load %arg5[%c0_162, %c0_163, %c0_164, %c0_165, %c0_166] : memref<1x4x17x2x128xbf16, #tpu.memory_space<vmem>>, vector<1x1x1x2x128xbf16>
    %283 = vector.shape_cast %282 : vector<1x1x1x2x128xbf16> to vector<2x128xbf16>
    %284 = arith.extf %283 : vector<2x128xbf16> to vector<2x128xf32>
    %285 = arith.subf %284, %279 : vector<2x128xf32>
    %286 = math.exp %285 : vector<2x128xf32>
    %287 = arith.addf %280, %286 : vector<2x128xf32>
    %cst_167 = arith.constant 0.000000e+00 : f32
    %288 = vector.broadcast %cst_167 : f32 to vector<2x128xf32>
    %289 = arith.subf %212, %288 : vector<2x128xf32>
    %290 = math.absf %289 : vector<2x128xf32>
    %cst_168 = arith.constant 1.000000e+00 : f32
    %291 = vector.broadcast %cst_168 : f32 to vector<2x128xf32>
    %292 = arith.subf %291, %290 : vector<2x128xf32>
    %cst_169 = arith.constant 0.000000e+00 : f32
    %293 = vector.broadcast %cst_169 : f32 to vector<2x128xf32>
    %294 = arith.maximumf %292, %293 : vector<2x128xf32>
    %295 = arith.mulf %284, %294 : vector<2x128xf32>
    %296 = arith.addf %281, %295 : vector<2x128xf32>
    %c0_170 = arith.constant 0 : index
    %c0_171 = arith.constant 0 : index
    %c1_172 = arith.constant 1 : index
    %c0_173 = arith.constant 0 : index
    %c0_174 = arith.constant 0 : index
    %297 = vector.load %arg5[%c0_170, %c0_171, %c1_172, %c0_173, %c0_174] : memref<1x4x17x2x128xbf16, #tpu.memory_space<vmem>>, vector<1x1x1x2x128xbf16>
    %298 = vector.shape_cast %297 : vector<1x1x1x2x128xbf16> to vector<2x128xbf16>
    %299 = arith.extf %298 : vector<2x128xbf16> to vector<2x128xf32>
    %300 = arith.subf %299, %279 : vector<2x128xf32>
    %301 = math.exp %300 : vector<2x128xf32>
    %302 = arith.addf %287, %301 : vector<2x128xf32>
    %cst_175 = arith.constant 1.000000e+00 : f32
    %303 = vector.broadcast %cst_175 : f32 to vector<2x128xf32>
    %304 = arith.subf %212, %303 : vector<2x128xf32>
    %305 = math.absf %304 : vector<2x128xf32>
    %cst_176 = arith.constant 1.000000e+00 : f32
    %306 = vector.broadcast %cst_176 : f32 to vector<2x128xf32>
    %307 = arith.subf %306, %305 : vector<2x128xf32>
    %cst_177 = arith.constant 0.000000e+00 : f32
    %308 = vector.broadcast %cst_177 : f32 to vector<2x128xf32>
    %309 = arith.maximumf %307, %308 : vector<2x128xf32>
    %310 = arith.mulf %299, %309 : vector<2x128xf32>
    %311 = arith.addf %296, %310 : vector<2x128xf32>
    %c0_178 = arith.constant 0 : index
    %c0_179 = arith.constant 0 : index
    %c2_180 = arith.constant 2 : index
    %c0_181 = arith.constant 0 : index
    %c0_182 = arith.constant 0 : index
    %312 = vector.load %arg5[%c0_178, %c0_179, %c2_180, %c0_181, %c0_182] : memref<1x4x17x2x128xbf16, #tpu.memory_space<vmem>>, vector<1x1x1x2x128xbf16>
    %313 = vector.shape_cast %312 : vector<1x1x1x2x128xbf16> to vector<2x128xbf16>
    %314 = arith.extf %313 : vector<2x128xbf16> to vector<2x128xf32>
    %315 = arith.subf %314, %279 : vector<2x128xf32>
    %316 = math.exp %315 : vector<2x128xf32>
    %317 = arith.addf %302, %316 : vector<2x128xf32>
    %cst_183 = arith.constant 2.000000e+00 : f32
    %318 = vector.broadcast %cst_183 : f32 to vector<2x128xf32>
    %319 = arith.subf %212, %318 : vector<2x128xf32>
    %320 = math.absf %319 : vector<2x128xf32>
    %cst_184 = arith.constant 1.000000e+00 : f32
    %321 = vector.broadcast %cst_184 : f32 to vector<2x128xf32>
    %322 = arith.subf %321, %320 : vector<2x128xf32>
    %cst_185 = arith.constant 0.000000e+00 : f32
    %323 = vector.broadcast %cst_185 : f32 to vector<2x128xf32>
    %324 = arith.maximumf %322, %323 : vector<2x128xf32>
    %325 = arith.mulf %314, %324 : vector<2x128xf32>
    %326 = arith.addf %311, %325 : vector<2x128xf32>
    %c0_186 = arith.constant 0 : index
    %c0_187 = arith.constant 0 : index
    %c3_188 = arith.constant 3 : index
    %c0_189 = arith.constant 0 : index
    %c0_190 = arith.constant 0 : index
    %327 = vector.load %arg5[%c0_186, %c0_187, %c3_188, %c0_189, %c0_190] : memref<1x4x17x2x128xbf16, #tpu.memory_space<vmem>>, vector<1x1x1x2x128xbf16>
    %328 = vector.shape_cast %327 : vector<1x1x1x2x128xbf16> to vector<2x128xbf16>
    %329 = arith.extf %328 : vector<2x128xbf16> to vector<2x128xf32>
    %330 = arith.subf %329, %279 : vector<2x128xf32>
    %331 = math.exp %330 : vector<2x128xf32>
    %332 = arith.addf %317, %331 : vector<2x128xf32>
    %cst_191 = arith.constant 3.000000e+00 : f32
    %333 = vector.broadcast %cst_191 : f32 to vector<2x128xf32>
    %334 = arith.subf %212, %333 : vector<2x128xf32>
    %335 = math.absf %334 : vector<2x128xf32>
    %cst_192 = arith.constant 1.000000e+00 : f32
    %336 = vector.broadcast %cst_192 : f32 to vector<2x128xf32>
    %337 = arith.subf %336, %335 : vector<2x128xf32>
    %cst_193 = arith.constant 0.000000e+00 : f32
    %338 = vector.broadcast %cst_193 : f32 to vector<2x128xf32>
    %339 = arith.maximumf %337, %338 : vector<2x128xf32>
    %340 = arith.mulf %329, %339 : vector<2x128xf32>
    %341 = arith.addf %326, %340 : vector<2x128xf32>
    %c0_194 = arith.constant 0 : index
    %c0_195 = arith.constant 0 : index
    %c4_196 = arith.constant 4 : index
    %c0_197 = arith.constant 0 : index
    %c0_198 = arith.constant 0 : index
    %342 = vector.load %arg5[%c0_194, %c0_195, %c4_196, %c0_197, %c0_198] : memref<1x4x17x2x128xbf16, #tpu.memory_space<vmem>>, vector<1x1x1x2x128xbf16>
    %343 = vector.shape_cast %342 : vector<1x1x1x2x128xbf16> to vector<2x128xbf16>
    %344 = arith.extf %343 : vector<2x128xbf16> to vector<2x128xf32>
    %345 = arith.subf %344, %279 : vector<2x128xf32>
    %346 = math.exp %345 : vector<2x128xf32>
    %347 = arith.addf %332, %346 : vector<2x128xf32>
    %cst_199 = arith.constant 4.000000e+00 : f32
    %348 = vector.broadcast %cst_199 : f32 to vector<2x128xf32>
    %349 = arith.subf %212, %348 : vector<2x128xf32>
    %350 = math.absf %349 : vector<2x128xf32>
    %cst_200 = arith.constant 1.000000e+00 : f32
    %351 = vector.broadcast %cst_200 : f32 to vector<2x128xf32>
    %352 = arith.subf %351, %350 : vector<2x128xf32>
    %cst_201 = arith.constant 0.000000e+00 : f32
    %353 = vector.broadcast %cst_201 : f32 to vector<2x128xf32>
    %354 = arith.maximumf %352, %353 : vector<2x128xf32>
    %355 = arith.mulf %344, %354 : vector<2x128xf32>
    %356 = arith.addf %341, %355 : vector<2x128xf32>
    %c0_202 = arith.constant 0 : index
    %c0_203 = arith.constant 0 : index
    %c5_204 = arith.constant 5 : index
    %c0_205 = arith.constant 0 : index
    %c0_206 = arith.constant 0 : index
    %357 = vector.load %arg5[%c0_202, %c0_203, %c5_204, %c0_205, %c0_206] : memref<1x4x17x2x128xbf16, #tpu.memory_space<vmem>>, vector<1x1x1x2x128xbf16>
    %358 = vector.shape_cast %357 : vector<1x1x1x2x128xbf16> to vector<2x128xbf16>
    %359 = arith.extf %358 : vector<2x128xbf16> to vector<2x128xf32>
    %360 = arith.subf %359, %279 : vector<2x128xf32>
    %361 = math.exp %360 : vector<2x128xf32>
    %362 = arith.addf %347, %361 : vector<2x128xf32>
    %cst_207 = arith.constant 5.000000e+00 : f32
    %363 = vector.broadcast %cst_207 : f32 to vector<2x128xf32>
    %364 = arith.subf %212, %363 : vector<2x128xf32>
    %365 = math.absf %364 : vector<2x128xf32>
    %cst_208 = arith.constant 1.000000e+00 : f32
    %366 = vector.broadcast %cst_208 : f32 to vector<2x128xf32>
    %367 = arith.subf %366, %365 : vector<2x128xf32>
    %cst_209 = arith.constant 0.000000e+00 : f32
    %368 = vector.broadcast %cst_209 : f32 to vector<2x128xf32>
    %369 = arith.maximumf %367, %368 : vector<2x128xf32>
    %370 = arith.mulf %359, %369 : vector<2x128xf32>
    %371 = arith.addf %356, %370 : vector<2x128xf32>
    %c0_210 = arith.constant 0 : index
    %c0_211 = arith.constant 0 : index
    %c6_212 = arith.constant 6 : index
    %c0_213 = arith.constant 0 : index
    %c0_214 = arith.constant 0 : index
    %372 = vector.load %arg5[%c0_210, %c0_211, %c6_212, %c0_213, %c0_214] : memref<1x4x17x2x128xbf16, #tpu.memory_space<vmem>>, vector<1x1x1x2x128xbf16>
    %373 = vector.shape_cast %372 : vector<1x1x1x2x128xbf16> to vector<2x128xbf16>
    %374 = arith.extf %373 : vector<2x128xbf16> to vector<2x128xf32>
    %375 = arith.subf %374, %279 : vector<2x128xf32>
    %376 = math.exp %375 : vector<2x128xf32>
    %377 = arith.addf %362, %376 : vector<2x128xf32>
    %cst_215 = arith.constant 6.000000e+00 : f32
    %378 = vector.broadcast %cst_215 : f32 to vector<2x128xf32>
    %379 = arith.subf %212, %378 : vector<2x128xf32>
    %380 = math.absf %379 : vector<2x128xf32>
    %cst_216 = arith.constant 1.000000e+00 : f32
    %381 = vector.broadcast %cst_216 : f32 to vector<2x128xf32>
    %382 = arith.subf %381, %380 : vector<2x128xf32>
    %cst_217 = arith.constant 0.000000e+00 : f32
    %383 = vector.broadcast %cst_217 : f32 to vector<2x128xf32>
    %384 = arith.maximumf %382, %383 : vector<2x128xf32>
    %385 = arith.mulf %374, %384 : vector<2x128xf32>
    %386 = arith.addf %371, %385 : vector<2x128xf32>
    %c0_218 = arith.constant 0 : index
    %c0_219 = arith.constant 0 : index
    %c7_220 = arith.constant 7 : index
    %c0_221 = arith.constant 0 : index
    %c0_222 = arith.constant 0 : index
    %387 = vector.load %arg5[%c0_218, %c0_219, %c7_220, %c0_221, %c0_222] : memref<1x4x17x2x128xbf16, #tpu.memory_space<vmem>>, vector<1x1x1x2x128xbf16>
    %388 = vector.shape_cast %387 : vector<1x1x1x2x128xbf16> to vector<2x128xbf16>
    %389 = arith.extf %388 : vector<2x128xbf16> to vector<2x128xf32>
    %390 = arith.subf %389, %279 : vector<2x128xf32>
    %391 = math.exp %390 : vector<2x128xf32>
    %392 = arith.addf %377, %391 : vector<2x128xf32>
    %cst_223 = arith.constant 7.000000e+00 : f32
    %393 = vector.broadcast %cst_223 : f32 to vector<2x128xf32>
    %394 = arith.subf %212, %393 : vector<2x128xf32>
    %395 = math.absf %394 : vector<2x128xf32>
    %cst_224 = arith.constant 1.000000e+00 : f32
    %396 = vector.broadcast %cst_224 : f32 to vector<2x128xf32>
    %397 = arith.subf %396, %395 : vector<2x128xf32>
    %cst_225 = arith.constant 0.000000e+00 : f32
    %398 = vector.broadcast %cst_225 : f32 to vector<2x128xf32>
    %399 = arith.maximumf %397, %398 : vector<2x128xf32>
    %400 = arith.mulf %389, %399 : vector<2x128xf32>
    %401 = arith.addf %386, %400 : vector<2x128xf32>
    %c0_226 = arith.constant 0 : index
    %c0_227 = arith.constant 0 : index
    %c8_228 = arith.constant 8 : index
    %c0_229 = arith.constant 0 : index
    %c0_230 = arith.constant 0 : index
    %402 = vector.load %arg5[%c0_226, %c0_227, %c8_228, %c0_229, %c0_230] : memref<1x4x17x2x128xbf16, #tpu.memory_space<vmem>>, vector<1x1x1x2x128xbf16>
    %403 = vector.shape_cast %402 : vector<1x1x1x2x128xbf16> to vector<2x128xbf16>
    %404 = arith.extf %403 : vector<2x128xbf16> to vector<2x128xf32>
    %405 = arith.subf %404, %279 : vector<2x128xf32>
    %406 = math.exp %405 : vector<2x128xf32>
    %407 = arith.addf %392, %406 : vector<2x128xf32>
    %cst_231 = arith.constant 8.000000e+00 : f32
    %408 = vector.broadcast %cst_231 : f32 to vector<2x128xf32>
    %409 = arith.subf %212, %408 : vector<2x128xf32>
    %410 = math.absf %409 : vector<2x128xf32>
    %cst_232 = arith.constant 1.000000e+00 : f32
    %411 = vector.broadcast %cst_232 : f32 to vector<2x128xf32>
    %412 = arith.subf %411, %410 : vector<2x128xf32>
    %cst_233 = arith.constant 0.000000e+00 : f32
    %413 = vector.broadcast %cst_233 : f32 to vector<2x128xf32>
    %414 = arith.maximumf %412, %413 : vector<2x128xf32>
    %415 = arith.mulf %404, %414 : vector<2x128xf32>
    %416 = arith.addf %401, %415 : vector<2x128xf32>
    %c0_234 = arith.constant 0 : index
    %c0_235 = arith.constant 0 : index
    %c9_236 = arith.constant 9 : index
    %c0_237 = arith.constant 0 : index
    %c0_238 = arith.constant 0 : index
    %417 = vector.load %arg5[%c0_234, %c0_235, %c9_236, %c0_237, %c0_238] : memref<1x4x17x2x128xbf16, #tpu.memory_space<vmem>>, vector<1x1x1x2x128xbf16>
    %418 = vector.shape_cast %417 : vector<1x1x1x2x128xbf16> to vector<2x128xbf16>
    %419 = arith.extf %418 : vector<2x128xbf16> to vector<2x128xf32>
    %420 = arith.subf %419, %279 : vector<2x128xf32>
    %421 = math.exp %420 : vector<2x128xf32>
    %422 = arith.addf %407, %421 : vector<2x128xf32>
    %cst_239 = arith.constant 9.000000e+00 : f32
    %423 = vector.broadcast %cst_239 : f32 to vector<2x128xf32>
    %424 = arith.subf %212, %423 : vector<2x128xf32>
    %425 = math.absf %424 : vector<2x128xf32>
    %cst_240 = arith.constant 1.000000e+00 : f32
    %426 = vector.broadcast %cst_240 : f32 to vector<2x128xf32>
    %427 = arith.subf %426, %425 : vector<2x128xf32>
    %cst_241 = arith.constant 0.000000e+00 : f32
    %428 = vector.broadcast %cst_241 : f32 to vector<2x128xf32>
    %429 = arith.maximumf %427, %428 : vector<2x128xf32>
    %430 = arith.mulf %419, %429 : vector<2x128xf32>
    %431 = arith.addf %416, %430 : vector<2x128xf32>
    %c0_242 = arith.constant 0 : index
    %c0_243 = arith.constant 0 : index
    %c10_244 = arith.constant 10 : index
    %c0_245 = arith.constant 0 : index
    %c0_246 = arith.constant 0 : index
    %432 = vector.load %arg5[%c0_242, %c0_243, %c10_244, %c0_245, %c0_246] : memref<1x4x17x2x128xbf16, #tpu.memory_space<vmem>>, vector<1x1x1x2x128xbf16>
    %433 = vector.shape_cast %432 : vector<1x1x1x2x128xbf16> to vector<2x128xbf16>
    %434 = arith.extf %433 : vector<2x128xbf16> to vector<2x128xf32>
    %435 = arith.subf %434, %279 : vector<2x128xf32>
    %436 = math.exp %435 : vector<2x128xf32>
    %437 = arith.addf %422, %436 : vector<2x128xf32>
    %cst_247 = arith.constant 1.000000e+01 : f32
    %438 = vector.broadcast %cst_247 : f32 to vector<2x128xf32>
    %439 = arith.subf %212, %438 : vector<2x128xf32>
    %440 = math.absf %439 : vector<2x128xf32>
    %cst_248 = arith.constant 1.000000e+00 : f32
    %441 = vector.broadcast %cst_248 : f32 to vector<2x128xf32>
    %442 = arith.subf %441, %440 : vector<2x128xf32>
    %cst_249 = arith.constant 0.000000e+00 : f32
    %443 = vector.broadcast %cst_249 : f32 to vector<2x128xf32>
    %444 = arith.maximumf %442, %443 : vector<2x128xf32>
    %445 = arith.mulf %434, %444 : vector<2x128xf32>
    %446 = arith.addf %431, %445 : vector<2x128xf32>
    %c0_250 = arith.constant 0 : index
    %c0_251 = arith.constant 0 : index
    %c11_252 = arith.constant 11 : index
    %c0_253 = arith.constant 0 : index
    %c0_254 = arith.constant 0 : index
    %447 = vector.load %arg5[%c0_250, %c0_251, %c11_252, %c0_253, %c0_254] : memref<1x4x17x2x128xbf16, #tpu.memory_space<vmem>>, vector<1x1x1x2x128xbf16>
    %448 = vector.shape_cast %447 : vector<1x1x1x2x128xbf16> to vector<2x128xbf16>
    %449 = arith.extf %448 : vector<2x128xbf16> to vector<2x128xf32>
    %450 = arith.subf %449, %279 : vector<2x128xf32>
    %451 = math.exp %450 : vector<2x128xf32>
    %452 = arith.addf %437, %451 : vector<2x128xf32>
    %cst_255 = arith.constant 1.100000e+01 : f32
    %453 = vector.broadcast %cst_255 : f32 to vector<2x128xf32>
    %454 = arith.subf %212, %453 : vector<2x128xf32>
    %455 = math.absf %454 : vector<2x128xf32>
    %cst_256 = arith.constant 1.000000e+00 : f32
    %456 = vector.broadcast %cst_256 : f32 to vector<2x128xf32>
    %457 = arith.subf %456, %455 : vector<2x128xf32>
    %cst_257 = arith.constant 0.000000e+00 : f32
    %458 = vector.broadcast %cst_257 : f32 to vector<2x128xf32>
    %459 = arith.maximumf %457, %458 : vector<2x128xf32>
    %460 = arith.mulf %449, %459 : vector<2x128xf32>
    %461 = arith.addf %446, %460 : vector<2x128xf32>
    %c0_258 = arith.constant 0 : index
    %c0_259 = arith.constant 0 : index
    %c12_260 = arith.constant 12 : index
    %c0_261 = arith.constant 0 : index
    %c0_262 = arith.constant 0 : index
    %462 = vector.load %arg5[%c0_258, %c0_259, %c12_260, %c0_261, %c0_262] : memref<1x4x17x2x128xbf16, #tpu.memory_space<vmem>>, vector<1x1x1x2x128xbf16>
    %463 = vector.shape_cast %462 : vector<1x1x1x2x128xbf16> to vector<2x128xbf16>
    %464 = arith.extf %463 : vector<2x128xbf16> to vector<2x128xf32>
    %465 = arith.subf %464, %279 : vector<2x128xf32>
    %466 = math.exp %465 : vector<2x128xf32>
    %467 = arith.addf %452, %466 : vector<2x128xf32>
    %cst_263 = arith.constant 1.200000e+01 : f32
    %468 = vector.broadcast %cst_263 : f32 to vector<2x128xf32>
    %469 = arith.subf %212, %468 : vector<2x128xf32>
    %470 = math.absf %469 : vector<2x128xf32>
    %cst_264 = arith.constant 1.000000e+00 : f32
    %471 = vector.broadcast %cst_264 : f32 to vector<2x128xf32>
    %472 = arith.subf %471, %470 : vector<2x128xf32>
    %cst_265 = arith.constant 0.000000e+00 : f32
    %473 = vector.broadcast %cst_265 : f32 to vector<2x128xf32>
    %474 = arith.maximumf %472, %473 : vector<2x128xf32>
    %475 = arith.mulf %464, %474 : vector<2x128xf32>
    %476 = arith.addf %461, %475 : vector<2x128xf32>
    %c0_266 = arith.constant 0 : index
    %c0_267 = arith.constant 0 : index
    %c13_268 = arith.constant 13 : index
    %c0_269 = arith.constant 0 : index
    %c0_270 = arith.constant 0 : index
    %477 = vector.load %arg5[%c0_266, %c0_267, %c13_268, %c0_269, %c0_270] : memref<1x4x17x2x128xbf16, #tpu.memory_space<vmem>>, vector<1x1x1x2x128xbf16>
    %478 = vector.shape_cast %477 : vector<1x1x1x2x128xbf16> to vector<2x128xbf16>
    %479 = arith.extf %478 : vector<2x128xbf16> to vector<2x128xf32>
    %480 = arith.subf %479, %279 : vector<2x128xf32>
    %481 = math.exp %480 : vector<2x128xf32>
    %482 = arith.addf %467, %481 : vector<2x128xf32>
    %cst_271 = arith.constant 1.300000e+01 : f32
    %483 = vector.broadcast %cst_271 : f32 to vector<2x128xf32>
    %484 = arith.subf %212, %483 : vector<2x128xf32>
    %485 = math.absf %484 : vector<2x128xf32>
    %cst_272 = arith.constant 1.000000e+00 : f32
    %486 = vector.broadcast %cst_272 : f32 to vector<2x128xf32>
    %487 = arith.subf %486, %485 : vector<2x128xf32>
    %cst_273 = arith.constant 0.000000e+00 : f32
    %488 = vector.broadcast %cst_273 : f32 to vector<2x128xf32>
    %489 = arith.maximumf %487, %488 : vector<2x128xf32>
    %490 = arith.mulf %479, %489 : vector<2x128xf32>
    %491 = arith.addf %476, %490 : vector<2x128xf32>
    %c0_274 = arith.constant 0 : index
    %c0_275 = arith.constant 0 : index
    %c14_276 = arith.constant 14 : index
    %c0_277 = arith.constant 0 : index
    %c0_278 = arith.constant 0 : index
    %492 = vector.load %arg5[%c0_274, %c0_275, %c14_276, %c0_277, %c0_278] : memref<1x4x17x2x128xbf16, #tpu.memory_space<vmem>>, vector<1x1x1x2x128xbf16>
    %493 = vector.shape_cast %492 : vector<1x1x1x2x128xbf16> to vector<2x128xbf16>
    %494 = arith.extf %493 : vector<2x128xbf16> to vector<2x128xf32>
    %495 = arith.subf %494, %279 : vector<2x128xf32>
    %496 = math.exp %495 : vector<2x128xf32>
    %497 = arith.addf %482, %496 : vector<2x128xf32>
    %cst_279 = arith.constant 1.400000e+01 : f32
    %498 = vector.broadcast %cst_279 : f32 to vector<2x128xf32>
    %499 = arith.subf %212, %498 : vector<2x128xf32>
    %500 = math.absf %499 : vector<2x128xf32>
    %cst_280 = arith.constant 1.000000e+00 : f32
    %501 = vector.broadcast %cst_280 : f32 to vector<2x128xf32>
    %502 = arith.subf %501, %500 : vector<2x128xf32>
    %cst_281 = arith.constant 0.000000e+00 : f32
    %503 = vector.broadcast %cst_281 : f32 to vector<2x128xf32>
    %504 = arith.maximumf %502, %503 : vector<2x128xf32>
    %505 = arith.mulf %494, %504 : vector<2x128xf32>
    %506 = arith.addf %491, %505 : vector<2x128xf32>
    %c0_282 = arith.constant 0 : index
    %c0_283 = arith.constant 0 : index
    %c15_284 = arith.constant 15 : index
    %c0_285 = arith.constant 0 : index
    %c0_286 = arith.constant 0 : index
    %507 = vector.load %arg5[%c0_282, %c0_283, %c15_284, %c0_285, %c0_286] : memref<1x4x17x2x128xbf16, #tpu.memory_space<vmem>>, vector<1x1x1x2x128xbf16>
    %508 = vector.shape_cast %507 : vector<1x1x1x2x128xbf16> to vector<2x128xbf16>
    %509 = arith.extf %508 : vector<2x128xbf16> to vector<2x128xf32>
    %510 = arith.subf %509, %279 : vector<2x128xf32>
    %511 = math.exp %510 : vector<2x128xf32>
    %512 = arith.addf %497, %511 : vector<2x128xf32>
    %cst_287 = arith.constant 1.500000e+01 : f32
    %513 = vector.broadcast %cst_287 : f32 to vector<2x128xf32>
    %514 = arith.subf %212, %513 : vector<2x128xf32>
    %515 = math.absf %514 : vector<2x128xf32>
    %cst_288 = arith.constant 1.000000e+00 : f32
    %516 = vector.broadcast %cst_288 : f32 to vector<2x128xf32>
    %517 = arith.subf %516, %515 : vector<2x128xf32>
    %cst_289 = arith.constant 0.000000e+00 : f32
    %518 = vector.broadcast %cst_289 : f32 to vector<2x128xf32>
    %519 = arith.maximumf %517, %518 : vector<2x128xf32>
    %520 = arith.mulf %509, %519 : vector<2x128xf32>
    %521 = arith.addf %506, %520 : vector<2x128xf32>
    %c0_290 = arith.constant 0 : index
    %c0_291 = arith.constant 0 : index
    %c16_292 = arith.constant 16 : index
    %c0_293 = arith.constant 0 : index
    %c0_294 = arith.constant 0 : index
    %522 = vector.load %arg5[%c0_290, %c0_291, %c16_292, %c0_293, %c0_294] : memref<1x4x17x2x128xbf16, #tpu.memory_space<vmem>>, vector<1x1x1x2x128xbf16>
    %523 = vector.shape_cast %522 : vector<1x1x1x2x128xbf16> to vector<2x128xbf16>
    %524 = arith.extf %523 : vector<2x128xbf16> to vector<2x128xf32>
    %525 = arith.subf %524, %279 : vector<2x128xf32>
    %526 = math.exp %525 : vector<2x128xf32>
    %527 = arith.addf %512, %526 : vector<2x128xf32>
    %cst_295 = arith.constant 1.600000e+01 : f32
    %528 = vector.broadcast %cst_295 : f32 to vector<2x128xf32>
    %529 = arith.subf %212, %528 : vector<2x128xf32>
    %530 = math.absf %529 : vector<2x128xf32>
    %cst_296 = arith.constant 1.000000e+00 : f32
    %531 = vector.broadcast %cst_296 : f32 to vector<2x128xf32>
    %532 = arith.subf %531, %530 : vector<2x128xf32>
    %cst_297 = arith.constant 0.000000e+00 : f32
    %533 = vector.broadcast %cst_297 : f32 to vector<2x128xf32>
    %534 = arith.maximumf %532, %533 : vector<2x128xf32>
    %535 = arith.mulf %524, %534 : vector<2x128xf32>
    %536 = arith.addf %521, %535 : vector<2x128xf32>
    %537 = math.log %527 : vector<2x128xf32>
    %538 = arith.addf %279, %537 : vector<2x128xf32>
    %539 = arith.subf %538, %536 : vector<2x128xf32>
    %540 = arith.addf %208, %539 : vector<2x128xf32>
    %cst_298 = arith.constant 0.000000e+00 : f32
    %cst_299 = arith.constant 1.599000e+01 : f32
    %541 = vector.broadcast %cst_298 : f32 to vector<2x128xf32>
    %542 = arith.maximumf %541, %205 : vector<2x128xf32>
    %543 = vector.broadcast %cst_299 : f32 to vector<2x128xf32>
    %544 = arith.minimumf %543, %542 : vector<2x128xf32>
    %c0_300 = arith.constant 0 : index
    %c1_301 = arith.constant 1 : index
    %c0_302 = arith.constant 0 : index
    %c0_303 = arith.constant 0 : index
    %c0_304 = arith.constant 0 : index
    %545 = vector.load %arg5[%c0_300, %c1_301, %c0_302, %c0_303, %c0_304] : memref<1x4x17x2x128xbf16, #tpu.memory_space<vmem>>, vector<1x1x1x2x128xbf16>
    %546 = vector.shape_cast %545 : vector<1x1x1x2x128xbf16> to vector<2x128xbf16>
    %547 = arith.extf %546 : vector<2x128xbf16> to vector<2x128xf32>
    %c0_305 = arith.constant 0 : index
    %c1_306 = arith.constant 1 : index
    %c1_307 = arith.constant 1 : index
    %c0_308 = arith.constant 0 : index
    %c0_309 = arith.constant 0 : index
    %548 = vector.load %arg5[%c0_305, %c1_306, %c1_307, %c0_308, %c0_309] : memref<1x4x17x2x128xbf16, #tpu.memory_space<vmem>>, vector<1x1x1x2x128xbf16>
    %549 = vector.shape_cast %548 : vector<1x1x1x2x128xbf16> to vector<2x128xbf16>
    %550 = arith.extf %549 : vector<2x128xbf16> to vector<2x128xf32>
    %551 = arith.maximumf %547, %550 : vector<2x128xf32>
    %c0_310 = arith.constant 0 : index
    %c1_311 = arith.constant 1 : index
    %c2_312 = arith.constant 2 : index
    %c0_313 = arith.constant 0 : index
    %c0_314 = arith.constant 0 : index
    %552 = vector.load %arg5[%c0_310, %c1_311, %c2_312, %c0_313, %c0_314] : memref<1x4x17x2x128xbf16, #tpu.memory_space<vmem>>, vector<1x1x1x2x128xbf16>
    %553 = vector.shape_cast %552 : vector<1x1x1x2x128xbf16> to vector<2x128xbf16>
    %554 = arith.extf %553 : vector<2x128xbf16> to vector<2x128xf32>
    %555 = arith.maximumf %551, %554 : vector<2x128xf32>
    %c0_315 = arith.constant 0 : index
    %c1_316 = arith.constant 1 : index
    %c3_317 = arith.constant 3 : index
    %c0_318 = arith.constant 0 : index
    %c0_319 = arith.constant 0 : index
    %556 = vector.load %arg5[%c0_315, %c1_316, %c3_317, %c0_318, %c0_319] : memref<1x4x17x2x128xbf16, #tpu.memory_space<vmem>>, vector<1x1x1x2x128xbf16>
    %557 = vector.shape_cast %556 : vector<1x1x1x2x128xbf16> to vector<2x128xbf16>
    %558 = arith.extf %557 : vector<2x128xbf16> to vector<2x128xf32>
    %559 = arith.maximumf %555, %558 : vector<2x128xf32>
    %c0_320 = arith.constant 0 : index
    %c1_321 = arith.constant 1 : index
    %c4_322 = arith.constant 4 : index
    %c0_323 = arith.constant 0 : index
    %c0_324 = arith.constant 0 : index
    %560 = vector.load %arg5[%c0_320, %c1_321, %c4_322, %c0_323, %c0_324] : memref<1x4x17x2x128xbf16, #tpu.memory_space<vmem>>, vector<1x1x1x2x128xbf16>
    %561 = vector.shape_cast %560 : vector<1x1x1x2x128xbf16> to vector<2x128xbf16>
    %562 = arith.extf %561 : vector<2x128xbf16> to vector<2x128xf32>
    %563 = arith.maximumf %559, %562 : vector<2x128xf32>
    %c0_325 = arith.constant 0 : index
    %c1_326 = arith.constant 1 : index
    %c5_327 = arith.constant 5 : index
    %c0_328 = arith.constant 0 : index
    %c0_329 = arith.constant 0 : index
    %564 = vector.load %arg5[%c0_325, %c1_326, %c5_327, %c0_328, %c0_329] : memref<1x4x17x2x128xbf16, #tpu.memory_space<vmem>>, vector<1x1x1x2x128xbf16>
    %565 = vector.shape_cast %564 : vector<1x1x1x2x128xbf16> to vector<2x128xbf16>
    %566 = arith.extf %565 : vector<2x128xbf16> to vector<2x128xf32>
    %567 = arith.maximumf %563, %566 : vector<2x128xf32>
    %c0_330 = arith.constant 0 : index
    %c1_331 = arith.constant 1 : index
    %c6_332 = arith.constant 6 : index
    %c0_333 = arith.constant 0 : index
    %c0_334 = arith.constant 0 : index
    %568 = vector.load %arg5[%c0_330, %c1_331, %c6_332, %c0_333, %c0_334] : memref<1x4x17x2x128xbf16, #tpu.memory_space<vmem>>, vector<1x1x1x2x128xbf16>
    %569 = vector.shape_cast %568 : vector<1x1x1x2x128xbf16> to vector<2x128xbf16>
    %570 = arith.extf %569 : vector<2x128xbf16> to vector<2x128xf32>
    %571 = arith.maximumf %567, %570 : vector<2x128xf32>
    %c0_335 = arith.constant 0 : index
    %c1_336 = arith.constant 1 : index
    %c7_337 = arith.constant 7 : index
    %c0_338 = arith.constant 0 : index
    %c0_339 = arith.constant 0 : index
    %572 = vector.load %arg5[%c0_335, %c1_336, %c7_337, %c0_338, %c0_339] : memref<1x4x17x2x128xbf16, #tpu.memory_space<vmem>>, vector<1x1x1x2x128xbf16>
    %573 = vector.shape_cast %572 : vector<1x1x1x2x128xbf16> to vector<2x128xbf16>
    %574 = arith.extf %573 : vector<2x128xbf16> to vector<2x128xf32>
    %575 = arith.maximumf %571, %574 : vector<2x128xf32>
    %c0_340 = arith.constant 0 : index
    %c1_341 = arith.constant 1 : index
    %c8_342 = arith.constant 8 : index
    %c0_343 = arith.constant 0 : index
    %c0_344 = arith.constant 0 : index
    %576 = vector.load %arg5[%c0_340, %c1_341, %c8_342, %c0_343, %c0_344] : memref<1x4x17x2x128xbf16, #tpu.memory_space<vmem>>, vector<1x1x1x2x128xbf16>
    %577 = vector.shape_cast %576 : vector<1x1x1x2x128xbf16> to vector<2x128xbf16>
    %578 = arith.extf %577 : vector<2x128xbf16> to vector<2x128xf32>
    %579 = arith.maximumf %575, %578 : vector<2x128xf32>
    %c0_345 = arith.constant 0 : index
    %c1_346 = arith.constant 1 : index
    %c9_347 = arith.constant 9 : index
    %c0_348 = arith.constant 0 : index
    %c0_349 = arith.constant 0 : index
    %580 = vector.load %arg5[%c0_345, %c1_346, %c9_347, %c0_348, %c0_349] : memref<1x4x17x2x128xbf16, #tpu.memory_space<vmem>>, vector<1x1x1x2x128xbf16>
    %581 = vector.shape_cast %580 : vector<1x1x1x2x128xbf16> to vector<2x128xbf16>
    %582 = arith.extf %581 : vector<2x128xbf16> to vector<2x128xf32>
    %583 = arith.maximumf %579, %582 : vector<2x128xf32>
    %c0_350 = arith.constant 0 : index
    %c1_351 = arith.constant 1 : index
    %c10_352 = arith.constant 10 : index
    %c0_353 = arith.constant 0 : index
    %c0_354 = arith.constant 0 : index
    %584 = vector.load %arg5[%c0_350, %c1_351, %c10_352, %c0_353, %c0_354] : memref<1x4x17x2x128xbf16, #tpu.memory_space<vmem>>, vector<1x1x1x2x128xbf16>
    %585 = vector.shape_cast %584 : vector<1x1x1x2x128xbf16> to vector<2x128xbf16>
    %586 = arith.extf %585 : vector<2x128xbf16> to vector<2x128xf32>
    %587 = arith.maximumf %583, %586 : vector<2x128xf32>
    %c0_355 = arith.constant 0 : index
    %c1_356 = arith.constant 1 : index
    %c11_357 = arith.constant 11 : index
    %c0_358 = arith.constant 0 : index
    %c0_359 = arith.constant 0 : index
    %588 = vector.load %arg5[%c0_355, %c1_356, %c11_357, %c0_358, %c0_359] : memref<1x4x17x2x128xbf16, #tpu.memory_space<vmem>>, vector<1x1x1x2x128xbf16>
    %589 = vector.shape_cast %588 : vector<1x1x1x2x128xbf16> to vector<2x128xbf16>
    %590 = arith.extf %589 : vector<2x128xbf16> to vector<2x128xf32>
    %591 = arith.maximumf %587, %590 : vector<2x128xf32>
    %c0_360 = arith.constant 0 : index
    %c1_361 = arith.constant 1 : index
    %c12_362 = arith.constant 12 : index
    %c0_363 = arith.constant 0 : index
    %c0_364 = arith.constant 0 : index
    %592 = vector.load %arg5[%c0_360, %c1_361, %c12_362, %c0_363, %c0_364] : memref<1x4x17x2x128xbf16, #tpu.memory_space<vmem>>, vector<1x1x1x2x128xbf16>
    %593 = vector.shape_cast %592 : vector<1x1x1x2x128xbf16> to vector<2x128xbf16>
    %594 = arith.extf %593 : vector<2x128xbf16> to vector<2x128xf32>
    %595 = arith.maximumf %591, %594 : vector<2x128xf32>
    %c0_365 = arith.constant 0 : index
    %c1_366 = arith.constant 1 : index
    %c13_367 = arith.constant 13 : index
    %c0_368 = arith.constant 0 : index
    %c0_369 = arith.constant 0 : index
    %596 = vector.load %arg5[%c0_365, %c1_366, %c13_367, %c0_368, %c0_369] : memref<1x4x17x2x128xbf16, #tpu.memory_space<vmem>>, vector<1x1x1x2x128xbf16>
    %597 = vector.shape_cast %596 : vector<1x1x1x2x128xbf16> to vector<2x128xbf16>
    %598 = arith.extf %597 : vector<2x128xbf16> to vector<2x128xf32>
    %599 = arith.maximumf %595, %598 : vector<2x128xf32>
    %c0_370 = arith.constant 0 : index
    %c1_371 = arith.constant 1 : index
    %c14_372 = arith.constant 14 : index
    %c0_373 = arith.constant 0 : index
    %c0_374 = arith.constant 0 : index
    %600 = vector.load %arg5[%c0_370, %c1_371, %c14_372, %c0_373, %c0_374] : memref<1x4x17x2x128xbf16, #tpu.memory_space<vmem>>, vector<1x1x1x2x128xbf16>
    %601 = vector.shape_cast %600 : vector<1x1x1x2x128xbf16> to vector<2x128xbf16>
    %602 = arith.extf %601 : vector<2x128xbf16> to vector<2x128xf32>
    %603 = arith.maximumf %599, %602 : vector<2x128xf32>
    %c0_375 = arith.constant 0 : index
    %c1_376 = arith.constant 1 : index
    %c15_377 = arith.constant 15 : index
    %c0_378 = arith.constant 0 : index
    %c0_379 = arith.constant 0 : index
    %604 = vector.load %arg5[%c0_375, %c1_376, %c15_377, %c0_378, %c0_379] : memref<1x4x17x2x128xbf16, #tpu.memory_space<vmem>>, vector<1x1x1x2x128xbf16>
    %605 = vector.shape_cast %604 : vector<1x1x1x2x128xbf16> to vector<2x128xbf16>
    %606 = arith.extf %605 : vector<2x128xbf16> to vector<2x128xf32>
    %607 = arith.maximumf %603, %606 : vector<2x128xf32>
    %c0_380 = arith.constant 0 : index
    %c1_381 = arith.constant 1 : index
    %c16_382 = arith.constant 16 : index
    %c0_383 = arith.constant 0 : index
    %c0_384 = arith.constant 0 : index
    %608 = vector.load %arg5[%c0_380, %c1_381, %c16_382, %c0_383, %c0_384] : memref<1x4x17x2x128xbf16, #tpu.memory_space<vmem>>, vector<1x1x1x2x128xbf16>
    %609 = vector.shape_cast %608 : vector<1x1x1x2x128xbf16> to vector<2x128xbf16>
    %610 = arith.extf %609 : vector<2x128xbf16> to vector<2x128xf32>
    %611 = arith.maximumf %607, %610 : vector<2x128xf32>
    %cst_385 = arith.constant 0.000000e+00 : f32
    %612 = vector.broadcast %cst_385 : f32 to vector<2x128xf32>
    %cst_386 = arith.constant 0.000000e+00 : f32
    %613 = vector.broadcast %cst_386 : f32 to vector<2x128xf32>
    %c0_387 = arith.constant 0 : index
    %c1_388 = arith.constant 1 : index
    %c0_389 = arith.constant 0 : index
    %c0_390 = arith.constant 0 : index
    %c0_391 = arith.constant 0 : index
    %614 = vector.load %arg5[%c0_387, %c1_388, %c0_389, %c0_390, %c0_391] : memref<1x4x17x2x128xbf16, #tpu.memory_space<vmem>>, vector<1x1x1x2x128xbf16>
    %615 = vector.shape_cast %614 : vector<1x1x1x2x128xbf16> to vector<2x128xbf16>
    %616 = arith.extf %615 : vector<2x128xbf16> to vector<2x128xf32>
    %617 = arith.subf %616, %611 : vector<2x128xf32>
    %618 = math.exp %617 : vector<2x128xf32>
    %619 = arith.addf %612, %618 : vector<2x128xf32>
    %cst_392 = arith.constant 0.000000e+00 : f32
    %620 = vector.broadcast %cst_392 : f32 to vector<2x128xf32>
    %621 = arith.subf %544, %620 : vector<2x128xf32>
    %622 = math.absf %621 : vector<2x128xf32>
    %cst_393 = arith.constant 1.000000e+00 : f32
    %623 = vector.broadcast %cst_393 : f32 to vector<2x128xf32>
    %624 = arith.subf %623, %622 : vector<2x128xf32>
    %cst_394 = arith.constant 0.000000e+00 : f32
    %625 = vector.broadcast %cst_394 : f32 to vector<2x128xf32>
    %626 = arith.maximumf %624, %625 : vector<2x128xf32>
    %627 = arith.mulf %616, %626 : vector<2x128xf32>
    %628 = arith.addf %613, %627 : vector<2x128xf32>
    %c0_395 = arith.constant 0 : index
    %c1_396 = arith.constant 1 : index
    %c1_397 = arith.constant 1 : index
    %c0_398 = arith.constant 0 : index
    %c0_399 = arith.constant 0 : index
    %629 = vector.load %arg5[%c0_395, %c1_396, %c1_397, %c0_398, %c0_399] : memref<1x4x17x2x128xbf16, #tpu.memory_space<vmem>>, vector<1x1x1x2x128xbf16>
    %630 = vector.shape_cast %629 : vector<1x1x1x2x128xbf16> to vector<2x128xbf16>
    %631 = arith.extf %630 : vector<2x128xbf16> to vector<2x128xf32>
    %632 = arith.subf %631, %611 : vector<2x128xf32>
    %633 = math.exp %632 : vector<2x128xf32>
    %634 = arith.addf %619, %633 : vector<2x128xf32>
    %cst_400 = arith.constant 1.000000e+00 : f32
    %635 = vector.broadcast %cst_400 : f32 to vector<2x128xf32>
    %636 = arith.subf %544, %635 : vector<2x128xf32>
    %637 = math.absf %636 : vector<2x128xf32>
    %cst_401 = arith.constant 1.000000e+00 : f32
    %638 = vector.broadcast %cst_401 : f32 to vector<2x128xf32>
    %639 = arith.subf %638, %637 : vector<2x128xf32>
    %cst_402 = arith.constant 0.000000e+00 : f32
    %640 = vector.broadcast %cst_402 : f32 to vector<2x128xf32>
    %641 = arith.maximumf %639, %640 : vector<2x128xf32>
    %642 = arith.mulf %631, %641 : vector<2x128xf32>
    %643 = arith.addf %628, %642 : vector<2x128xf32>
    %c0_403 = arith.constant 0 : index
    %c1_404 = arith.constant 1 : index
    %c2_405 = arith.constant 2 : index
    %c0_406 = arith.constant 0 : index
    %c0_407 = arith.constant 0 : index
    %644 = vector.load %arg5[%c0_403, %c1_404, %c2_405, %c0_406, %c0_407] : memref<1x4x17x2x128xbf16, #tpu.memory_space<vmem>>, vector<1x1x1x2x128xbf16>
    %645 = vector.shape_cast %644 : vector<1x1x1x2x128xbf16> to vector<2x128xbf16>
    %646 = arith.extf %645 : vector<2x128xbf16> to vector<2x128xf32>
    %647 = arith.subf %646, %611 : vector<2x128xf32>
    %648 = math.exp %647 : vector<2x128xf32>
    %649 = arith.addf %634, %648 : vector<2x128xf32>
    %cst_408 = arith.constant 2.000000e+00 : f32
    %650 = vector.broadcast %cst_408 : f32 to vector<2x128xf32>
    %651 = arith.subf %544, %650 : vector<2x128xf32>
    %652 = math.absf %651 : vector<2x128xf32>
    %cst_409 = arith.constant 1.000000e+00 : f32
    %653 = vector.broadcast %cst_409 : f32 to vector<2x128xf32>
    %654 = arith.subf %653, %652 : vector<2x128xf32>
    %cst_410 = arith.constant 0.000000e+00 : f32
    %655 = vector.broadcast %cst_410 : f32 to vector<2x128xf32>
    %656 = arith.maximumf %654, %655 : vector<2x128xf32>
    %657 = arith.mulf %646, %656 : vector<2x128xf32>
    %658 = arith.addf %643, %657 : vector<2x128xf32>
    %c0_411 = arith.constant 0 : index
    %c1_412 = arith.constant 1 : index
    %c3_413 = arith.constant 3 : index
    %c0_414 = arith.constant 0 : index
    %c0_415 = arith.constant 0 : index
    %659 = vector.load %arg5[%c0_411, %c1_412, %c3_413, %c0_414, %c0_415] : memref<1x4x17x2x128xbf16, #tpu.memory_space<vmem>>, vector<1x1x1x2x128xbf16>
    %660 = vector.shape_cast %659 : vector<1x1x1x2x128xbf16> to vector<2x128xbf16>
    %661 = arith.extf %660 : vector<2x128xbf16> to vector<2x128xf32>
    %662 = arith.subf %661, %611 : vector<2x128xf32>
    %663 = math.exp %662 : vector<2x128xf32>
    %664 = arith.addf %649, %663 : vector<2x128xf32>
    %cst_416 = arith.constant 3.000000e+00 : f32
    %665 = vector.broadcast %cst_416 : f32 to vector<2x128xf32>
    %666 = arith.subf %544, %665 : vector<2x128xf32>
    %667 = math.absf %666 : vector<2x128xf32>
    %cst_417 = arith.constant 1.000000e+00 : f32
    %668 = vector.broadcast %cst_417 : f32 to vector<2x128xf32>
    %669 = arith.subf %668, %667 : vector<2x128xf32>
    %cst_418 = arith.constant 0.000000e+00 : f32
    %670 = vector.broadcast %cst_418 : f32 to vector<2x128xf32>
    %671 = arith.maximumf %669, %670 : vector<2x128xf32>
    %672 = arith.mulf %661, %671 : vector<2x128xf32>
    %673 = arith.addf %658, %672 : vector<2x128xf32>
    %c0_419 = arith.constant 0 : index
    %c1_420 = arith.constant 1 : index
    %c4_421 = arith.constant 4 : index
    %c0_422 = arith.constant 0 : index
    %c0_423 = arith.constant 0 : index
    %674 = vector.load %arg5[%c0_419, %c1_420, %c4_421, %c0_422, %c0_423] : memref<1x4x17x2x128xbf16, #tpu.memory_space<vmem>>, vector<1x1x1x2x128xbf16>
    %675 = vector.shape_cast %674 : vector<1x1x1x2x128xbf16> to vector<2x128xbf16>
    %676 = arith.extf %675 : vector<2x128xbf16> to vector<2x128xf32>
    %677 = arith.subf %676, %611 : vector<2x128xf32>
    %678 = math.exp %677 : vector<2x128xf32>
    %679 = arith.addf %664, %678 : vector<2x128xf32>
    %cst_424 = arith.constant 4.000000e+00 : f32
    %680 = vector.broadcast %cst_424 : f32 to vector<2x128xf32>
    %681 = arith.subf %544, %680 : vector<2x128xf32>
    %682 = math.absf %681 : vector<2x128xf32>
    %cst_425 = arith.constant 1.000000e+00 : f32
    %683 = vector.broadcast %cst_425 : f32 to vector<2x128xf32>
    %684 = arith.subf %683, %682 : vector<2x128xf32>
    %cst_426 = arith.constant 0.000000e+00 : f32
    %685 = vector.broadcast %cst_426 : f32 to vector<2x128xf32>
    %686 = arith.maximumf %684, %685 : vector<2x128xf32>
    %687 = arith.mulf %676, %686 : vector<2x128xf32>
    %688 = arith.addf %673, %687 : vector<2x128xf32>
    %c0_427 = arith.constant 0 : index
    %c1_428 = arith.constant 1 : index
    %c5_429 = arith.constant 5 : index
    %c0_430 = arith.constant 0 : index
    %c0_431 = arith.constant 0 : index
    %689 = vector.load %arg5[%c0_427, %c1_428, %c5_429, %c0_430, %c0_431] : memref<1x4x17x2x128xbf16, #tpu.memory_space<vmem>>, vector<1x1x1x2x128xbf16>
    %690 = vector.shape_cast %689 : vector<1x1x1x2x128xbf16> to vector<2x128xbf16>
    %691 = arith.extf %690 : vector<2x128xbf16> to vector<2x128xf32>
    %692 = arith.subf %691, %611 : vector<2x128xf32>
    %693 = math.exp %692 : vector<2x128xf32>
    %694 = arith.addf %679, %693 : vector<2x128xf32>
    %cst_432 = arith.constant 5.000000e+00 : f32
    %695 = vector.broadcast %cst_432 : f32 to vector<2x128xf32>
    %696 = arith.subf %544, %695 : vector<2x128xf32>
    %697 = math.absf %696 : vector<2x128xf32>
    %cst_433 = arith.constant 1.000000e+00 : f32
    %698 = vector.broadcast %cst_433 : f32 to vector<2x128xf32>
    %699 = arith.subf %698, %697 : vector<2x128xf32>
    %cst_434 = arith.constant 0.000000e+00 : f32
    %700 = vector.broadcast %cst_434 : f32 to vector<2x128xf32>
    %701 = arith.maximumf %699, %700 : vector<2x128xf32>
    %702 = arith.mulf %691, %701 : vector<2x128xf32>
    %703 = arith.addf %688, %702 : vector<2x128xf32>
    %c0_435 = arith.constant 0 : index
    %c1_436 = arith.constant 1 : index
    %c6_437 = arith.constant 6 : index
    %c0_438 = arith.constant 0 : index
    %c0_439 = arith.constant 0 : index
    %704 = vector.load %arg5[%c0_435, %c1_436, %c6_437, %c0_438, %c0_439] : memref<1x4x17x2x128xbf16, #tpu.memory_space<vmem>>, vector<1x1x1x2x128xbf16>
    %705 = vector.shape_cast %704 : vector<1x1x1x2x128xbf16> to vector<2x128xbf16>
    %706 = arith.extf %705 : vector<2x128xbf16> to vector<2x128xf32>
    %707 = arith.subf %706, %611 : vector<2x128xf32>
    %708 = math.exp %707 : vector<2x128xf32>
    %709 = arith.addf %694, %708 : vector<2x128xf32>
    %cst_440 = arith.constant 6.000000e+00 : f32
    %710 = vector.broadcast %cst_440 : f32 to vector<2x128xf32>
    %711 = arith.subf %544, %710 : vector<2x128xf32>
    %712 = math.absf %711 : vector<2x128xf32>
    %cst_441 = arith.constant 1.000000e+00 : f32
    %713 = vector.broadcast %cst_441 : f32 to vector<2x128xf32>
    %714 = arith.subf %713, %712 : vector<2x128xf32>
    %cst_442 = arith.constant 0.000000e+00 : f32
    %715 = vector.broadcast %cst_442 : f32 to vector<2x128xf32>
    %716 = arith.maximumf %714, %715 : vector<2x128xf32>
    %717 = arith.mulf %706, %716 : vector<2x128xf32>
    %718 = arith.addf %703, %717 : vector<2x128xf32>
    %c0_443 = arith.constant 0 : index
    %c1_444 = arith.constant 1 : index
    %c7_445 = arith.constant 7 : index
    %c0_446 = arith.constant 0 : index
    %c0_447 = arith.constant 0 : index
    %719 = vector.load %arg5[%c0_443, %c1_444, %c7_445, %c0_446, %c0_447] : memref<1x4x17x2x128xbf16, #tpu.memory_space<vmem>>, vector<1x1x1x2x128xbf16>
    %720 = vector.shape_cast %719 : vector<1x1x1x2x128xbf16> to vector<2x128xbf16>
    %721 = arith.extf %720 : vector<2x128xbf16> to vector<2x128xf32>
    %722 = arith.subf %721, %611 : vector<2x128xf32>
    %723 = math.exp %722 : vector<2x128xf32>
    %724 = arith.addf %709, %723 : vector<2x128xf32>
    %cst_448 = arith.constant 7.000000e+00 : f32
    %725 = vector.broadcast %cst_448 : f32 to vector<2x128xf32>
    %726 = arith.subf %544, %725 : vector<2x128xf32>
    %727 = math.absf %726 : vector<2x128xf32>
    %cst_449 = arith.constant 1.000000e+00 : f32
    %728 = vector.broadcast %cst_449 : f32 to vector<2x128xf32>
    %729 = arith.subf %728, %727 : vector<2x128xf32>
    %cst_450 = arith.constant 0.000000e+00 : f32
    %730 = vector.broadcast %cst_450 : f32 to vector<2x128xf32>
    %731 = arith.maximumf %729, %730 : vector<2x128xf32>
    %732 = arith.mulf %721, %731 : vector<2x128xf32>
    %733 = arith.addf %718, %732 : vector<2x128xf32>
    %c0_451 = arith.constant 0 : index
    %c1_452 = arith.constant 1 : index
    %c8_453 = arith.constant 8 : index
    %c0_454 = arith.constant 0 : index
    %c0_455 = arith.constant 0 : index
    %734 = vector.load %arg5[%c0_451, %c1_452, %c8_453, %c0_454, %c0_455] : memref<1x4x17x2x128xbf16, #tpu.memory_space<vmem>>, vector<1x1x1x2x128xbf16>
    %735 = vector.shape_cast %734 : vector<1x1x1x2x128xbf16> to vector<2x128xbf16>
    %736 = arith.extf %735 : vector<2x128xbf16> to vector<2x128xf32>
    %737 = arith.subf %736, %611 : vector<2x128xf32>
    %738 = math.exp %737 : vector<2x128xf32>
    %739 = arith.addf %724, %738 : vector<2x128xf32>
    %cst_456 = arith.constant 8.000000e+00 : f32
    %740 = vector.broadcast %cst_456 : f32 to vector<2x128xf32>
    %741 = arith.subf %544, %740 : vector<2x128xf32>
    %742 = math.absf %741 : vector<2x128xf32>
    %cst_457 = arith.constant 1.000000e+00 : f32
    %743 = vector.broadcast %cst_457 : f32 to vector<2x128xf32>
    %744 = arith.subf %743, %742 : vector<2x128xf32>
    %cst_458 = arith.constant 0.000000e+00 : f32
    %745 = vector.broadcast %cst_458 : f32 to vector<2x128xf32>
    %746 = arith.maximumf %744, %745 : vector<2x128xf32>
    %747 = arith.mulf %736, %746 : vector<2x128xf32>
    %748 = arith.addf %733, %747 : vector<2x128xf32>
    %c0_459 = arith.constant 0 : index
    %c1_460 = arith.constant 1 : index
    %c9_461 = arith.constant 9 : index
    %c0_462 = arith.constant 0 : index
    %c0_463 = arith.constant 0 : index
    %749 = vector.load %arg5[%c0_459, %c1_460, %c9_461, %c0_462, %c0_463] : memref<1x4x17x2x128xbf16, #tpu.memory_space<vmem>>, vector<1x1x1x2x128xbf16>
    %750 = vector.shape_cast %749 : vector<1x1x1x2x128xbf16> to vector<2x128xbf16>
    %751 = arith.extf %750 : vector<2x128xbf16> to vector<2x128xf32>
    %752 = arith.subf %751, %611 : vector<2x128xf32>
    %753 = math.exp %752 : vector<2x128xf32>
    %754 = arith.addf %739, %753 : vector<2x128xf32>
    %cst_464 = arith.constant 9.000000e+00 : f32
    %755 = vector.broadcast %cst_464 : f32 to vector<2x128xf32>
    %756 = arith.subf %544, %755 : vector<2x128xf32>
    %757 = math.absf %756 : vector<2x128xf32>
    %cst_465 = arith.constant 1.000000e+00 : f32
    %758 = vector.broadcast %cst_465 : f32 to vector<2x128xf32>
    %759 = arith.subf %758, %757 : vector<2x128xf32>
    %cst_466 = arith.constant 0.000000e+00 : f32
    %760 = vector.broadcast %cst_466 : f32 to vector<2x128xf32>
    %761 = arith.maximumf %759, %760 : vector<2x128xf32>
    %762 = arith.mulf %751, %761 : vector<2x128xf32>
    %763 = arith.addf %748, %762 : vector<2x128xf32>
    %c0_467 = arith.constant 0 : index
    %c1_468 = arith.constant 1 : index
    %c10_469 = arith.constant 10 : index
    %c0_470 = arith.constant 0 : index
    %c0_471 = arith.constant 0 : index
    %764 = vector.load %arg5[%c0_467, %c1_468, %c10_469, %c0_470, %c0_471] : memref<1x4x17x2x128xbf16, #tpu.memory_space<vmem>>, vector<1x1x1x2x128xbf16>
    %765 = vector.shape_cast %764 : vector<1x1x1x2x128xbf16> to vector<2x128xbf16>
    %766 = arith.extf %765 : vector<2x128xbf16> to vector<2x128xf32>
    %767 = arith.subf %766, %611 : vector<2x128xf32>
    %768 = math.exp %767 : vector<2x128xf32>
    %769 = arith.addf %754, %768 : vector<2x128xf32>
    %cst_472 = arith.constant 1.000000e+01 : f32
    %770 = vector.broadcast %cst_472 : f32 to vector<2x128xf32>
    %771 = arith.subf %544, %770 : vector<2x128xf32>
    %772 = math.absf %771 : vector<2x128xf32>
    %cst_473 = arith.constant 1.000000e+00 : f32
    %773 = vector.broadcast %cst_473 : f32 to vector<2x128xf32>
    %774 = arith.subf %773, %772 : vector<2x128xf32>
    %cst_474 = arith.constant 0.000000e+00 : f32
    %775 = vector.broadcast %cst_474 : f32 to vector<2x128xf32>
    %776 = arith.maximumf %774, %775 : vector<2x128xf32>
    %777 = arith.mulf %766, %776 : vector<2x128xf32>
    %778 = arith.addf %763, %777 : vector<2x128xf32>
    %c0_475 = arith.constant 0 : index
    %c1_476 = arith.constant 1 : index
    %c11_477 = arith.constant 11 : index
    %c0_478 = arith.constant 0 : index
    %c0_479 = arith.constant 0 : index
    %779 = vector.load %arg5[%c0_475, %c1_476, %c11_477, %c0_478, %c0_479] : memref<1x4x17x2x128xbf16, #tpu.memory_space<vmem>>, vector<1x1x1x2x128xbf16>
    %780 = vector.shape_cast %779 : vector<1x1x1x2x128xbf16> to vector<2x128xbf16>
    %781 = arith.extf %780 : vector<2x128xbf16> to vector<2x128xf32>
    %782 = arith.subf %781, %611 : vector<2x128xf32>
    %783 = math.exp %782 : vector<2x128xf32>
    %784 = arith.addf %769, %783 : vector<2x128xf32>
    %cst_480 = arith.constant 1.100000e+01 : f32
    %785 = vector.broadcast %cst_480 : f32 to vector<2x128xf32>
    %786 = arith.subf %544, %785 : vector<2x128xf32>
    %787 = math.absf %786 : vector<2x128xf32>
    %cst_481 = arith.constant 1.000000e+00 : f32
    %788 = vector.broadcast %cst_481 : f32 to vector<2x128xf32>
    %789 = arith.subf %788, %787 : vector<2x128xf32>
    %cst_482 = arith.constant 0.000000e+00 : f32
    %790 = vector.broadcast %cst_482 : f32 to vector<2x128xf32>
    %791 = arith.maximumf %789, %790 : vector<2x128xf32>
    %792 = arith.mulf %781, %791 : vector<2x128xf32>
    %793 = arith.addf %778, %792 : vector<2x128xf32>
    %c0_483 = arith.constant 0 : index
    %c1_484 = arith.constant 1 : index
    %c12_485 = arith.constant 12 : index
    %c0_486 = arith.constant 0 : index
    %c0_487 = arith.constant 0 : index
    %794 = vector.load %arg5[%c0_483, %c1_484, %c12_485, %c0_486, %c0_487] : memref<1x4x17x2x128xbf16, #tpu.memory_space<vmem>>, vector<1x1x1x2x128xbf16>
    %795 = vector.shape_cast %794 : vector<1x1x1x2x128xbf16> to vector<2x128xbf16>
    %796 = arith.extf %795 : vector<2x128xbf16> to vector<2x128xf32>
    %797 = arith.subf %796, %611 : vector<2x128xf32>
    %798 = math.exp %797 : vector<2x128xf32>
    %799 = arith.addf %784, %798 : vector<2x128xf32>
    %cst_488 = arith.constant 1.200000e+01 : f32
    %800 = vector.broadcast %cst_488 : f32 to vector<2x128xf32>
    %801 = arith.subf %544, %800 : vector<2x128xf32>
    %802 = math.absf %801 : vector<2x128xf32>
    %cst_489 = arith.constant 1.000000e+00 : f32
    %803 = vector.broadcast %cst_489 : f32 to vector<2x128xf32>
    %804 = arith.subf %803, %802 : vector<2x128xf32>
    %cst_490 = arith.constant 0.000000e+00 : f32
    %805 = vector.broadcast %cst_490 : f32 to vector<2x128xf32>
    %806 = arith.maximumf %804, %805 : vector<2x128xf32>
    %807 = arith.mulf %796, %806 : vector<2x128xf32>
    %808 = arith.addf %793, %807 : vector<2x128xf32>
    %c0_491 = arith.constant 0 : index
    %c1_492 = arith.constant 1 : index
    %c13_493 = arith.constant 13 : index
    %c0_494 = arith.constant 0 : index
    %c0_495 = arith.constant 0 : index
    %809 = vector.load %arg5[%c0_491, %c1_492, %c13_493, %c0_494, %c0_495] : memref<1x4x17x2x128xbf16, #tpu.memory_space<vmem>>, vector<1x1x1x2x128xbf16>
    %810 = vector.shape_cast %809 : vector<1x1x1x2x128xbf16> to vector<2x128xbf16>
    %811 = arith.extf %810 : vector<2x128xbf16> to vector<2x128xf32>
    %812 = arith.subf %811, %611 : vector<2x128xf32>
    %813 = math.exp %812 : vector<2x128xf32>
    %814 = arith.addf %799, %813 : vector<2x128xf32>
    %cst_496 = arith.constant 1.300000e+01 : f32
    %815 = vector.broadcast %cst_496 : f32 to vector<2x128xf32>
    %816 = arith.subf %544, %815 : vector<2x128xf32>
    %817 = math.absf %816 : vector<2x128xf32>
    %cst_497 = arith.constant 1.000000e+00 : f32
    %818 = vector.broadcast %cst_497 : f32 to vector<2x128xf32>
    %819 = arith.subf %818, %817 : vector<2x128xf32>
    %cst_498 = arith.constant 0.000000e+00 : f32
    %820 = vector.broadcast %cst_498 : f32 to vector<2x128xf32>
    %821 = arith.maximumf %819, %820 : vector<2x128xf32>
    %822 = arith.mulf %811, %821 : vector<2x128xf32>
    %823 = arith.addf %808, %822 : vector<2x128xf32>
    %c0_499 = arith.constant 0 : index
    %c1_500 = arith.constant 1 : index
    %c14_501 = arith.constant 14 : index
    %c0_502 = arith.constant 0 : index
    %c0_503 = arith.constant 0 : index
    %824 = vector.load %arg5[%c0_499, %c1_500, %c14_501, %c0_502, %c0_503] : memref<1x4x17x2x128xbf16, #tpu.memory_space<vmem>>, vector<1x1x1x2x128xbf16>
    %825 = vector.shape_cast %824 : vector<1x1x1x2x128xbf16> to vector<2x128xbf16>
    %826 = arith.extf %825 : vector<2x128xbf16> to vector<2x128xf32>
    %827 = arith.subf %826, %611 : vector<2x128xf32>
    %828 = math.exp %827 : vector<2x128xf32>
    %829 = arith.addf %814, %828 : vector<2x128xf32>
    %cst_504 = arith.constant 1.400000e+01 : f32
    %830 = vector.broadcast %cst_504 : f32 to vector<2x128xf32>
    %831 = arith.subf %544, %830 : vector<2x128xf32>
    %832 = math.absf %831 : vector<2x128xf32>
    %cst_505 = arith.constant 1.000000e+00 : f32
    %833 = vector.broadcast %cst_505 : f32 to vector<2x128xf32>
    %834 = arith.subf %833, %832 : vector<2x128xf32>
    %cst_506 = arith.constant 0.000000e+00 : f32
    %835 = vector.broadcast %cst_506 : f32 to vector<2x128xf32>
    %836 = arith.maximumf %834, %835 : vector<2x128xf32>
    %837 = arith.mulf %826, %836 : vector<2x128xf32>
    %838 = arith.addf %823, %837 : vector<2x128xf32>
    %c0_507 = arith.constant 0 : index
    %c1_508 = arith.constant 1 : index
    %c15_509 = arith.constant 15 : index
    %c0_510 = arith.constant 0 : index
    %c0_511 = arith.constant 0 : index
    %839 = vector.load %arg5[%c0_507, %c1_508, %c15_509, %c0_510, %c0_511] : memref<1x4x17x2x128xbf16, #tpu.memory_space<vmem>>, vector<1x1x1x2x128xbf16>
    %840 = vector.shape_cast %839 : vector<1x1x1x2x128xbf16> to vector<2x128xbf16>
    %841 = arith.extf %840 : vector<2x128xbf16> to vector<2x128xf32>
    %842 = arith.subf %841, %611 : vector<2x128xf32>
    %843 = math.exp %842 : vector<2x128xf32>
    %844 = arith.addf %829, %843 : vector<2x128xf32>
    %cst_512 = arith.constant 1.500000e+01 : f32
    %845 = vector.broadcast %cst_512 : f32 to vector<2x128xf32>
    %846 = arith.subf %544, %845 : vector<2x128xf32>
    %847 = math.absf %846 : vector<2x128xf32>
    %cst_513 = arith.constant 1.000000e+00 : f32
    %848 = vector.broadcast %cst_513 : f32 to vector<2x128xf32>
    %849 = arith.subf %848, %847 : vector<2x128xf32>
    %cst_514 = arith.constant 0.000000e+00 : f32
    %850 = vector.broadcast %cst_514 : f32 to vector<2x128xf32>
    %851 = arith.maximumf %849, %850 : vector<2x128xf32>
    %852 = arith.mulf %841, %851 : vector<2x128xf32>
    %853 = arith.addf %838, %852 : vector<2x128xf32>
    %c0_515 = arith.constant 0 : index
    %c1_516 = arith.constant 1 : index
    %c16_517 = arith.constant 16 : index
    %c0_518 = arith.constant 0 : index
    %c0_519 = arith.constant 0 : index
    %854 = vector.load %arg5[%c0_515, %c1_516, %c16_517, %c0_518, %c0_519] : memref<1x4x17x2x128xbf16, #tpu.memory_space<vmem>>, vector<1x1x1x2x128xbf16>
    %855 = vector.shape_cast %854 : vector<1x1x1x2x128xbf16> to vector<2x128xbf16>
    %856 = arith.extf %855 : vector<2x128xbf16> to vector<2x128xf32>
    %857 = arith.subf %856, %611 : vector<2x128xf32>
    %858 = math.exp %857 : vector<2x128xf32>
    %859 = arith.addf %844, %858 : vector<2x128xf32>
    %cst_520 = arith.constant 1.600000e+01 : f32
    %860 = vector.broadcast %cst_520 : f32 to vector<2x128xf32>
    %861 = arith.subf %544, %860 : vector<2x128xf32>
    %862 = math.absf %861 : vector<2x128xf32>
    %cst_521 = arith.constant 1.000000e+00 : f32
    %863 = vector.broadcast %cst_521 : f32 to vector<2x128xf32>
    %864 = arith.subf %863, %862 : vector<2x128xf32>
    %cst_522 = arith.constant 0.000000e+00 : f32
    %865 = vector.broadcast %cst_522 : f32 to vector<2x128xf32>
    %866 = arith.maximumf %864, %865 : vector<2x128xf32>
    %867 = arith.mulf %856, %866 : vector<2x128xf32>
    %868 = arith.addf %853, %867 : vector<2x128xf32>
    %869 = math.log %859 : vector<2x128xf32>
    %870 = arith.addf %611, %869 : vector<2x128xf32>
    %871 = arith.subf %870, %868 : vector<2x128xf32>
    %872 = arith.addf %540, %871 : vector<2x128xf32>
    %cst_523 = arith.constant 0.000000e+00 : f32
    %cst_524 = arith.constant 1.599000e+01 : f32
    %873 = vector.broadcast %cst_523 : f32 to vector<2x128xf32>
    %874 = arith.maximumf %873, %206 : vector<2x128xf32>
    %875 = vector.broadcast %cst_524 : f32 to vector<2x128xf32>
    %876 = arith.minimumf %875, %874 : vector<2x128xf32>
    %c0_525 = arith.constant 0 : index
    %c2_526 = arith.constant 2 : index
    %c0_527 = arith.constant 0 : index
    %c0_528 = arith.constant 0 : index
    %c0_529 = arith.constant 0 : index
    %877 = vector.load %arg5[%c0_525, %c2_526, %c0_527, %c0_528, %c0_529] : memref<1x4x17x2x128xbf16, #tpu.memory_space<vmem>>, vector<1x1x1x2x128xbf16>
    %878 = vector.shape_cast %877 : vector<1x1x1x2x128xbf16> to vector<2x128xbf16>
    %879 = arith.extf %878 : vector<2x128xbf16> to vector<2x128xf32>
    %c0_530 = arith.constant 0 : index
    %c2_531 = arith.constant 2 : index
    %c1_532 = arith.constant 1 : index
    %c0_533 = arith.constant 0 : index
    %c0_534 = arith.constant 0 : index
    %880 = vector.load %arg5[%c0_530, %c2_531, %c1_532, %c0_533, %c0_534] : memref<1x4x17x2x128xbf16, #tpu.memory_space<vmem>>, vector<1x1x1x2x128xbf16>
    %881 = vector.shape_cast %880 : vector<1x1x1x2x128xbf16> to vector<2x128xbf16>
    %882 = arith.extf %881 : vector<2x128xbf16> to vector<2x128xf32>
    %883 = arith.maximumf %879, %882 : vector<2x128xf32>
    %c0_535 = arith.constant 0 : index
    %c2_536 = arith.constant 2 : index
    %c2_537 = arith.constant 2 : index
    %c0_538 = arith.constant 0 : index
    %c0_539 = arith.constant 0 : index
    %884 = vector.load %arg5[%c0_535, %c2_536, %c2_537, %c0_538, %c0_539] : memref<1x4x17x2x128xbf16, #tpu.memory_space<vmem>>, vector<1x1x1x2x128xbf16>
    %885 = vector.shape_cast %884 : vector<1x1x1x2x128xbf16> to vector<2x128xbf16>
    %886 = arith.extf %885 : vector<2x128xbf16> to vector<2x128xf32>
    %887 = arith.maximumf %883, %886 : vector<2x128xf32>
    %c0_540 = arith.constant 0 : index
    %c2_541 = arith.constant 2 : index
    %c3_542 = arith.constant 3 : index
    %c0_543 = arith.constant 0 : index
    %c0_544 = arith.constant 0 : index
    %888 = vector.load %arg5[%c0_540, %c2_541, %c3_542, %c0_543, %c0_544] : memref<1x4x17x2x128xbf16, #tpu.memory_space<vmem>>, vector<1x1x1x2x128xbf16>
    %889 = vector.shape_cast %888 : vector<1x1x1x2x128xbf16> to vector<2x128xbf16>
    %890 = arith.extf %889 : vector<2x128xbf16> to vector<2x128xf32>
    %891 = arith.maximumf %887, %890 : vector<2x128xf32>
    %c0_545 = arith.constant 0 : index
    %c2_546 = arith.constant 2 : index
    %c4_547 = arith.constant 4 : index
    %c0_548 = arith.constant 0 : index
    %c0_549 = arith.constant 0 : index
    %892 = vector.load %arg5[%c0_545, %c2_546, %c4_547, %c0_548, %c0_549] : memref<1x4x17x2x128xbf16, #tpu.memory_space<vmem>>, vector<1x1x1x2x128xbf16>
    %893 = vector.shape_cast %892 : vector<1x1x1x2x128xbf16> to vector<2x128xbf16>
    %894 = arith.extf %893 : vector<2x128xbf16> to vector<2x128xf32>
    %895 = arith.maximumf %891, %894 : vector<2x128xf32>
    %c0_550 = arith.constant 0 : index
    %c2_551 = arith.constant 2 : index
    %c5_552 = arith.constant 5 : index
    %c0_553 = arith.constant 0 : index
    %c0_554 = arith.constant 0 : index
    %896 = vector.load %arg5[%c0_550, %c2_551, %c5_552, %c0_553, %c0_554] : memref<1x4x17x2x128xbf16, #tpu.memory_space<vmem>>, vector<1x1x1x2x128xbf16>
    %897 = vector.shape_cast %896 : vector<1x1x1x2x128xbf16> to vector<2x128xbf16>
    %898 = arith.extf %897 : vector<2x128xbf16> to vector<2x128xf32>
    %899 = arith.maximumf %895, %898 : vector<2x128xf32>
    %c0_555 = arith.constant 0 : index
    %c2_556 = arith.constant 2 : index
    %c6_557 = arith.constant 6 : index
    %c0_558 = arith.constant 0 : index
    %c0_559 = arith.constant 0 : index
    %900 = vector.load %arg5[%c0_555, %c2_556, %c6_557, %c0_558, %c0_559] : memref<1x4x17x2x128xbf16, #tpu.memory_space<vmem>>, vector<1x1x1x2x128xbf16>
    %901 = vector.shape_cast %900 : vector<1x1x1x2x128xbf16> to vector<2x128xbf16>
    %902 = arith.extf %901 : vector<2x128xbf16> to vector<2x128xf32>
    %903 = arith.maximumf %899, %902 : vector<2x128xf32>
    %c0_560 = arith.constant 0 : index
    %c2_561 = arith.constant 2 : index
    %c7_562 = arith.constant 7 : index
    %c0_563 = arith.constant 0 : index
    %c0_564 = arith.constant 0 : index
    %904 = vector.load %arg5[%c0_560, %c2_561, %c7_562, %c0_563, %c0_564] : memref<1x4x17x2x128xbf16, #tpu.memory_space<vmem>>, vector<1x1x1x2x128xbf16>
    %905 = vector.shape_cast %904 : vector<1x1x1x2x128xbf16> to vector<2x128xbf16>
    %906 = arith.extf %905 : vector<2x128xbf16> to vector<2x128xf32>
    %907 = arith.maximumf %903, %906 : vector<2x128xf32>
    %c0_565 = arith.constant 0 : index
    %c2_566 = arith.constant 2 : index
    %c8_567 = arith.constant 8 : index
    %c0_568 = arith.constant 0 : index
    %c0_569 = arith.constant 0 : index
    %908 = vector.load %arg5[%c0_565, %c2_566, %c8_567, %c0_568, %c0_569] : memref<1x4x17x2x128xbf16, #tpu.memory_space<vmem>>, vector<1x1x1x2x128xbf16>
    %909 = vector.shape_cast %908 : vector<1x1x1x2x128xbf16> to vector<2x128xbf16>
    %910 = arith.extf %909 : vector<2x128xbf16> to vector<2x128xf32>
    %911 = arith.maximumf %907, %910 : vector<2x128xf32>
    %c0_570 = arith.constant 0 : index
    %c2_571 = arith.constant 2 : index
    %c9_572 = arith.constant 9 : index
    %c0_573 = arith.constant 0 : index
    %c0_574 = arith.constant 0 : index
    %912 = vector.load %arg5[%c0_570, %c2_571, %c9_572, %c0_573, %c0_574] : memref<1x4x17x2x128xbf16, #tpu.memory_space<vmem>>, vector<1x1x1x2x128xbf16>
    %913 = vector.shape_cast %912 : vector<1x1x1x2x128xbf16> to vector<2x128xbf16>
    %914 = arith.extf %913 : vector<2x128xbf16> to vector<2x128xf32>
    %915 = arith.maximumf %911, %914 : vector<2x128xf32>
    %c0_575 = arith.constant 0 : index
    %c2_576 = arith.constant 2 : index
    %c10_577 = arith.constant 10 : index
    %c0_578 = arith.constant 0 : index
    %c0_579 = arith.constant 0 : index
    %916 = vector.load %arg5[%c0_575, %c2_576, %c10_577, %c0_578, %c0_579] : memref<1x4x17x2x128xbf16, #tpu.memory_space<vmem>>, vector<1x1x1x2x128xbf16>
    %917 = vector.shape_cast %916 : vector<1x1x1x2x128xbf16> to vector<2x128xbf16>
    %918 = arith.extf %917 : vector<2x128xbf16> to vector<2x128xf32>
    %919 = arith.maximumf %915, %918 : vector<2x128xf32>
    %c0_580 = arith.constant 0 : index
    %c2_581 = arith.constant 2 : index
    %c11_582 = arith.constant 11 : index
    %c0_583 = arith.constant 0 : index
    %c0_584 = arith.constant 0 : index
    %920 = vector.load %arg5[%c0_580, %c2_581, %c11_582, %c0_583, %c0_584] : memref<1x4x17x2x128xbf16, #tpu.memory_space<vmem>>, vector<1x1x1x2x128xbf16>
    %921 = vector.shape_cast %920 : vector<1x1x1x2x128xbf16> to vector<2x128xbf16>
    %922 = arith.extf %921 : vector<2x128xbf16> to vector<2x128xf32>
    %923 = arith.maximumf %919, %922 : vector<2x128xf32>
    %c0_585 = arith.constant 0 : index
    %c2_586 = arith.constant 2 : index
    %c12_587 = arith.constant 12 : index
    %c0_588 = arith.constant 0 : index
    %c0_589 = arith.constant 0 : index
    %924 = vector.load %arg5[%c0_585, %c2_586, %c12_587, %c0_588, %c0_589] : memref<1x4x17x2x128xbf16, #tpu.memory_space<vmem>>, vector<1x1x1x2x128xbf16>
    %925 = vector.shape_cast %924 : vector<1x1x1x2x128xbf16> to vector<2x128xbf16>
    %926 = arith.extf %925 : vector<2x128xbf16> to vector<2x128xf32>
    %927 = arith.maximumf %923, %926 : vector<2x128xf32>
    %c0_590 = arith.constant 0 : index
    %c2_591 = arith.constant 2 : index
    %c13_592 = arith.constant 13 : index
    %c0_593 = arith.constant 0 : index
    %c0_594 = arith.constant 0 : index
    %928 = vector.load %arg5[%c0_590, %c2_591, %c13_592, %c0_593, %c0_594] : memref<1x4x17x2x128xbf16, #tpu.memory_space<vmem>>, vector<1x1x1x2x128xbf16>
    %929 = vector.shape_cast %928 : vector<1x1x1x2x128xbf16> to vector<2x128xbf16>
    %930 = arith.extf %929 : vector<2x128xbf16> to vector<2x128xf32>
    %931 = arith.maximumf %927, %930 : vector<2x128xf32>
    %c0_595 = arith.constant 0 : index
    %c2_596 = arith.constant 2 : index
    %c14_597 = arith.constant 14 : index
    %c0_598 = arith.constant 0 : index
    %c0_599 = arith.constant 0 : index
    %932 = vector.load %arg5[%c0_595, %c2_596, %c14_597, %c0_598, %c0_599] : memref<1x4x17x2x128xbf16, #tpu.memory_space<vmem>>, vector<1x1x1x2x128xbf16>
    %933 = vector.shape_cast %932 : vector<1x1x1x2x128xbf16> to vector<2x128xbf16>
    %934 = arith.extf %933 : vector<2x128xbf16> to vector<2x128xf32>
    %935 = arith.maximumf %931, %934 : vector<2x128xf32>
    %c0_600 = arith.constant 0 : index
    %c2_601 = arith.constant 2 : index
    %c15_602 = arith.constant 15 : index
    %c0_603 = arith.constant 0 : index
    %c0_604 = arith.constant 0 : index
    %936 = vector.load %arg5[%c0_600, %c2_601, %c15_602, %c0_603, %c0_604] : memref<1x4x17x2x128xbf16, #tpu.memory_space<vmem>>, vector<1x1x1x2x128xbf16>
    %937 = vector.shape_cast %936 : vector<1x1x1x2x128xbf16> to vector<2x128xbf16>
    %938 = arith.extf %937 : vector<2x128xbf16> to vector<2x128xf32>
    %939 = arith.maximumf %935, %938 : vector<2x128xf32>
    %c0_605 = arith.constant 0 : index
    %c2_606 = arith.constant 2 : index
    %c16_607 = arith.constant 16 : index
    %c0_608 = arith.constant 0 : index
    %c0_609 = arith.constant 0 : index
    %940 = vector.load %arg5[%c0_605, %c2_606, %c16_607, %c0_608, %c0_609] : memref<1x4x17x2x128xbf16, #tpu.memory_space<vmem>>, vector<1x1x1x2x128xbf16>
    %941 = vector.shape_cast %940 : vector<1x1x1x2x128xbf16> to vector<2x128xbf16>
    %942 = arith.extf %941 : vector<2x128xbf16> to vector<2x128xf32>
    %943 = arith.maximumf %939, %942 : vector<2x128xf32>
    %cst_610 = arith.constant 0.000000e+00 : f32
    %944 = vector.broadcast %cst_610 : f32 to vector<2x128xf32>
    %cst_611 = arith.constant 0.000000e+00 : f32
    %945 = vector.broadcast %cst_611 : f32 to vector<2x128xf32>
    %c0_612 = arith.constant 0 : index
    %c2_613 = arith.constant 2 : index
    %c0_614 = arith.constant 0 : index
    %c0_615 = arith.constant 0 : index
    %c0_616 = arith.constant 0 : index
    %946 = vector.load %arg5[%c0_612, %c2_613, %c0_614, %c0_615, %c0_616] : memref<1x4x17x2x128xbf16, #tpu.memory_space<vmem>>, vector<1x1x1x2x128xbf16>
    %947 = vector.shape_cast %946 : vector<1x1x1x2x128xbf16> to vector<2x128xbf16>
    %948 = arith.extf %947 : vector<2x128xbf16> to vector<2x128xf32>
    %949 = arith.subf %948, %943 : vector<2x128xf32>
    %950 = math.exp %949 : vector<2x128xf32>
    %951 = arith.addf %944, %950 : vector<2x128xf32>
    %cst_617 = arith.constant 0.000000e+00 : f32
    %952 = vector.broadcast %cst_617 : f32 to vector<2x128xf32>
    %953 = arith.subf %876, %952 : vector<2x128xf32>
    %954 = math.absf %953 : vector<2x128xf32>
    %cst_618 = arith.constant 1.000000e+00 : f32
    %955 = vector.broadcast %cst_618 : f32 to vector<2x128xf32>
    %956 = arith.subf %955, %954 : vector<2x128xf32>
    %cst_619 = arith.constant 0.000000e+00 : f32
    %957 = vector.broadcast %cst_619 : f32 to vector<2x128xf32>
    %958 = arith.maximumf %956, %957 : vector<2x128xf32>
    %959 = arith.mulf %948, %958 : vector<2x128xf32>
    %960 = arith.addf %945, %959 : vector<2x128xf32>
    %c0_620 = arith.constant 0 : index
    %c2_621 = arith.constant 2 : index
    %c1_622 = arith.constant 1 : index
    %c0_623 = arith.constant 0 : index
    %c0_624 = arith.constant 0 : index
    %961 = vector.load %arg5[%c0_620, %c2_621, %c1_622, %c0_623, %c0_624] : memref<1x4x17x2x128xbf16, #tpu.memory_space<vmem>>, vector<1x1x1x2x128xbf16>
    %962 = vector.shape_cast %961 : vector<1x1x1x2x128xbf16> to vector<2x128xbf16>
    %963 = arith.extf %962 : vector<2x128xbf16> to vector<2x128xf32>
    %964 = arith.subf %963, %943 : vector<2x128xf32>
    %965 = math.exp %964 : vector<2x128xf32>
    %966 = arith.addf %951, %965 : vector<2x128xf32>
    %cst_625 = arith.constant 1.000000e+00 : f32
    %967 = vector.broadcast %cst_625 : f32 to vector<2x128xf32>
    %968 = arith.subf %876, %967 : vector<2x128xf32>
    %969 = math.absf %968 : vector<2x128xf32>
    %cst_626 = arith.constant 1.000000e+00 : f32
    %970 = vector.broadcast %cst_626 : f32 to vector<2x128xf32>
    %971 = arith.subf %970, %969 : vector<2x128xf32>
    %cst_627 = arith.constant 0.000000e+00 : f32
    %972 = vector.broadcast %cst_627 : f32 to vector<2x128xf32>
    %973 = arith.maximumf %971, %972 : vector<2x128xf32>
    %974 = arith.mulf %963, %973 : vector<2x128xf32>
    %975 = arith.addf %960, %974 : vector<2x128xf32>
    %c0_628 = arith.constant 0 : index
    %c2_629 = arith.constant 2 : index
    %c2_630 = arith.constant 2 : index
    %c0_631 = arith.constant 0 : index
    %c0_632 = arith.constant 0 : index
    %976 = vector.load %arg5[%c0_628, %c2_629, %c2_630, %c0_631, %c0_632] : memref<1x4x17x2x128xbf16, #tpu.memory_space<vmem>>, vector<1x1x1x2x128xbf16>
    %977 = vector.shape_cast %976 : vector<1x1x1x2x128xbf16> to vector<2x128xbf16>
    %978 = arith.extf %977 : vector<2x128xbf16> to vector<2x128xf32>
    %979 = arith.subf %978, %943 : vector<2x128xf32>
    %980 = math.exp %979 : vector<2x128xf32>
    %981 = arith.addf %966, %980 : vector<2x128xf32>
    %cst_633 = arith.constant 2.000000e+00 : f32
    %982 = vector.broadcast %cst_633 : f32 to vector<2x128xf32>
    %983 = arith.subf %876, %982 : vector<2x128xf32>
    %984 = math.absf %983 : vector<2x128xf32>
    %cst_634 = arith.constant 1.000000e+00 : f32
    %985 = vector.broadcast %cst_634 : f32 to vector<2x128xf32>
    %986 = arith.subf %985, %984 : vector<2x128xf32>
    %cst_635 = arith.constant 0.000000e+00 : f32
    %987 = vector.broadcast %cst_635 : f32 to vector<2x128xf32>
    %988 = arith.maximumf %986, %987 : vector<2x128xf32>
    %989 = arith.mulf %978, %988 : vector<2x128xf32>
    %990 = arith.addf %975, %989 : vector<2x128xf32>
    %c0_636 = arith.constant 0 : index
    %c2_637 = arith.constant 2 : index
    %c3_638 = arith.constant 3 : index
    %c0_639 = arith.constant 0 : index
    %c0_640 = arith.constant 0 : index
    %991 = vector.load %arg5[%c0_636, %c2_637, %c3_638, %c0_639, %c0_640] : memref<1x4x17x2x128xbf16, #tpu.memory_space<vmem>>, vector<1x1x1x2x128xbf16>
    %992 = vector.shape_cast %991 : vector<1x1x1x2x128xbf16> to vector<2x128xbf16>
    %993 = arith.extf %992 : vector<2x128xbf16> to vector<2x128xf32>
    %994 = arith.subf %993, %943 : vector<2x128xf32>
    %995 = math.exp %994 : vector<2x128xf32>
    %996 = arith.addf %981, %995 : vector<2x128xf32>
    %cst_641 = arith.constant 3.000000e+00 : f32
    %997 = vector.broadcast %cst_641 : f32 to vector<2x128xf32>
    %998 = arith.subf %876, %997 : vector<2x128xf32>
    %999 = math.absf %998 : vector<2x128xf32>
    %cst_642 = arith.constant 1.000000e+00 : f32
    %1000 = vector.broadcast %cst_642 : f32 to vector<2x128xf32>
    %1001 = arith.subf %1000, %999 : vector<2x128xf32>
    %cst_643 = arith.constant 0.000000e+00 : f32
    %1002 = vector.broadcast %cst_643 : f32 to vector<2x128xf32>
    %1003 = arith.maximumf %1001, %1002 : vector<2x128xf32>
    %1004 = arith.mulf %993, %1003 : vector<2x128xf32>
    %1005 = arith.addf %990, %1004 : vector<2x128xf32>
    %c0_644 = arith.constant 0 : index
    %c2_645 = arith.constant 2 : index
    %c4_646 = arith.constant 4 : index
    %c0_647 = arith.constant 0 : index
    %c0_648 = arith.constant 0 : index
    %1006 = vector.load %arg5[%c0_644, %c2_645, %c4_646, %c0_647, %c0_648] : memref<1x4x17x2x128xbf16, #tpu.memory_space<vmem>>, vector<1x1x1x2x128xbf16>
    %1007 = vector.shape_cast %1006 : vector<1x1x1x2x128xbf16> to vector<2x128xbf16>
    %1008 = arith.extf %1007 : vector<2x128xbf16> to vector<2x128xf32>
    %1009 = arith.subf %1008, %943 : vector<2x128xf32>
    %1010 = math.exp %1009 : vector<2x128xf32>
    %1011 = arith.addf %996, %1010 : vector<2x128xf32>
    %cst_649 = arith.constant 4.000000e+00 : f32
    %1012 = vector.broadcast %cst_649 : f32 to vector<2x128xf32>
    %1013 = arith.subf %876, %1012 : vector<2x128xf32>
    %1014 = math.absf %1013 : vector<2x128xf32>
    %cst_650 = arith.constant 1.000000e+00 : f32
    %1015 = vector.broadcast %cst_650 : f32 to vector<2x128xf32>
    %1016 = arith.subf %1015, %1014 : vector<2x128xf32>
    %cst_651 = arith.constant 0.000000e+00 : f32
    %1017 = vector.broadcast %cst_651 : f32 to vector<2x128xf32>
    %1018 = arith.maximumf %1016, %1017 : vector<2x128xf32>
    %1019 = arith.mulf %1008, %1018 : vector<2x128xf32>
    %1020 = arith.addf %1005, %1019 : vector<2x128xf32>
    %c0_652 = arith.constant 0 : index
    %c2_653 = arith.constant 2 : index
    %c5_654 = arith.constant 5 : index
    %c0_655 = arith.constant 0 : index
    %c0_656 = arith.constant 0 : index
    %1021 = vector.load %arg5[%c0_652, %c2_653, %c5_654, %c0_655, %c0_656] : memref<1x4x17x2x128xbf16, #tpu.memory_space<vmem>>, vector<1x1x1x2x128xbf16>
    %1022 = vector.shape_cast %1021 : vector<1x1x1x2x128xbf16> to vector<2x128xbf16>
    %1023 = arith.extf %1022 : vector<2x128xbf16> to vector<2x128xf32>
    %1024 = arith.subf %1023, %943 : vector<2x128xf32>
    %1025 = math.exp %1024 : vector<2x128xf32>
    %1026 = arith.addf %1011, %1025 : vector<2x128xf32>
    %cst_657 = arith.constant 5.000000e+00 : f32
    %1027 = vector.broadcast %cst_657 : f32 to vector<2x128xf32>
    %1028 = arith.subf %876, %1027 : vector<2x128xf32>
    %1029 = math.absf %1028 : vector<2x128xf32>
    %cst_658 = arith.constant 1.000000e+00 : f32
    %1030 = vector.broadcast %cst_658 : f32 to vector<2x128xf32>
    %1031 = arith.subf %1030, %1029 : vector<2x128xf32>
    %cst_659 = arith.constant 0.000000e+00 : f32
    %1032 = vector.broadcast %cst_659 : f32 to vector<2x128xf32>
    %1033 = arith.maximumf %1031, %1032 : vector<2x128xf32>
    %1034 = arith.mulf %1023, %1033 : vector<2x128xf32>
    %1035 = arith.addf %1020, %1034 : vector<2x128xf32>
    %c0_660 = arith.constant 0 : index
    %c2_661 = arith.constant 2 : index
    %c6_662 = arith.constant 6 : index
    %c0_663 = arith.constant 0 : index
    %c0_664 = arith.constant 0 : index
    %1036 = vector.load %arg5[%c0_660, %c2_661, %c6_662, %c0_663, %c0_664] : memref<1x4x17x2x128xbf16, #tpu.memory_space<vmem>>, vector<1x1x1x2x128xbf16>
    %1037 = vector.shape_cast %1036 : vector<1x1x1x2x128xbf16> to vector<2x128xbf16>
    %1038 = arith.extf %1037 : vector<2x128xbf16> to vector<2x128xf32>
    %1039 = arith.subf %1038, %943 : vector<2x128xf32>
    %1040 = math.exp %1039 : vector<2x128xf32>
    %1041 = arith.addf %1026, %1040 : vector<2x128xf32>
    %cst_665 = arith.constant 6.000000e+00 : f32
    %1042 = vector.broadcast %cst_665 : f32 to vector<2x128xf32>
    %1043 = arith.subf %876, %1042 : vector<2x128xf32>
    %1044 = math.absf %1043 : vector<2x128xf32>
    %cst_666 = arith.constant 1.000000e+00 : f32
    %1045 = vector.broadcast %cst_666 : f32 to vector<2x128xf32>
    %1046 = arith.subf %1045, %1044 : vector<2x128xf32>
    %cst_667 = arith.constant 0.000000e+00 : f32
    %1047 = vector.broadcast %cst_667 : f32 to vector<2x128xf32>
    %1048 = arith.maximumf %1046, %1047 : vector<2x128xf32>
    %1049 = arith.mulf %1038, %1048 : vector<2x128xf32>
    %1050 = arith.addf %1035, %1049 : vector<2x128xf32>
    %c0_668 = arith.constant 0 : index
    %c2_669 = arith.constant 2 : index
    %c7_670 = arith.constant 7 : index
    %c0_671 = arith.constant 0 : index
    %c0_672 = arith.constant 0 : index
    %1051 = vector.load %arg5[%c0_668, %c2_669, %c7_670, %c0_671, %c0_672] : memref<1x4x17x2x128xbf16, #tpu.memory_space<vmem>>, vector<1x1x1x2x128xbf16>
    %1052 = vector.shape_cast %1051 : vector<1x1x1x2x128xbf16> to vector<2x128xbf16>
    %1053 = arith.extf %1052 : vector<2x128xbf16> to vector<2x128xf32>
    %1054 = arith.subf %1053, %943 : vector<2x128xf32>
    %1055 = math.exp %1054 : vector<2x128xf32>
    %1056 = arith.addf %1041, %1055 : vector<2x128xf32>
    %cst_673 = arith.constant 7.000000e+00 : f32
    %1057 = vector.broadcast %cst_673 : f32 to vector<2x128xf32>
    %1058 = arith.subf %876, %1057 : vector<2x128xf32>
    %1059 = math.absf %1058 : vector<2x128xf32>
    %cst_674 = arith.constant 1.000000e+00 : f32
    %1060 = vector.broadcast %cst_674 : f32 to vector<2x128xf32>
    %1061 = arith.subf %1060, %1059 : vector<2x128xf32>
    %cst_675 = arith.constant 0.000000e+00 : f32
    %1062 = vector.broadcast %cst_675 : f32 to vector<2x128xf32>
    %1063 = arith.maximumf %1061, %1062 : vector<2x128xf32>
    %1064 = arith.mulf %1053, %1063 : vector<2x128xf32>
    %1065 = arith.addf %1050, %1064 : vector<2x128xf32>
    %c0_676 = arith.constant 0 : index
    %c2_677 = arith.constant 2 : index
    %c8_678 = arith.constant 8 : index
    %c0_679 = arith.constant 0 : index
    %c0_680 = arith.constant 0 : index
    %1066 = vector.load %arg5[%c0_676, %c2_677, %c8_678, %c0_679, %c0_680] : memref<1x4x17x2x128xbf16, #tpu.memory_space<vmem>>, vector<1x1x1x2x128xbf16>
    %1067 = vector.shape_cast %1066 : vector<1x1x1x2x128xbf16> to vector<2x128xbf16>
    %1068 = arith.extf %1067 : vector<2x128xbf16> to vector<2x128xf32>
    %1069 = arith.subf %1068, %943 : vector<2x128xf32>
    %1070 = math.exp %1069 : vector<2x128xf32>
    %1071 = arith.addf %1056, %1070 : vector<2x128xf32>
    %cst_681 = arith.constant 8.000000e+00 : f32
    %1072 = vector.broadcast %cst_681 : f32 to vector<2x128xf32>
    %1073 = arith.subf %876, %1072 : vector<2x128xf32>
    %1074 = math.absf %1073 : vector<2x128xf32>
    %cst_682 = arith.constant 1.000000e+00 : f32
    %1075 = vector.broadcast %cst_682 : f32 to vector<2x128xf32>
    %1076 = arith.subf %1075, %1074 : vector<2x128xf32>
    %cst_683 = arith.constant 0.000000e+00 : f32
    %1077 = vector.broadcast %cst_683 : f32 to vector<2x128xf32>
    %1078 = arith.maximumf %1076, %1077 : vector<2x128xf32>
    %1079 = arith.mulf %1068, %1078 : vector<2x128xf32>
    %1080 = arith.addf %1065, %1079 : vector<2x128xf32>
    %c0_684 = arith.constant 0 : index
    %c2_685 = arith.constant 2 : index
    %c9_686 = arith.constant 9 : index
    %c0_687 = arith.constant 0 : index
    %c0_688 = arith.constant 0 : index
    %1081 = vector.load %arg5[%c0_684, %c2_685, %c9_686, %c0_687, %c0_688] : memref<1x4x17x2x128xbf16, #tpu.memory_space<vmem>>, vector<1x1x1x2x128xbf16>
    %1082 = vector.shape_cast %1081 : vector<1x1x1x2x128xbf16> to vector<2x128xbf16>
    %1083 = arith.extf %1082 : vector<2x128xbf16> to vector<2x128xf32>
    %1084 = arith.subf %1083, %943 : vector<2x128xf32>
    %1085 = math.exp %1084 : vector<2x128xf32>
    %1086 = arith.addf %1071, %1085 : vector<2x128xf32>
    %cst_689 = arith.constant 9.000000e+00 : f32
    %1087 = vector.broadcast %cst_689 : f32 to vector<2x128xf32>
    %1088 = arith.subf %876, %1087 : vector<2x128xf32>
    %1089 = math.absf %1088 : vector<2x128xf32>
    %cst_690 = arith.constant 1.000000e+00 : f32
    %1090 = vector.broadcast %cst_690 : f32 to vector<2x128xf32>
    %1091 = arith.subf %1090, %1089 : vector<2x128xf32>
    %cst_691 = arith.constant 0.000000e+00 : f32
    %1092 = vector.broadcast %cst_691 : f32 to vector<2x128xf32>
    %1093 = arith.maximumf %1091, %1092 : vector<2x128xf32>
    %1094 = arith.mulf %1083, %1093 : vector<2x128xf32>
    %1095 = arith.addf %1080, %1094 : vector<2x128xf32>
    %c0_692 = arith.constant 0 : index
    %c2_693 = arith.constant 2 : index
    %c10_694 = arith.constant 10 : index
    %c0_695 = arith.constant 0 : index
    %c0_696 = arith.constant 0 : index
    %1096 = vector.load %arg5[%c0_692, %c2_693, %c10_694, %c0_695, %c0_696] : memref<1x4x17x2x128xbf16, #tpu.memory_space<vmem>>, vector<1x1x1x2x128xbf16>
    %1097 = vector.shape_cast %1096 : vector<1x1x1x2x128xbf16> to vector<2x128xbf16>
    %1098 = arith.extf %1097 : vector<2x128xbf16> to vector<2x128xf32>
    %1099 = arith.subf %1098, %943 : vector<2x128xf32>
    %1100 = math.exp %1099 : vector<2x128xf32>
    %1101 = arith.addf %1086, %1100 : vector<2x128xf32>
    %cst_697 = arith.constant 1.000000e+01 : f32
    %1102 = vector.broadcast %cst_697 : f32 to vector<2x128xf32>
    %1103 = arith.subf %876, %1102 : vector<2x128xf32>
    %1104 = math.absf %1103 : vector<2x128xf32>
    %cst_698 = arith.constant 1.000000e+00 : f32
    %1105 = vector.broadcast %cst_698 : f32 to vector<2x128xf32>
    %1106 = arith.subf %1105, %1104 : vector<2x128xf32>
    %cst_699 = arith.constant 0.000000e+00 : f32
    %1107 = vector.broadcast %cst_699 : f32 to vector<2x128xf32>
    %1108 = arith.maximumf %1106, %1107 : vector<2x128xf32>
    %1109 = arith.mulf %1098, %1108 : vector<2x128xf32>
    %1110 = arith.addf %1095, %1109 : vector<2x128xf32>
    %c0_700 = arith.constant 0 : index
    %c2_701 = arith.constant 2 : index
    %c11_702 = arith.constant 11 : index
    %c0_703 = arith.constant 0 : index
    %c0_704 = arith.constant 0 : index
    %1111 = vector.load %arg5[%c0_700, %c2_701, %c11_702, %c0_703, %c0_704] : memref<1x4x17x2x128xbf16, #tpu.memory_space<vmem>>, vector<1x1x1x2x128xbf16>
    %1112 = vector.shape_cast %1111 : vector<1x1x1x2x128xbf16> to vector<2x128xbf16>
    %1113 = arith.extf %1112 : vector<2x128xbf16> to vector<2x128xf32>
    %1114 = arith.subf %1113, %943 : vector<2x128xf32>
    %1115 = math.exp %1114 : vector<2x128xf32>
    %1116 = arith.addf %1101, %1115 : vector<2x128xf32>
    %cst_705 = arith.constant 1.100000e+01 : f32
    %1117 = vector.broadcast %cst_705 : f32 to vector<2x128xf32>
    %1118 = arith.subf %876, %1117 : vector<2x128xf32>
    %1119 = math.absf %1118 : vector<2x128xf32>
    %cst_706 = arith.constant 1.000000e+00 : f32
    %1120 = vector.broadcast %cst_706 : f32 to vector<2x128xf32>
    %1121 = arith.subf %1120, %1119 : vector<2x128xf32>
    %cst_707 = arith.constant 0.000000e+00 : f32
    %1122 = vector.broadcast %cst_707 : f32 to vector<2x128xf32>
    %1123 = arith.maximumf %1121, %1122 : vector<2x128xf32>
    %1124 = arith.mulf %1113, %1123 : vector<2x128xf32>
    %1125 = arith.addf %1110, %1124 : vector<2x128xf32>
    %c0_708 = arith.constant 0 : index
    %c2_709 = arith.constant 2 : index
    %c12_710 = arith.constant 12 : index
    %c0_711 = arith.constant 0 : index
    %c0_712 = arith.constant 0 : index
    %1126 = vector.load %arg5[%c0_708, %c2_709, %c12_710, %c0_711, %c0_712] : memref<1x4x17x2x128xbf16, #tpu.memory_space<vmem>>, vector<1x1x1x2x128xbf16>
    %1127 = vector.shape_cast %1126 : vector<1x1x1x2x128xbf16> to vector<2x128xbf16>
    %1128 = arith.extf %1127 : vector<2x128xbf16> to vector<2x128xf32>
    %1129 = arith.subf %1128, %943 : vector<2x128xf32>
    %1130 = math.exp %1129 : vector<2x128xf32>
    %1131 = arith.addf %1116, %1130 : vector<2x128xf32>
    %cst_713 = arith.constant 1.200000e+01 : f32
    %1132 = vector.broadcast %cst_713 : f32 to vector<2x128xf32>
    %1133 = arith.subf %876, %1132 : vector<2x128xf32>
    %1134 = math.absf %1133 : vector<2x128xf32>
    %cst_714 = arith.constant 1.000000e+00 : f32
    %1135 = vector.broadcast %cst_714 : f32 to vector<2x128xf32>
    %1136 = arith.subf %1135, %1134 : vector<2x128xf32>
    %cst_715 = arith.constant 0.000000e+00 : f32
    %1137 = vector.broadcast %cst_715 : f32 to vector<2x128xf32>
    %1138 = arith.maximumf %1136, %1137 : vector<2x128xf32>
    %1139 = arith.mulf %1128, %1138 : vector<2x128xf32>
    %1140 = arith.addf %1125, %1139 : vector<2x128xf32>
    %c0_716 = arith.constant 0 : index
    %c2_717 = arith.constant 2 : index
    %c13_718 = arith.constant 13 : index
    %c0_719 = arith.constant 0 : index
    %c0_720 = arith.constant 0 : index
    %1141 = vector.load %arg5[%c0_716, %c2_717, %c13_718, %c0_719, %c0_720] : memref<1x4x17x2x128xbf16, #tpu.memory_space<vmem>>, vector<1x1x1x2x128xbf16>
    %1142 = vector.shape_cast %1141 : vector<1x1x1x2x128xbf16> to vector<2x128xbf16>
    %1143 = arith.extf %1142 : vector<2x128xbf16> to vector<2x128xf32>
    %1144 = arith.subf %1143, %943 : vector<2x128xf32>
    %1145 = math.exp %1144 : vector<2x128xf32>
    %1146 = arith.addf %1131, %1145 : vector<2x128xf32>
    %cst_721 = arith.constant 1.300000e+01 : f32
    %1147 = vector.broadcast %cst_721 : f32 to vector<2x128xf32>
    %1148 = arith.subf %876, %1147 : vector<2x128xf32>
    %1149 = math.absf %1148 : vector<2x128xf32>
    %cst_722 = arith.constant 1.000000e+00 : f32
    %1150 = vector.broadcast %cst_722 : f32 to vector<2x128xf32>
    %1151 = arith.subf %1150, %1149 : vector<2x128xf32>
    %cst_723 = arith.constant 0.000000e+00 : f32
    %1152 = vector.broadcast %cst_723 : f32 to vector<2x128xf32>
    %1153 = arith.maximumf %1151, %1152 : vector<2x128xf32>
    %1154 = arith.mulf %1143, %1153 : vector<2x128xf32>
    %1155 = arith.addf %1140, %1154 : vector<2x128xf32>
    %c0_724 = arith.constant 0 : index
    %c2_725 = arith.constant 2 : index
    %c14_726 = arith.constant 14 : index
    %c0_727 = arith.constant 0 : index
    %c0_728 = arith.constant 0 : index
    %1156 = vector.load %arg5[%c0_724, %c2_725, %c14_726, %c0_727, %c0_728] : memref<1x4x17x2x128xbf16, #tpu.memory_space<vmem>>, vector<1x1x1x2x128xbf16>
    %1157 = vector.shape_cast %1156 : vector<1x1x1x2x128xbf16> to vector<2x128xbf16>
    %1158 = arith.extf %1157 : vector<2x128xbf16> to vector<2x128xf32>
    %1159 = arith.subf %1158, %943 : vector<2x128xf32>
    %1160 = math.exp %1159 : vector<2x128xf32>
    %1161 = arith.addf %1146, %1160 : vector<2x128xf32>
    %cst_729 = arith.constant 1.400000e+01 : f32
    %1162 = vector.broadcast %cst_729 : f32 to vector<2x128xf32>
    %1163 = arith.subf %876, %1162 : vector<2x128xf32>
    %1164 = math.absf %1163 : vector<2x128xf32>
    %cst_730 = arith.constant 1.000000e+00 : f32
    %1165 = vector.broadcast %cst_730 : f32 to vector<2x128xf32>
    %1166 = arith.subf %1165, %1164 : vector<2x128xf32>
    %cst_731 = arith.constant 0.000000e+00 : f32
    %1167 = vector.broadcast %cst_731 : f32 to vector<2x128xf32>
    %1168 = arith.maximumf %1166, %1167 : vector<2x128xf32>
    %1169 = arith.mulf %1158, %1168 : vector<2x128xf32>
    %1170 = arith.addf %1155, %1169 : vector<2x128xf32>
    %c0_732 = arith.constant 0 : index
    %c2_733 = arith.constant 2 : index
    %c15_734 = arith.constant 15 : index
    %c0_735 = arith.constant 0 : index
    %c0_736 = arith.constant 0 : index
    %1171 = vector.load %arg5[%c0_732, %c2_733, %c15_734, %c0_735, %c0_736] : memref<1x4x17x2x128xbf16, #tpu.memory_space<vmem>>, vector<1x1x1x2x128xbf16>
    %1172 = vector.shape_cast %1171 : vector<1x1x1x2x128xbf16> to vector<2x128xbf16>
    %1173 = arith.extf %1172 : vector<2x128xbf16> to vector<2x128xf32>
    %1174 = arith.subf %1173, %943 : vector<2x128xf32>
    %1175 = math.exp %1174 : vector<2x128xf32>
    %1176 = arith.addf %1161, %1175 : vector<2x128xf32>
    %cst_737 = arith.constant 1.500000e+01 : f32
    %1177 = vector.broadcast %cst_737 : f32 to vector<2x128xf32>
    %1178 = arith.subf %876, %1177 : vector<2x128xf32>
    %1179 = math.absf %1178 : vector<2x128xf32>
    %cst_738 = arith.constant 1.000000e+00 : f32
    %1180 = vector.broadcast %cst_738 : f32 to vector<2x128xf32>
    %1181 = arith.subf %1180, %1179 : vector<2x128xf32>
    %cst_739 = arith.constant 0.000000e+00 : f32
    %1182 = vector.broadcast %cst_739 : f32 to vector<2x128xf32>
    %1183 = arith.maximumf %1181, %1182 : vector<2x128xf32>
    %1184 = arith.mulf %1173, %1183 : vector<2x128xf32>
    %1185 = arith.addf %1170, %1184 : vector<2x128xf32>
    %c0_740 = arith.constant 0 : index
    %c2_741 = arith.constant 2 : index
    %c16_742 = arith.constant 16 : index
    %c0_743 = arith.constant 0 : index
    %c0_744 = arith.constant 0 : index
    %1186 = vector.load %arg5[%c0_740, %c2_741, %c16_742, %c0_743, %c0_744] : memref<1x4x17x2x128xbf16, #tpu.memory_space<vmem>>, vector<1x1x1x2x128xbf16>
    %1187 = vector.shape_cast %1186 : vector<1x1x1x2x128xbf16> to vector<2x128xbf16>
    %1188 = arith.extf %1187 : vector<2x128xbf16> to vector<2x128xf32>
    %1189 = arith.subf %1188, %943 : vector<2x128xf32>
    %1190 = math.exp %1189 : vector<2x128xf32>
    %1191 = arith.addf %1176, %1190 : vector<2x128xf32>
    %cst_745 = arith.constant 1.600000e+01 : f32
    %1192 = vector.broadcast %cst_745 : f32 to vector<2x128xf32>
    %1193 = arith.subf %876, %1192 : vector<2x128xf32>
    %1194 = math.absf %1193 : vector<2x128xf32>
    %cst_746 = arith.constant 1.000000e+00 : f32
    %1195 = vector.broadcast %cst_746 : f32 to vector<2x128xf32>
    %1196 = arith.subf %1195, %1194 : vector<2x128xf32>
    %cst_747 = arith.constant 0.000000e+00 : f32
    %1197 = vector.broadcast %cst_747 : f32 to vector<2x128xf32>
    %1198 = arith.maximumf %1196, %1197 : vector<2x128xf32>
    %1199 = arith.mulf %1188, %1198 : vector<2x128xf32>
    %1200 = arith.addf %1185, %1199 : vector<2x128xf32>
    %1201 = math.log %1191 : vector<2x128xf32>
    %1202 = arith.addf %943, %1201 : vector<2x128xf32>
    %1203 = arith.subf %1202, %1200 : vector<2x128xf32>
    %1204 = arith.addf %872, %1203 : vector<2x128xf32>
    %cst_748 = arith.constant 0.000000e+00 : f32
    %cst_749 = arith.constant 1.599000e+01 : f32
    %1205 = vector.broadcast %cst_748 : f32 to vector<2x128xf32>
    %1206 = arith.maximumf %1205, %207 : vector<2x128xf32>
    %1207 = vector.broadcast %cst_749 : f32 to vector<2x128xf32>
    %1208 = arith.minimumf %1207, %1206 : vector<2x128xf32>
    %c0_750 = arith.constant 0 : index
    %c3_751 = arith.constant 3 : index
    %c0_752 = arith.constant 0 : index
    %c0_753 = arith.constant 0 : index
    %c0_754 = arith.constant 0 : index
    %1209 = vector.load %arg5[%c0_750, %c3_751, %c0_752, %c0_753, %c0_754] : memref<1x4x17x2x128xbf16, #tpu.memory_space<vmem>>, vector<1x1x1x2x128xbf16>
    %1210 = vector.shape_cast %1209 : vector<1x1x1x2x128xbf16> to vector<2x128xbf16>
    %1211 = arith.extf %1210 : vector<2x128xbf16> to vector<2x128xf32>
    %c0_755 = arith.constant 0 : index
    %c3_756 = arith.constant 3 : index
    %c1_757 = arith.constant 1 : index
    %c0_758 = arith.constant 0 : index
    %c0_759 = arith.constant 0 : index
    %1212 = vector.load %arg5[%c0_755, %c3_756, %c1_757, %c0_758, %c0_759] : memref<1x4x17x2x128xbf16, #tpu.memory_space<vmem>>, vector<1x1x1x2x128xbf16>
    %1213 = vector.shape_cast %1212 : vector<1x1x1x2x128xbf16> to vector<2x128xbf16>
    %1214 = arith.extf %1213 : vector<2x128xbf16> to vector<2x128xf32>
    %1215 = arith.maximumf %1211, %1214 : vector<2x128xf32>
    %c0_760 = arith.constant 0 : index
    %c3_761 = arith.constant 3 : index
    %c2_762 = arith.constant 2 : index
    %c0_763 = arith.constant 0 : index
    %c0_764 = arith.constant 0 : index
    %1216 = vector.load %arg5[%c0_760, %c3_761, %c2_762, %c0_763, %c0_764] : memref<1x4x17x2x128xbf16, #tpu.memory_space<vmem>>, vector<1x1x1x2x128xbf16>
    %1217 = vector.shape_cast %1216 : vector<1x1x1x2x128xbf16> to vector<2x128xbf16>
    %1218 = arith.extf %1217 : vector<2x128xbf16> to vector<2x128xf32>
    %1219 = arith.maximumf %1215, %1218 : vector<2x128xf32>
    %c0_765 = arith.constant 0 : index
    %c3_766 = arith.constant 3 : index
    %c3_767 = arith.constant 3 : index
    %c0_768 = arith.constant 0 : index
    %c0_769 = arith.constant 0 : index
    %1220 = vector.load %arg5[%c0_765, %c3_766, %c3_767, %c0_768, %c0_769] : memref<1x4x17x2x128xbf16, #tpu.memory_space<vmem>>, vector<1x1x1x2x128xbf16>
    %1221 = vector.shape_cast %1220 : vector<1x1x1x2x128xbf16> to vector<2x128xbf16>
    %1222 = arith.extf %1221 : vector<2x128xbf16> to vector<2x128xf32>
    %1223 = arith.maximumf %1219, %1222 : vector<2x128xf32>
    %c0_770 = arith.constant 0 : index
    %c3_771 = arith.constant 3 : index
    %c4_772 = arith.constant 4 : index
    %c0_773 = arith.constant 0 : index
    %c0_774 = arith.constant 0 : index
    %1224 = vector.load %arg5[%c0_770, %c3_771, %c4_772, %c0_773, %c0_774] : memref<1x4x17x2x128xbf16, #tpu.memory_space<vmem>>, vector<1x1x1x2x128xbf16>
    %1225 = vector.shape_cast %1224 : vector<1x1x1x2x128xbf16> to vector<2x128xbf16>
    %1226 = arith.extf %1225 : vector<2x128xbf16> to vector<2x128xf32>
    %1227 = arith.maximumf %1223, %1226 : vector<2x128xf32>
    %c0_775 = arith.constant 0 : index
    %c3_776 = arith.constant 3 : index
    %c5_777 = arith.constant 5 : index
    %c0_778 = arith.constant 0 : index
    %c0_779 = arith.constant 0 : index
    %1228 = vector.load %arg5[%c0_775, %c3_776, %c5_777, %c0_778, %c0_779] : memref<1x4x17x2x128xbf16, #tpu.memory_space<vmem>>, vector<1x1x1x2x128xbf16>
    %1229 = vector.shape_cast %1228 : vector<1x1x1x2x128xbf16> to vector<2x128xbf16>
    %1230 = arith.extf %1229 : vector<2x128xbf16> to vector<2x128xf32>
    %1231 = arith.maximumf %1227, %1230 : vector<2x128xf32>
    %c0_780 = arith.constant 0 : index
    %c3_781 = arith.constant 3 : index
    %c6_782 = arith.constant 6 : index
    %c0_783 = arith.constant 0 : index
    %c0_784 = arith.constant 0 : index
    %1232 = vector.load %arg5[%c0_780, %c3_781, %c6_782, %c0_783, %c0_784] : memref<1x4x17x2x128xbf16, #tpu.memory_space<vmem>>, vector<1x1x1x2x128xbf16>
    %1233 = vector.shape_cast %1232 : vector<1x1x1x2x128xbf16> to vector<2x128xbf16>
    %1234 = arith.extf %1233 : vector<2x128xbf16> to vector<2x128xf32>
    %1235 = arith.maximumf %1231, %1234 : vector<2x128xf32>
    %c0_785 = arith.constant 0 : index
    %c3_786 = arith.constant 3 : index
    %c7_787 = arith.constant 7 : index
    %c0_788 = arith.constant 0 : index
    %c0_789 = arith.constant 0 : index
    %1236 = vector.load %arg5[%c0_785, %c3_786, %c7_787, %c0_788, %c0_789] : memref<1x4x17x2x128xbf16, #tpu.memory_space<vmem>>, vector<1x1x1x2x128xbf16>
    %1237 = vector.shape_cast %1236 : vector<1x1x1x2x128xbf16> to vector<2x128xbf16>
    %1238 = arith.extf %1237 : vector<2x128xbf16> to vector<2x128xf32>
    %1239 = arith.maximumf %1235, %1238 : vector<2x128xf32>
    %c0_790 = arith.constant 0 : index
    %c3_791 = arith.constant 3 : index
    %c8_792 = arith.constant 8 : index
    %c0_793 = arith.constant 0 : index
    %c0_794 = arith.constant 0 : index
    %1240 = vector.load %arg5[%c0_790, %c3_791, %c8_792, %c0_793, %c0_794] : memref<1x4x17x2x128xbf16, #tpu.memory_space<vmem>>, vector<1x1x1x2x128xbf16>
    %1241 = vector.shape_cast %1240 : vector<1x1x1x2x128xbf16> to vector<2x128xbf16>
    %1242 = arith.extf %1241 : vector<2x128xbf16> to vector<2x128xf32>
    %1243 = arith.maximumf %1239, %1242 : vector<2x128xf32>
    %c0_795 = arith.constant 0 : index
    %c3_796 = arith.constant 3 : index
    %c9_797 = arith.constant 9 : index
    %c0_798 = arith.constant 0 : index
    %c0_799 = arith.constant 0 : index
    %1244 = vector.load %arg5[%c0_795, %c3_796, %c9_797, %c0_798, %c0_799] : memref<1x4x17x2x128xbf16, #tpu.memory_space<vmem>>, vector<1x1x1x2x128xbf16>
    %1245 = vector.shape_cast %1244 : vector<1x1x1x2x128xbf16> to vector<2x128xbf16>
    %1246 = arith.extf %1245 : vector<2x128xbf16> to vector<2x128xf32>
    %1247 = arith.maximumf %1243, %1246 : vector<2x128xf32>
    %c0_800 = arith.constant 0 : index
    %c3_801 = arith.constant 3 : index
    %c10_802 = arith.constant 10 : index
    %c0_803 = arith.constant 0 : index
    %c0_804 = arith.constant 0 : index
    %1248 = vector.load %arg5[%c0_800, %c3_801, %c10_802, %c0_803, %c0_804] : memref<1x4x17x2x128xbf16, #tpu.memory_space<vmem>>, vector<1x1x1x2x128xbf16>
    %1249 = vector.shape_cast %1248 : vector<1x1x1x2x128xbf16> to vector<2x128xbf16>
    %1250 = arith.extf %1249 : vector<2x128xbf16> to vector<2x128xf32>
    %1251 = arith.maximumf %1247, %1250 : vector<2x128xf32>
    %c0_805 = arith.constant 0 : index
    %c3_806 = arith.constant 3 : index
    %c11_807 = arith.constant 11 : index
    %c0_808 = arith.constant 0 : index
    %c0_809 = arith.constant 0 : index
    %1252 = vector.load %arg5[%c0_805, %c3_806, %c11_807, %c0_808, %c0_809] : memref<1x4x17x2x128xbf16, #tpu.memory_space<vmem>>, vector<1x1x1x2x128xbf16>
    %1253 = vector.shape_cast %1252 : vector<1x1x1x2x128xbf16> to vector<2x128xbf16>
    %1254 = arith.extf %1253 : vector<2x128xbf16> to vector<2x128xf32>
    %1255 = arith.maximumf %1251, %1254 : vector<2x128xf32>
    %c0_810 = arith.constant 0 : index
    %c3_811 = arith.constant 3 : index
    %c12_812 = arith.constant 12 : index
    %c0_813 = arith.constant 0 : index
    %c0_814 = arith.constant 0 : index
    %1256 = vector.load %arg5[%c0_810, %c3_811, %c12_812, %c0_813, %c0_814] : memref<1x4x17x2x128xbf16, #tpu.memory_space<vmem>>, vector<1x1x1x2x128xbf16>
    %1257 = vector.shape_cast %1256 : vector<1x1x1x2x128xbf16> to vector<2x128xbf16>
    %1258 = arith.extf %1257 : vector<2x128xbf16> to vector<2x128xf32>
    %1259 = arith.maximumf %1255, %1258 : vector<2x128xf32>
    %c0_815 = arith.constant 0 : index
    %c3_816 = arith.constant 3 : index
    %c13_817 = arith.constant 13 : index
    %c0_818 = arith.constant 0 : index
    %c0_819 = arith.constant 0 : index
    %1260 = vector.load %arg5[%c0_815, %c3_816, %c13_817, %c0_818, %c0_819] : memref<1x4x17x2x128xbf16, #tpu.memory_space<vmem>>, vector<1x1x1x2x128xbf16>
    %1261 = vector.shape_cast %1260 : vector<1x1x1x2x128xbf16> to vector<2x128xbf16>
    %1262 = arith.extf %1261 : vector<2x128xbf16> to vector<2x128xf32>
    %1263 = arith.maximumf %1259, %1262 : vector<2x128xf32>
    %c0_820 = arith.constant 0 : index
    %c3_821 = arith.constant 3 : index
    %c14_822 = arith.constant 14 : index
    %c0_823 = arith.constant 0 : index
    %c0_824 = arith.constant 0 : index
    %1264 = vector.load %arg5[%c0_820, %c3_821, %c14_822, %c0_823, %c0_824] : memref<1x4x17x2x128xbf16, #tpu.memory_space<vmem>>, vector<1x1x1x2x128xbf16>
    %1265 = vector.shape_cast %1264 : vector<1x1x1x2x128xbf16> to vector<2x128xbf16>
    %1266 = arith.extf %1265 : vector<2x128xbf16> to vector<2x128xf32>
    %1267 = arith.maximumf %1263, %1266 : vector<2x128xf32>
    %c0_825 = arith.constant 0 : index
    %c3_826 = arith.constant 3 : index
    %c15_827 = arith.constant 15 : index
    %c0_828 = arith.constant 0 : index
    %c0_829 = arith.constant 0 : index
    %1268 = vector.load %arg5[%c0_825, %c3_826, %c15_827, %c0_828, %c0_829] : memref<1x4x17x2x128xbf16, #tpu.memory_space<vmem>>, vector<1x1x1x2x128xbf16>
    %1269 = vector.shape_cast %1268 : vector<1x1x1x2x128xbf16> to vector<2x128xbf16>
    %1270 = arith.extf %1269 : vector<2x128xbf16> to vector<2x128xf32>
    %1271 = arith.maximumf %1267, %1270 : vector<2x128xf32>
    %c0_830 = arith.constant 0 : index
    %c3_831 = arith.constant 3 : index
    %c16_832 = arith.constant 16 : index
    %c0_833 = arith.constant 0 : index
    %c0_834 = arith.constant 0 : index
    %1272 = vector.load %arg5[%c0_830, %c3_831, %c16_832, %c0_833, %c0_834] : memref<1x4x17x2x128xbf16, #tpu.memory_space<vmem>>, vector<1x1x1x2x128xbf16>
    %1273 = vector.shape_cast %1272 : vector<1x1x1x2x128xbf16> to vector<2x128xbf16>
    %1274 = arith.extf %1273 : vector<2x128xbf16> to vector<2x128xf32>
    %1275 = arith.maximumf %1271, %1274 : vector<2x128xf32>
    %cst_835 = arith.constant 0.000000e+00 : f32
    %1276 = vector.broadcast %cst_835 : f32 to vector<2x128xf32>
    %cst_836 = arith.constant 0.000000e+00 : f32
    %1277 = vector.broadcast %cst_836 : f32 to vector<2x128xf32>
    %c0_837 = arith.constant 0 : index
    %c3_838 = arith.constant 3 : index
    %c0_839 = arith.constant 0 : index
    %c0_840 = arith.constant 0 : index
    %c0_841 = arith.constant 0 : index
    %1278 = vector.load %arg5[%c0_837, %c3_838, %c0_839, %c0_840, %c0_841] : memref<1x4x17x2x128xbf16, #tpu.memory_space<vmem>>, vector<1x1x1x2x128xbf16>
    %1279 = vector.shape_cast %1278 : vector<1x1x1x2x128xbf16> to vector<2x128xbf16>
    %1280 = arith.extf %1279 : vector<2x128xbf16> to vector<2x128xf32>
    %1281 = arith.subf %1280, %1275 : vector<2x128xf32>
    %1282 = math.exp %1281 : vector<2x128xf32>
    %1283 = arith.addf %1276, %1282 : vector<2x128xf32>
    %cst_842 = arith.constant 0.000000e+00 : f32
    %1284 = vector.broadcast %cst_842 : f32 to vector<2x128xf32>
    %1285 = arith.subf %1208, %1284 : vector<2x128xf32>
    %1286 = math.absf %1285 : vector<2x128xf32>
    %cst_843 = arith.constant 1.000000e+00 : f32
    %1287 = vector.broadcast %cst_843 : f32 to vector<2x128xf32>
    %1288 = arith.subf %1287, %1286 : vector<2x128xf32>
    %cst_844 = arith.constant 0.000000e+00 : f32
    %1289 = vector.broadcast %cst_844 : f32 to vector<2x128xf32>
    %1290 = arith.maximumf %1288, %1289 : vector<2x128xf32>
    %1291 = arith.mulf %1280, %1290 : vector<2x128xf32>
    %1292 = arith.addf %1277, %1291 : vector<2x128xf32>
    %c0_845 = arith.constant 0 : index
    %c3_846 = arith.constant 3 : index
    %c1_847 = arith.constant 1 : index
    %c0_848 = arith.constant 0 : index
    %c0_849 = arith.constant 0 : index
    %1293 = vector.load %arg5[%c0_845, %c3_846, %c1_847, %c0_848, %c0_849] : memref<1x4x17x2x128xbf16, #tpu.memory_space<vmem>>, vector<1x1x1x2x128xbf16>
    %1294 = vector.shape_cast %1293 : vector<1x1x1x2x128xbf16> to vector<2x128xbf16>
    %1295 = arith.extf %1294 : vector<2x128xbf16> to vector<2x128xf32>
    %1296 = arith.subf %1295, %1275 : vector<2x128xf32>
    %1297 = math.exp %1296 : vector<2x128xf32>
    %1298 = arith.addf %1283, %1297 : vector<2x128xf32>
    %cst_850 = arith.constant 1.000000e+00 : f32
    %1299 = vector.broadcast %cst_850 : f32 to vector<2x128xf32>
    %1300 = arith.subf %1208, %1299 : vector<2x128xf32>
    %1301 = math.absf %1300 : vector<2x128xf32>
    %cst_851 = arith.constant 1.000000e+00 : f32
    %1302 = vector.broadcast %cst_851 : f32 to vector<2x128xf32>
    %1303 = arith.subf %1302, %1301 : vector<2x128xf32>
    %cst_852 = arith.constant 0.000000e+00 : f32
    %1304 = vector.broadcast %cst_852 : f32 to vector<2x128xf32>
    %1305 = arith.maximumf %1303, %1304 : vector<2x128xf32>
    %1306 = arith.mulf %1295, %1305 : vector<2x128xf32>
    %1307 = arith.addf %1292, %1306 : vector<2x128xf32>
    %c0_853 = arith.constant 0 : index
    %c3_854 = arith.constant 3 : index
    %c2_855 = arith.constant 2 : index
    %c0_856 = arith.constant 0 : index
    %c0_857 = arith.constant 0 : index
    %1308 = vector.load %arg5[%c0_853, %c3_854, %c2_855, %c0_856, %c0_857] : memref<1x4x17x2x128xbf16, #tpu.memory_space<vmem>>, vector<1x1x1x2x128xbf16>
    %1309 = vector.shape_cast %1308 : vector<1x1x1x2x128xbf16> to vector<2x128xbf16>
    %1310 = arith.extf %1309 : vector<2x128xbf16> to vector<2x128xf32>
    %1311 = arith.subf %1310, %1275 : vector<2x128xf32>
    %1312 = math.exp %1311 : vector<2x128xf32>
    %1313 = arith.addf %1298, %1312 : vector<2x128xf32>
    %cst_858 = arith.constant 2.000000e+00 : f32
    %1314 = vector.broadcast %cst_858 : f32 to vector<2x128xf32>
    %1315 = arith.subf %1208, %1314 : vector<2x128xf32>
    %1316 = math.absf %1315 : vector<2x128xf32>
    %cst_859 = arith.constant 1.000000e+00 : f32
    %1317 = vector.broadcast %cst_859 : f32 to vector<2x128xf32>
    %1318 = arith.subf %1317, %1316 : vector<2x128xf32>
    %cst_860 = arith.constant 0.000000e+00 : f32
    %1319 = vector.broadcast %cst_860 : f32 to vector<2x128xf32>
    %1320 = arith.maximumf %1318, %1319 : vector<2x128xf32>
    %1321 = arith.mulf %1310, %1320 : vector<2x128xf32>
    %1322 = arith.addf %1307, %1321 : vector<2x128xf32>
    %c0_861 = arith.constant 0 : index
    %c3_862 = arith.constant 3 : index
    %c3_863 = arith.constant 3 : index
    %c0_864 = arith.constant 0 : index
    %c0_865 = arith.constant 0 : index
    %1323 = vector.load %arg5[%c0_861, %c3_862, %c3_863, %c0_864, %c0_865] : memref<1x4x17x2x128xbf16, #tpu.memory_space<vmem>>, vector<1x1x1x2x128xbf16>
    %1324 = vector.shape_cast %1323 : vector<1x1x1x2x128xbf16> to vector<2x128xbf16>
    %1325 = arith.extf %1324 : vector<2x128xbf16> to vector<2x128xf32>
    %1326 = arith.subf %1325, %1275 : vector<2x128xf32>
    %1327 = math.exp %1326 : vector<2x128xf32>
    %1328 = arith.addf %1313, %1327 : vector<2x128xf32>
    %cst_866 = arith.constant 3.000000e+00 : f32
    %1329 = vector.broadcast %cst_866 : f32 to vector<2x128xf32>
    %1330 = arith.subf %1208, %1329 : vector<2x128xf32>
    %1331 = math.absf %1330 : vector<2x128xf32>
    %cst_867 = arith.constant 1.000000e+00 : f32
    %1332 = vector.broadcast %cst_867 : f32 to vector<2x128xf32>
    %1333 = arith.subf %1332, %1331 : vector<2x128xf32>
    %cst_868 = arith.constant 0.000000e+00 : f32
    %1334 = vector.broadcast %cst_868 : f32 to vector<2x128xf32>
    %1335 = arith.maximumf %1333, %1334 : vector<2x128xf32>
    %1336 = arith.mulf %1325, %1335 : vector<2x128xf32>
    %1337 = arith.addf %1322, %1336 : vector<2x128xf32>
    %c0_869 = arith.constant 0 : index
    %c3_870 = arith.constant 3 : index
    %c4_871 = arith.constant 4 : index
    %c0_872 = arith.constant 0 : index
    %c0_873 = arith.constant 0 : index
    %1338 = vector.load %arg5[%c0_869, %c3_870, %c4_871, %c0_872, %c0_873] : memref<1x4x17x2x128xbf16, #tpu.memory_space<vmem>>, vector<1x1x1x2x128xbf16>
    %1339 = vector.shape_cast %1338 : vector<1x1x1x2x128xbf16> to vector<2x128xbf16>
    %1340 = arith.extf %1339 : vector<2x128xbf16> to vector<2x128xf32>
    %1341 = arith.subf %1340, %1275 : vector<2x128xf32>
    %1342 = math.exp %1341 : vector<2x128xf32>
    %1343 = arith.addf %1328, %1342 : vector<2x128xf32>
    %cst_874 = arith.constant 4.000000e+00 : f32
    %1344 = vector.broadcast %cst_874 : f32 to vector<2x128xf32>
    %1345 = arith.subf %1208, %1344 : vector<2x128xf32>
    %1346 = math.absf %1345 : vector<2x128xf32>
    %cst_875 = arith.constant 1.000000e+00 : f32
    %1347 = vector.broadcast %cst_875 : f32 to vector<2x128xf32>
    %1348 = arith.subf %1347, %1346 : vector<2x128xf32>
    %cst_876 = arith.constant 0.000000e+00 : f32
    %1349 = vector.broadcast %cst_876 : f32 to vector<2x128xf32>
    %1350 = arith.maximumf %1348, %1349 : vector<2x128xf32>
    %1351 = arith.mulf %1340, %1350 : vector<2x128xf32>
    %1352 = arith.addf %1337, %1351 : vector<2x128xf32>
    %c0_877 = arith.constant 0 : index
    %c3_878 = arith.constant 3 : index
    %c5_879 = arith.constant 5 : index
    %c0_880 = arith.constant 0 : index
    %c0_881 = arith.constant 0 : index
    %1353 = vector.load %arg5[%c0_877, %c3_878, %c5_879, %c0_880, %c0_881] : memref<1x4x17x2x128xbf16, #tpu.memory_space<vmem>>, vector<1x1x1x2x128xbf16>
    %1354 = vector.shape_cast %1353 : vector<1x1x1x2x128xbf16> to vector<2x128xbf16>
    %1355 = arith.extf %1354 : vector<2x128xbf16> to vector<2x128xf32>
    %1356 = arith.subf %1355, %1275 : vector<2x128xf32>
    %1357 = math.exp %1356 : vector<2x128xf32>
    %1358 = arith.addf %1343, %1357 : vector<2x128xf32>
    %cst_882 = arith.constant 5.000000e+00 : f32
    %1359 = vector.broadcast %cst_882 : f32 to vector<2x128xf32>
    %1360 = arith.subf %1208, %1359 : vector<2x128xf32>
    %1361 = math.absf %1360 : vector<2x128xf32>
    %cst_883 = arith.constant 1.000000e+00 : f32
    %1362 = vector.broadcast %cst_883 : f32 to vector<2x128xf32>
    %1363 = arith.subf %1362, %1361 : vector<2x128xf32>
    %cst_884 = arith.constant 0.000000e+00 : f32
    %1364 = vector.broadcast %cst_884 : f32 to vector<2x128xf32>
    %1365 = arith.maximumf %1363, %1364 : vector<2x128xf32>
    %1366 = arith.mulf %1355, %1365 : vector<2x128xf32>
    %1367 = arith.addf %1352, %1366 : vector<2x128xf32>
    %c0_885 = arith.constant 0 : index
    %c3_886 = arith.constant 3 : index
    %c6_887 = arith.constant 6 : index
    %c0_888 = arith.constant 0 : index
    %c0_889 = arith.constant 0 : index
    %1368 = vector.load %arg5[%c0_885, %c3_886, %c6_887, %c0_888, %c0_889] : memref<1x4x17x2x128xbf16, #tpu.memory_space<vmem>>, vector<1x1x1x2x128xbf16>
    %1369 = vector.shape_cast %1368 : vector<1x1x1x2x128xbf16> to vector<2x128xbf16>
    %1370 = arith.extf %1369 : vector<2x128xbf16> to vector<2x128xf32>
    %1371 = arith.subf %1370, %1275 : vector<2x128xf32>
    %1372 = math.exp %1371 : vector<2x128xf32>
    %1373 = arith.addf %1358, %1372 : vector<2x128xf32>
    %cst_890 = arith.constant 6.000000e+00 : f32
    %1374 = vector.broadcast %cst_890 : f32 to vector<2x128xf32>
    %1375 = arith.subf %1208, %1374 : vector<2x128xf32>
    %1376 = math.absf %1375 : vector<2x128xf32>
    %cst_891 = arith.constant 1.000000e+00 : f32
    %1377 = vector.broadcast %cst_891 : f32 to vector<2x128xf32>
    %1378 = arith.subf %1377, %1376 : vector<2x128xf32>
    %cst_892 = arith.constant 0.000000e+00 : f32
    %1379 = vector.broadcast %cst_892 : f32 to vector<2x128xf32>
    %1380 = arith.maximumf %1378, %1379 : vector<2x128xf32>
    %1381 = arith.mulf %1370, %1380 : vector<2x128xf32>
    %1382 = arith.addf %1367, %1381 : vector<2x128xf32>
    %c0_893 = arith.constant 0 : index
    %c3_894 = arith.constant 3 : index
    %c7_895 = arith.constant 7 : index
    %c0_896 = arith.constant 0 : index
    %c0_897 = arith.constant 0 : index
    %1383 = vector.load %arg5[%c0_893, %c3_894, %c7_895, %c0_896, %c0_897] : memref<1x4x17x2x128xbf16, #tpu.memory_space<vmem>>, vector<1x1x1x2x128xbf16>
    %1384 = vector.shape_cast %1383 : vector<1x1x1x2x128xbf16> to vector<2x128xbf16>
    %1385 = arith.extf %1384 : vector<2x128xbf16> to vector<2x128xf32>
    %1386 = arith.subf %1385, %1275 : vector<2x128xf32>
    %1387 = math.exp %1386 : vector<2x128xf32>
    %1388 = arith.addf %1373, %1387 : vector<2x128xf32>
    %cst_898 = arith.constant 7.000000e+00 : f32
    %1389 = vector.broadcast %cst_898 : f32 to vector<2x128xf32>
    %1390 = arith.subf %1208, %1389 : vector<2x128xf32>
    %1391 = math.absf %1390 : vector<2x128xf32>
    %cst_899 = arith.constant 1.000000e+00 : f32
    %1392 = vector.broadcast %cst_899 : f32 to vector<2x128xf32>
    %1393 = arith.subf %1392, %1391 : vector<2x128xf32>
    %cst_900 = arith.constant 0.000000e+00 : f32
    %1394 = vector.broadcast %cst_900 : f32 to vector<2x128xf32>
    %1395 = arith.maximumf %1393, %1394 : vector<2x128xf32>
    %1396 = arith.mulf %1385, %1395 : vector<2x128xf32>
    %1397 = arith.addf %1382, %1396 : vector<2x128xf32>
    %c0_901 = arith.constant 0 : index
    %c3_902 = arith.constant 3 : index
    %c8_903 = arith.constant 8 : index
    %c0_904 = arith.constant 0 : index
    %c0_905 = arith.constant 0 : index
    %1398 = vector.load %arg5[%c0_901, %c3_902, %c8_903, %c0_904, %c0_905] : memref<1x4x17x2x128xbf16, #tpu.memory_space<vmem>>, vector<1x1x1x2x128xbf16>
    %1399 = vector.shape_cast %1398 : vector<1x1x1x2x128xbf16> to vector<2x128xbf16>
    %1400 = arith.extf %1399 : vector<2x128xbf16> to vector<2x128xf32>
    %1401 = arith.subf %1400, %1275 : vector<2x128xf32>
    %1402 = math.exp %1401 : vector<2x128xf32>
    %1403 = arith.addf %1388, %1402 : vector<2x128xf32>
    %cst_906 = arith.constant 8.000000e+00 : f32
    %1404 = vector.broadcast %cst_906 : f32 to vector<2x128xf32>
    %1405 = arith.subf %1208, %1404 : vector<2x128xf32>
    %1406 = math.absf %1405 : vector<2x128xf32>
    %cst_907 = arith.constant 1.000000e+00 : f32
    %1407 = vector.broadcast %cst_907 : f32 to vector<2x128xf32>
    %1408 = arith.subf %1407, %1406 : vector<2x128xf32>
    %cst_908 = arith.constant 0.000000e+00 : f32
    %1409 = vector.broadcast %cst_908 : f32 to vector<2x128xf32>
    %1410 = arith.maximumf %1408, %1409 : vector<2x128xf32>
    %1411 = arith.mulf %1400, %1410 : vector<2x128xf32>
    %1412 = arith.addf %1397, %1411 : vector<2x128xf32>
    %c0_909 = arith.constant 0 : index
    %c3_910 = arith.constant 3 : index
    %c9_911 = arith.constant 9 : index
    %c0_912 = arith.constant 0 : index
    %c0_913 = arith.constant 0 : index
    %1413 = vector.load %arg5[%c0_909, %c3_910, %c9_911, %c0_912, %c0_913] : memref<1x4x17x2x128xbf16, #tpu.memory_space<vmem>>, vector<1x1x1x2x128xbf16>
    %1414 = vector.shape_cast %1413 : vector<1x1x1x2x128xbf16> to vector<2x128xbf16>
    %1415 = arith.extf %1414 : vector<2x128xbf16> to vector<2x128xf32>
    %1416 = arith.subf %1415, %1275 : vector<2x128xf32>
    %1417 = math.exp %1416 : vector<2x128xf32>
    %1418 = arith.addf %1403, %1417 : vector<2x128xf32>
    %cst_914 = arith.constant 9.000000e+00 : f32
    %1419 = vector.broadcast %cst_914 : f32 to vector<2x128xf32>
    %1420 = arith.subf %1208, %1419 : vector<2x128xf32>
    %1421 = math.absf %1420 : vector<2x128xf32>
    %cst_915 = arith.constant 1.000000e+00 : f32
    %1422 = vector.broadcast %cst_915 : f32 to vector<2x128xf32>
    %1423 = arith.subf %1422, %1421 : vector<2x128xf32>
    %cst_916 = arith.constant 0.000000e+00 : f32
    %1424 = vector.broadcast %cst_916 : f32 to vector<2x128xf32>
    %1425 = arith.maximumf %1423, %1424 : vector<2x128xf32>
    %1426 = arith.mulf %1415, %1425 : vector<2x128xf32>
    %1427 = arith.addf %1412, %1426 : vector<2x128xf32>
    %c0_917 = arith.constant 0 : index
    %c3_918 = arith.constant 3 : index
    %c10_919 = arith.constant 10 : index
    %c0_920 = arith.constant 0 : index
    %c0_921 = arith.constant 0 : index
    %1428 = vector.load %arg5[%c0_917, %c3_918, %c10_919, %c0_920, %c0_921] : memref<1x4x17x2x128xbf16, #tpu.memory_space<vmem>>, vector<1x1x1x2x128xbf16>
    %1429 = vector.shape_cast %1428 : vector<1x1x1x2x128xbf16> to vector<2x128xbf16>
    %1430 = arith.extf %1429 : vector<2x128xbf16> to vector<2x128xf32>
    %1431 = arith.subf %1430, %1275 : vector<2x128xf32>
    %1432 = math.exp %1431 : vector<2x128xf32>
    %1433 = arith.addf %1418, %1432 : vector<2x128xf32>
    %cst_922 = arith.constant 1.000000e+01 : f32
    %1434 = vector.broadcast %cst_922 : f32 to vector<2x128xf32>
    %1435 = arith.subf %1208, %1434 : vector<2x128xf32>
    %1436 = math.absf %1435 : vector<2x128xf32>
    %cst_923 = arith.constant 1.000000e+00 : f32
    %1437 = vector.broadcast %cst_923 : f32 to vector<2x128xf32>
    %1438 = arith.subf %1437, %1436 : vector<2x128xf32>
    %cst_924 = arith.constant 0.000000e+00 : f32
    %1439 = vector.broadcast %cst_924 : f32 to vector<2x128xf32>
    %1440 = arith.maximumf %1438, %1439 : vector<2x128xf32>
    %1441 = arith.mulf %1430, %1440 : vector<2x128xf32>
    %1442 = arith.addf %1427, %1441 : vector<2x128xf32>
    %c0_925 = arith.constant 0 : index
    %c3_926 = arith.constant 3 : index
    %c11_927 = arith.constant 11 : index
    %c0_928 = arith.constant 0 : index
    %c0_929 = arith.constant 0 : index
    %1443 = vector.load %arg5[%c0_925, %c3_926, %c11_927, %c0_928, %c0_929] : memref<1x4x17x2x128xbf16, #tpu.memory_space<vmem>>, vector<1x1x1x2x128xbf16>
    %1444 = vector.shape_cast %1443 : vector<1x1x1x2x128xbf16> to vector<2x128xbf16>
    %1445 = arith.extf %1444 : vector<2x128xbf16> to vector<2x128xf32>
    %1446 = arith.subf %1445, %1275 : vector<2x128xf32>
    %1447 = math.exp %1446 : vector<2x128xf32>
    %1448 = arith.addf %1433, %1447 : vector<2x128xf32>
    %cst_930 = arith.constant 1.100000e+01 : f32
    %1449 = vector.broadcast %cst_930 : f32 to vector<2x128xf32>
    %1450 = arith.subf %1208, %1449 : vector<2x128xf32>
    %1451 = math.absf %1450 : vector<2x128xf32>
    %cst_931 = arith.constant 1.000000e+00 : f32
    %1452 = vector.broadcast %cst_931 : f32 to vector<2x128xf32>
    %1453 = arith.subf %1452, %1451 : vector<2x128xf32>
    %cst_932 = arith.constant 0.000000e+00 : f32
    %1454 = vector.broadcast %cst_932 : f32 to vector<2x128xf32>
    %1455 = arith.maximumf %1453, %1454 : vector<2x128xf32>
    %1456 = arith.mulf %1445, %1455 : vector<2x128xf32>
    %1457 = arith.addf %1442, %1456 : vector<2x128xf32>
    %c0_933 = arith.constant 0 : index
    %c3_934 = arith.constant 3 : index
    %c12_935 = arith.constant 12 : index
    %c0_936 = arith.constant 0 : index
    %c0_937 = arith.constant 0 : index
    %1458 = vector.load %arg5[%c0_933, %c3_934, %c12_935, %c0_936, %c0_937] : memref<1x4x17x2x128xbf16, #tpu.memory_space<vmem>>, vector<1x1x1x2x128xbf16>
    %1459 = vector.shape_cast %1458 : vector<1x1x1x2x128xbf16> to vector<2x128xbf16>
    %1460 = arith.extf %1459 : vector<2x128xbf16> to vector<2x128xf32>
    %1461 = arith.subf %1460, %1275 : vector<2x128xf32>
    %1462 = math.exp %1461 : vector<2x128xf32>
    %1463 = arith.addf %1448, %1462 : vector<2x128xf32>
    %cst_938 = arith.constant 1.200000e+01 : f32
    %1464 = vector.broadcast %cst_938 : f32 to vector<2x128xf32>
    %1465 = arith.subf %1208, %1464 : vector<2x128xf32>
    %1466 = math.absf %1465 : vector<2x128xf32>
    %cst_939 = arith.constant 1.000000e+00 : f32
    %1467 = vector.broadcast %cst_939 : f32 to vector<2x128xf32>
    %1468 = arith.subf %1467, %1466 : vector<2x128xf32>
    %cst_940 = arith.constant 0.000000e+00 : f32
    %1469 = vector.broadcast %cst_940 : f32 to vector<2x128xf32>
    %1470 = arith.maximumf %1468, %1469 : vector<2x128xf32>
    %1471 = arith.mulf %1460, %1470 : vector<2x128xf32>
    %1472 = arith.addf %1457, %1471 : vector<2x128xf32>
    %c0_941 = arith.constant 0 : index
    %c3_942 = arith.constant 3 : index
    %c13_943 = arith.constant 13 : index
    %c0_944 = arith.constant 0 : index
    %c0_945 = arith.constant 0 : index
    %1473 = vector.load %arg5[%c0_941, %c3_942, %c13_943, %c0_944, %c0_945] : memref<1x4x17x2x128xbf16, #tpu.memory_space<vmem>>, vector<1x1x1x2x128xbf16>
    %1474 = vector.shape_cast %1473 : vector<1x1x1x2x128xbf16> to vector<2x128xbf16>
    %1475 = arith.extf %1474 : vector<2x128xbf16> to vector<2x128xf32>
    %1476 = arith.subf %1475, %1275 : vector<2x128xf32>
    %1477 = math.exp %1476 : vector<2x128xf32>
    %1478 = arith.addf %1463, %1477 : vector<2x128xf32>
    %cst_946 = arith.constant 1.300000e+01 : f32
    %1479 = vector.broadcast %cst_946 : f32 to vector<2x128xf32>
    %1480 = arith.subf %1208, %1479 : vector<2x128xf32>
    %1481 = math.absf %1480 : vector<2x128xf32>
    %cst_947 = arith.constant 1.000000e+00 : f32
    %1482 = vector.broadcast %cst_947 : f32 to vector<2x128xf32>
    %1483 = arith.subf %1482, %1481 : vector<2x128xf32>
    %cst_948 = arith.constant 0.000000e+00 : f32
    %1484 = vector.broadcast %cst_948 : f32 to vector<2x128xf32>
    %1485 = arith.maximumf %1483, %1484 : vector<2x128xf32>
    %1486 = arith.mulf %1475, %1485 : vector<2x128xf32>
    %1487 = arith.addf %1472, %1486 : vector<2x128xf32>
    %c0_949 = arith.constant 0 : index
    %c3_950 = arith.constant 3 : index
    %c14_951 = arith.constant 14 : index
    %c0_952 = arith.constant 0 : index
    %c0_953 = arith.constant 0 : index
    %1488 = vector.load %arg5[%c0_949, %c3_950, %c14_951, %c0_952, %c0_953] : memref<1x4x17x2x128xbf16, #tpu.memory_space<vmem>>, vector<1x1x1x2x128xbf16>
    %1489 = vector.shape_cast %1488 : vector<1x1x1x2x128xbf16> to vector<2x128xbf16>
    %1490 = arith.extf %1489 : vector<2x128xbf16> to vector<2x128xf32>
    %1491 = arith.subf %1490, %1275 : vector<2x128xf32>
    %1492 = math.exp %1491 : vector<2x128xf32>
    %1493 = arith.addf %1478, %1492 : vector<2x128xf32>
    %cst_954 = arith.constant 1.400000e+01 : f32
    %1494 = vector.broadcast %cst_954 : f32 to vector<2x128xf32>
    %1495 = arith.subf %1208, %1494 : vector<2x128xf32>
    %1496 = math.absf %1495 : vector<2x128xf32>
    %cst_955 = arith.constant 1.000000e+00 : f32
    %1497 = vector.broadcast %cst_955 : f32 to vector<2x128xf32>
    %1498 = arith.subf %1497, %1496 : vector<2x128xf32>
    %cst_956 = arith.constant 0.000000e+00 : f32
    %1499 = vector.broadcast %cst_956 : f32 to vector<2x128xf32>
    %1500 = arith.maximumf %1498, %1499 : vector<2x128xf32>
    %1501 = arith.mulf %1490, %1500 : vector<2x128xf32>
    %1502 = arith.addf %1487, %1501 : vector<2x128xf32>
    %c0_957 = arith.constant 0 : index
    %c3_958 = arith.constant 3 : index
    %c15_959 = arith.constant 15 : index
    %c0_960 = arith.constant 0 : index
    %c0_961 = arith.constant 0 : index
    %1503 = vector.load %arg5[%c0_957, %c3_958, %c15_959, %c0_960, %c0_961] : memref<1x4x17x2x128xbf16, #tpu.memory_space<vmem>>, vector<1x1x1x2x128xbf16>
    %1504 = vector.shape_cast %1503 : vector<1x1x1x2x128xbf16> to vector<2x128xbf16>
    %1505 = arith.extf %1504 : vector<2x128xbf16> to vector<2x128xf32>
    %1506 = arith.subf %1505, %1275 : vector<2x128xf32>
    %1507 = math.exp %1506 : vector<2x128xf32>
    %1508 = arith.addf %1493, %1507 : vector<2x128xf32>
    %cst_962 = arith.constant 1.500000e+01 : f32
    %1509 = vector.broadcast %cst_962 : f32 to vector<2x128xf32>
    %1510 = arith.subf %1208, %1509 : vector<2x128xf32>
    %1511 = math.absf %1510 : vector<2x128xf32>
    %cst_963 = arith.constant 1.000000e+00 : f32
    %1512 = vector.broadcast %cst_963 : f32 to vector<2x128xf32>
    %1513 = arith.subf %1512, %1511 : vector<2x128xf32>
    %cst_964 = arith.constant 0.000000e+00 : f32
    %1514 = vector.broadcast %cst_964 : f32 to vector<2x128xf32>
    %1515 = arith.maximumf %1513, %1514 : vector<2x128xf32>
    %1516 = arith.mulf %1505, %1515 : vector<2x128xf32>
    %1517 = arith.addf %1502, %1516 : vector<2x128xf32>
    %c0_965 = arith.constant 0 : index
    %c3_966 = arith.constant 3 : index
    %c16_967 = arith.constant 16 : index
    %c0_968 = arith.constant 0 : index
    %c0_969 = arith.constant 0 : index
    %1518 = vector.load %arg5[%c0_965, %c3_966, %c16_967, %c0_968, %c0_969] : memref<1x4x17x2x128xbf16, #tpu.memory_space<vmem>>, vector<1x1x1x2x128xbf16>
    %1519 = vector.shape_cast %1518 : vector<1x1x1x2x128xbf16> to vector<2x128xbf16>
    %1520 = arith.extf %1519 : vector<2x128xbf16> to vector<2x128xf32>
    %1521 = arith.subf %1520, %1275 : vector<2x128xf32>
    %1522 = math.exp %1521 : vector<2x128xf32>
    %1523 = arith.addf %1508, %1522 : vector<2x128xf32>
    %cst_970 = arith.constant 1.600000e+01 : f32
    %1524 = vector.broadcast %cst_970 : f32 to vector<2x128xf32>
    %1525 = arith.subf %1208, %1524 : vector<2x128xf32>
    %1526 = math.absf %1525 : vector<2x128xf32>
    %cst_971 = arith.constant 1.000000e+00 : f32
    %1527 = vector.broadcast %cst_971 : f32 to vector<2x128xf32>
    %1528 = arith.subf %1527, %1526 : vector<2x128xf32>
    %cst_972 = arith.constant 0.000000e+00 : f32
    %1529 = vector.broadcast %cst_972 : f32 to vector<2x128xf32>
    %1530 = arith.maximumf %1528, %1529 : vector<2x128xf32>
    %1531 = arith.mulf %1520, %1530 : vector<2x128xf32>
    %1532 = arith.addf %1517, %1531 : vector<2x128xf32>
    %1533 = math.log %1523 : vector<2x128xf32>
    %1534 = arith.addf %1275, %1533 : vector<2x128xf32>
    %1535 = arith.subf %1534, %1532 : vector<2x128xf32>
    %1536 = arith.addf %1204, %1535 : vector<2x128xf32>
    %cst_973 = arith.constant 2.500000e-01 : f32
    %1537 = vector.broadcast %cst_973 : f32 to vector<2x128xf32>
    %1538 = arith.mulf %1536, %1537 : vector<2x128xf32>
    %c0_974 = arith.constant 0 : index
    %c0_975 = arith.constant 0 : index
    %c0_976 = arith.constant 0 : index
    %1539 = vector.load %arg7[%c0_974, %c0_975, %c0_976] : memref<1x2x128xf32, #tpu.memory_space<vmem>>, vector<1x2x128xf32>
    %1540 = vector.shape_cast %1539 : vector<1x2x128xf32> to vector<2x128xf32>
    %1541 = vector.shape_cast %1538 : vector<2x128xf32> to vector<1x2x128xf32>
    tpu.vector_store %arg7[%c0_974, %c0_975, %c0_976], %1541 {strides = array<i32>} : memref<1x2x128xf32, #tpu.memory_space<vmem>>, vector<1x2x128xf32>,
    return
  }
  func.func @transform_0(%arg0: i32, %arg1: i32) -> (i32, i32, i32, i32) {
    %c0_i32 = arith.constant 0 : i32
    %c0_i32_0 = arith.constant 0 : i32
    %c0_i32_1 = arith.constant 0 : i32
    return %arg0, %c0_i32, %arg1, %c0_i32_0 : i32, i32, i32, i32
  }
  func.func @transform_1(%arg0: i32, %arg1: i32) -> (i32, i32, i32, i32) {
    %c0_i32 = arith.constant 0 : i32
    %c0_i32_0 = arith.constant 0 : i32
    %c0_i32_1 = arith.constant 0 : i32
    return %arg0, %c0_i32, %arg1, %c0_i32_0 : i32, i32, i32, i32
  }
  func.func @transform_2(%arg0: i32, %arg1: i32) -> (i32, i32, i32) {
    %c0_i32 = arith.constant 0 : i32
    %c0_i32_0 = arith.constant 0 : i32
    %c0_i32_1 = arith.constant 0 : i32
    return %c0_i32, %arg1, %c0_i32_0 : i32, i32, i32
  }
  func.func @transform_3(%arg0: i32, %arg1: i32) -> (i32, i32, i32, i32, i32) {
    %c0_i32 = arith.constant 0 : i32
    %c0_i32_0 = arith.constant 0 : i32
    %c0_i32_1 = arith.constant 0 : i32
    %c0_i32_2 = arith.constant 0 : i32
    return %arg0, %c0_i32, %c0_i32_0, %arg1, %c0_i32_1 : i32, i32, i32, i32, i32
  }
  func.func @transform_4(%arg0: i32, %arg1: i32) -> (i32, i32, i32) {
    %c0_i32 = arith.constant 0 : i32
    %c0_i32_0 = arith.constant 0 : i32
    return %arg0, %arg1, %c0_i32 : i32, i32, i32
  }
  func.func @transform_5(%arg0: i32, %arg1: i32) -> (i32, i32, i32) {
    %c0_i32 = arith.constant 0 : i32
    %c0_i32_0 = arith.constant 0 : i32
    return %arg0, %arg1, %c0_i32 : i32, i32, i32
  }
}

</mosaic_0001>

<bundles_post_ra>
// kernel: tpu_custom_call.1
= control target key start
LH: loop header
LB: loop body
LE: loop exit
PB: predicated region body
PF: predicated region fallthrough
CT: control target
= control target key end

     0   :  { %s3530_s0 = inlined_call_operand.hbm [shape: f32[2,4,2,128], index: 0, kind: input, shape index: {}]   ;;  %s3531_s1 = inlined_call_operand.hbm [shape: f32[2,4,2,128], index: 1, kind: input, shape index: {}]   ;;  %s3532_s2 = inlined_call_operand.vmem [shape: f32[2,2,128], index: 2, kind: input, shape index: {}]   ;;  %s3533_s3 = inlined_call_operand.hbm [shape: bf16[2,4,17,2,128], index: 3, kind: input, shape index: {}]   ;;  %s3534_s4 = inlined_call_operand.hbm [shape: f32[2,2,128], index: 4, kind: output, shape index: {0}]   ;;  %s3535_s5 = inlined_call_operand.hbm [shape: f32[2,2,128], index: 5, kind: output, shape index: {1}]  }
   0x1   :  { %3546 = sst [smem:[#allocation19_spill]] %s3531_s1 }
   0x2   :  { %11 = vsyncpa [#allocation3], 0 }
   0x3   :  { %13 = vsyncpa [#allocation3 + $0x1], 0 }
   0x4   :  { %14 = vsyncpa [#allocation6], 0 }
   0x5   :  { %16 = vsyncpa [#allocation6 + $0x1], 0 }
   0x6   :  { %17 = vsyncpa [#allocation4], 0 }
   0x7   :  { %19 = vsyncpa [#allocation4 + $0x1], 0 }
   0x8   :  { %20 = vsyncpa [#allocation10], 0 }
   0x9   :  { %22 = vsyncpa [#allocation10 + $0x1], 0  ;;  %s2385_s18 = smov 0   ;;  %s2387_s19 = smov 0  }
   0xa   :  { %s2389_s20 = smov 0   ;;  %s2391_s21 = smov 0  }
   0xb   :  { %s2393_s22 = smov 0   ;;  %s2395_s23 = smov 0  }
   0xc LB: > { %3547 = sst [smem:[#allocation15_spill]] %s2329_s20  ;;  %s2416_s24 = sadd.s32 4294967295, %s2341_s23   ;;  %s2341_s23 = sphi %s2395_s23, %s28_s23   ;;  %s2337_s22 = sphi %s2393_s22, %s3581_s22   ;;  %s2333_s21 = sphi %s2391_s21, %s3580_s21   ;;  %s2329_s20 = sphi %s2389_s20, %s3576_s20   ;;  %s2325_s19 = sphi %s2387_s19, %s3579_s19   ;;  %s2321_s18 = sphi %s2385_s18, %s3578_s18  }
   0xd   : > { %3548 = sst [smem:[#allocation16_spill]] %s2341_s23  ;;  %s1715_s25 = sadd.s32 4294967294, %s2341_s23  }
   0xe   : > { %s40_s26 = sadd.s32 1, %s2337_s22  ;;  %s49_s27 = sadd.s32 1, %s2329_s20 }
   0xf   : > { %p42_p0 = scmp.ge.s32.totalorder %s40_s26, 2  ;;  %p56_p1 = scmp.ne.s32.totalorder %s2329_s20, %s2325_s19 }
  0x10   : > { %p57_p2 = scmp.eq.s32.totalorder %s2341_s23, 0  ;;  %p62_p3 = scmp.ne.s32.totalorder %s2325_s19, %s2321_s18 }
  0x11   : > { %s3583_s26 = smov (%p42_p0, %s40_s26), 0  ;;  %p63_p5 = scmp.eq.s32.totalorder %s2416_s24, 0 }
  0x12   : > { %3549 = sst [smem:[#allocation17_spill]] %s3583_s26  ;;  %p2428_p4 = por %p57_p2, %p56_p1 }
  0x13   : > { %s44_s29 = ssub.s32 %s2337_s22, %s3583_s26  ;;  %p170_p6 = scmp.eq.s32.totalorder %s2416_s24, 1 }
  0x14   : > { %p47_p7 = scmp.eq.s32.totalorder %s44_s29, 0  ;;  %p2436_p8 = por %p63_p5, %p62_p3 }
  0x15   : > { %p2440_p9 = por %p170_p6, %p56_p1  ;;  %p176_p10 = scmp.eq.s32.totalorder %s1715_s25, 1 }
  0x16   : > { %s3551_s30 = scalar_select %p2436_p8, 1, 0 }
  0x17   : > { %s3552_s6 = scalar_select %p2440_p9, 1, 0 }
  0x18   : > { %s2445_s7 = scalar_select %p47_p7, %s2329_s20, %s49_s27  }
  0x19   : > { %p2447_p11 = por %p176_p10, %p62_p3  ;;  %p1913_p13 = scmp.lt.s32.totalorder %s2341_s23, 2 }
  0x1a   : > { %3553 = sst [smem:[#allocation18_spill]] %s2445_s7  ;;  %s2454_s9 = sand.u32 1, %s2329_s20  }
  0x1b   : > { %s3554_s8 = scalar_select %p2447_p11, 1, 0 }
  0x1c   : > { %s3536_s10 = sshll.u32 %s2454_s9, 3  ;;  %s3537_s11 = sshll.u32 %s2337_s22, 7 }
  0x1d   : > { %p2460_p0 = pnand %p1913_p13, %p2428_p4  ;;  %s253_s13 = sand.u32 1, %s2341_s23  }
  0x1e   : > { %s3556_s1 = sld [smem:[#allocation19_spill]]  ;;  %s257_s17 = scalar_lea.vmem [#allocation5], %s3536_s10 }
  0x1f   : > { %s265_s25 = sshll.u32 %s257_s17, 4  ;;  %s2478_s27 = scalar_lea.sflag [#allocation6], %s253_s13  ;;  %s2475_s25 = int_to_ptr.vmem [resolvable:$true] %s265_s25 }
  0x20   : > { %p2484_p4 = pneg %p2460_p0 }
  0x24   : > { %s2470_s16 = scalar_lea.hbm %s3556_s1, %s3537_s11  ;;  %s2138_s17 = scalar_lea.hbm %s3556_s1, 256 }
  0x25   : > { %s2133_s28 = scalar_lea.hbm %s2470_s16, 128  ;;  %p2139_p7 = scmp.lt.u32.totalorder %s2470_s16, %s3556_s1 }
  0x26   : > { %p2134_p3 = scmp.ne.s32.totalorder %s2470_s16, %s2133_s28  ;;  %p2140_p10 = scmp.lt.u32.totalorder %s2138_s17, %s2133_s28 }
  0x27   : > { %p2142_p12 = scmp.lt.u32.totalorder %s2133_s28, %s2470_s16 }
  0x28   : > { %p2136_p5 = pnand %p2484_p4, %p2134_p3  ;;  %p2141_p13 = por %p2140_p10, %p2139_p7 }
  0x2a   : > { %p2137_p6 = pneg %p2136_p5  ;;  %p2143_p1 = por %p2142_p12, %p2141_p13 }
  0x2c   : > { %p2144_p2 = pnand %p2143_p1, %p2137_p6 }
  0x2e   : > { %2147 = shalt.err (!%p2144_p2)
}
  0x2f   : > { %s2148_s13 = scalar_lea.vmem %s2475_s25, 128  ;;  %s2343_s14 = smov [#allocation5]  }
  0x30   : > { %p2149_p3 = scmp.ne.s32.totalorder %s2475_s25, %s2148_s13  ;;  %s2153_s15 = sshll.u32 %s2343_s14, 4  ;;  %s2154_s15 = int_to_ptr.vmem [resolvable:$false] %s2153_s15 }
  0x31   : > { %s2155_s10 = scalar_lea.vmem %s2154_s15, 256  ;;  %p2156_p9 = scmp.lt.s32.totalorder %s2475_s25, %s2154_s15 }
  0x32   : > { %p2151_p5 = pnand %p2149_p3, %p2484_p4  ;;  %p2157_p8 = scmp.lt.s32.totalorder %s2155_s10, %s2148_s13 }
  0x34   : > { %p2152_p11 = pneg %p2151_p5  ;;  %p2158_p7 = por %p2157_p8, %p2156_p9 }
  0x36   : > { %p2159_p10 = pnand %p2158_p7, %p2152_p11 }
  0x38   : > { %2162 = shalt.err (!%p2159_p10)
}
  0x39   : > { %s3541_s11 = smov 32   ;;  %s3542_s28 = smov 2  }
  0x3a   : > { %1902 = dma.hbm_to_vmem [thread:$0]  (!%p2460_p0), %s2470_s16, 128, %s2475_s25, %s2478_s27, %s3541_s11, %s3541_s11, %s3542_s28  }
  0x3b   : > { %p3558_p8 = scmp.lt.s32.totalorder %s2341_s23, 3  ;;  %p3559_p9 = scmp.ge.s32.totalorder %s2341_s23, 1 }
  0x3c   : > { %s3561_s13 = sshll.u32 %s2337_s22, 7  ;;  %s3562_s1 = sshll.u32 %s2454_s9, 3 }
  0x3d   : > { %p2515_p11 = pnand %p3559_p9, %p3558_p8  ;;  %s2524_s10 = scalar_lea.hbm %s3530_s0, %s3561_s13 }
  0x3e   : > { %s235_s26 = scalar_lea.vmem [#allocation2], %s3562_s1  ;;  %s1883_s16 = smul.u32 68, %s2454_s9 }
  0x3f   : > { %s3560_s17 = scalar_select %p2515_p11, 1, 0 }
  0x40   : > { %s243_s7 = sshll.u32 %s235_s26, 4  ;;  %s1884_s25 = smul.u32 1088, %s2337_s22  ;;  %s2529_s7 = int_to_ptr.vmem [resolvable:$true] %s243_s7 }
  0x41   : > { %s232_s11 = scalar_lea.sflag [#allocation3], %s2454_s9  ;;  %s2163_s28 = scalar_lea.hbm %s2524_s10, 128 }
  0x42   : > { %p2164_p12 = scmp.ne.s32.totalorder %s2524_s10, %s2163_s28  ;;  %s2168_s15 = scalar_lea.hbm %s3530_s0, 256 }
  0x43   : > { %p2169_p6 = scmp.lt.u32.totalorder %s2524_s10, %s3530_s0  ;;  %p2170_p13 = scmp.lt.u32.totalorder %s2168_s15, %s2163_s28 }
  0x44   : > { %p2166_p1 = pnand %p2164_p12, %p2484_p4  ;;  %p2172_p5 = scmp.lt.u32.totalorder %s2163_s28, %s2524_s10 }
  0x45   : > { %p2171_p3 = por %p2170_p13, %p2169_p6 }
  0x46   : > { %p2167_p2 = pneg %p2166_p1 }
  0x47   : > { %p2173_p7 = por %p2172_p5, %p2171_p3 }
  0x49   : > { %p2174_p10 = pnand %p2173_p7, %p2167_p2 }
  0x4b   : > { %2177 = shalt.err (!%p2174_p10)
}
  0x4c   : > { %s2178_s1 = scalar_lea.vmem %s2529_s7, 128  ;;  %s2346_s26 = smov [#allocation2]  }
  0x4d   : > { %p2179_p8 = scmp.ne.s32.totalorder %s2529_s7, %s2178_s1  ;;  %s2183_s14 = sshll.u32 %s2346_s26, 4  ;;  %s2184_s14 = int_to_ptr.vmem [resolvable:$false] %s2183_s14 }
  0x4e   : > { %s2185_s20 = scalar_lea.vmem %s2184_s14, 256  ;;  %p2186_p1 = scmp.lt.s32.totalorder %s2529_s7, %s2184_s14 }
  0x4f   : > { %p2181_p9 = pnand %p2179_p8, %p2484_p4  ;;  %p2187_p11 = scmp.lt.s32.totalorder %s2185_s20, %s2178_s1 }
  0x51   : > { %p2182_p12 = pneg %p2181_p9  ;;  %p2188_p6 = por %p2187_p11, %p2186_p1 }
  0x53   : > { %p2189_p13 = pnand %p2188_p6, %p2182_p12 }
  0x55   : > { %2192 = shalt.err (!%p2189_p13)
}
  0x56   : > { %s3563_s23 = smov 2   ;;  %s3564_s28 = smov 32  }
  0x57   : > { %1899 = dma.hbm_to_vmem [thread:$0]  (!%p2460_p0), %s2524_s10, 128, %s2529_s7, %s232_s11, %s3564_s28, %s3564_s28, %s3563_s23  }
  0x58   : > { %s2564_s1 = scalar_lea.hbm %s3533_s3, %s1884_s25  ;;  %s279_s26 = scalar_lea.vmem [#allocation7], %s1883_s16 }
  0x59   : > { %s287_s14 = sshll.u32 %s279_s26, 4  ;;  %s2193_s20 = scalar_lea.hbm %s2564_s1, 1088  ;;  %s2568_s14 = int_to_ptr.vmem [resolvable:$true] %s287_s14 }
  0x5a   : > { %p2194_p11 = scmp.ne.s32.totalorder %s2564_s1, %s2193_s20  ;;  %s2198_s10 = scalar_lea.hbm %s3533_s3, 2176 }
  0x5b   : > { %p2199_p5 = scmp.lt.u32.totalorder %s2564_s1, %s3533_s3  ;;  %p2200_p7 = scmp.lt.u32.totalorder %s2198_s10, %s2193_s20 }
  0x5c   : > { %p2196_p2 = pnand %p2194_p11, %p2484_p4  ;;  %p2202_p8 = scmp.lt.u32.totalorder %s2193_s20, %s2564_s1 }
  0x5d   : > { %p2201_p10 = por %p2200_p7, %p2199_p5 }
  0x5e   : > { %p2197_p3 = pneg %p2196_p2 }
  0x5f   : > { %p2203_p9 = por %p2202_p8, %p2201_p10 }
  0x61   : > { %p2204_p12 = pnand %p2203_p9, %p2197_p3 }
  0x63   : > { %2207 = shalt.err (!%p2204_p12)
}
  0x64   : > { %s2208_s9 = scalar_lea.vmem %s2568_s14, 1088  ;;  %s2347_s16 = smov [#allocation7]  }
  0x65   : > { %p2209_p1 = scmp.ne.s32.totalorder %s2568_s14, %s2208_s9  ;;  %s2213_s28 = sshll.u32 %s2347_s16, 4  ;;  %s2214_s28 = int_to_ptr.vmem [resolvable:$false] %s2213_s28 }
  0x66   : > { %s2215_s13 = scalar_lea.vmem %s2214_s28, 2176  ;;  %p2216_p11 = scmp.lt.s32.totalorder %s2568_s14, %s2214_s28 }
  0x67   : > { %p2211_p6 = pnand %p2209_p1, %p2484_p4  ;;  %p2217_p2 = scmp.lt.s32.totalorder %s2215_s13, %s2208_s9 }
  0x69   : > { %p2212_p13 = pneg %p2211_p6  ;;  %p2218_p5 = por %p2217_p2, %p2216_p11 }
  0x6b   : > { %p2219_p7 = pnand %p2218_p5, %p2212_p13 }
  0x6d   : > { %2222 = shalt.err (!%p2219_p7)
}
  0x6e   : > { %s2348_s15 = smov 16   ;;  %s2349_s26 = smov 1  }
  0x6f   : > { %1905 = dma.hbm_to_vmem [thread:$0]  (!%p2460_p0), %s2564_s1, 1088, %s2568_s14, %s2478_s27, %s2348_s15, %s2348_s15, %s2349_s26  }
  0x70   : > { %p3565_p4 = scmp.ne.s32.totalorder %s3560_s17, 0 }
  0x71   : > { %s2595_s29 = sand.u32 (!%p3565_p4), 1, %s2325_s19   ;;  %p3566_p3 = scmp.ne.s32.totalorder (!%p3565_p4), %s3551_s30, 0 }
  0x72   : > { %299 = sbr.rel (%p3565_p4) target bundleno = 432 (0x1b0), region = 36  ;;  %s1727_s20 = sshll.u32 (!%p3565_p4), %s2595_s29, 3 }
  0x73   : > { %s302_s7 = scalar_lea.sflag (!%p3565_p4), [#allocation3], %s2595_s29  ;;  %s305_s11 = scalar_lea.vmem (!%p3565_p4), [#allocation2], %s1727_s20 }
  0x79   : > { %2304 = dma.done.wait (%p3566_p3), %s302_s7, 128  }
  0x7a   : > { %2306 = vsyncadd (%p3566_p3), %s302_s7, 4294967168  ;;  %s310_s12 = sand.u32 1, %s2416_s24   ;;  %s2604_s17 = scalar_lea.vmem [#allocation5], %s1727_s20 }
  0x7b   : > { %s311_s27 = scalar_lea.sflag [#allocation6], %s310_s12 }
  0x7c   : > { %2308 = dma.done.wait (%p3566_p3), %s311_s27, 1216  }
  0x7d   : > { %2310 = vsyncadd (%p3566_p3), %s311_s27, 4294966080  ;;  %v2610_v0 = vld [vmem:[%s305_s11] sm:$0x3]  ;;  %v2612_v1 = vld [vmem:[%s305_s11 + $0x2] sm:$0x3]  ;;  %s1885_s24 = smul.u32 68, %s2595_s29 }
  0x7e   : > { %v2614_v2 = vld [vmem:[%s305_s11 + $0x6] sm:$0x3]  ;;  %v2617_v3 = vld [vmem:[%s2604_s17] sm:$0x3]  ;;  %v2620_v4 = vld [vmem:[%s2604_s17 + $0x2] sm:$0x3] }
  0x7f   : > { %v2624_v5 = vld [vmem:[%s2604_s17 + $0x6] sm:$0x3]  ;;  %v388_v6 = vsub.f32 %v2614_v2, %v2612_v1  ;;  %v410_v7 = vmin.f32 %v2610_v0, %v2617_v3  ;;  %v2630_v8 = vld [vmem:[%s305_s11 + $0x4] sm:$0x3]  ;;  %v2633_v9 = vld [vmem:[%s2604_s17 + $0x4] sm:$0x3]  ;;  %v413_v13 = vmin.f32 %v2612_v1, %v2620_v4  ;;  %v394_v47 = vmax.f32 %v2610_v0, %v2617_v3 }
  0x80   : > { %v391_v10 = vsub.f32 %v2624_v5, %v2620_v4  ;;  %v409_v11 = vmax.f32 %v2630_v8, %v2633_v9  ;;  %v412_v12 = vmax.f32 %v2614_v2, %v2624_v5  ;;  %v419_v16 = vadd.f32 %v2633_v9, %v2617_v3  ;;  %v2655_v21 = vld [vmem:[%s3532_s2] sm:$0x3]  ;;  %s2661_s14 = scalar_lea.vmem [#allocation7], %s1885_s24  ;;  %s1729_s23 = sshll.u32 %s2595_s29, 1 }
  0x81   : > { %v2643_v14 = vadd.f32 1e-07, %v388_v6  ;;  %v423_v19 = vadd.f32 %v2624_v5, %v2620_v4  ;;  %v533_v26 = vld [vmem:[%s2661_s14] sm:$0x1]  ;;  %v527_v29 = vsub.f32 %v2655_v21, %v2617_v3  ;;  %v1744_v30 = vld [vmem:[%s2661_s14 + $0x1] sm:$0x1]  ;;  %v387_v46 = vsub.f32 %v2630_v8, %v2610_v0 }
  0x82   : > { %v2645_v15 = vadd.f32 1e-07, %v391_v10  ;;  %v411_v17 = vsub.f32 %v409_v11, %v410_v7  ;;  %v414_v18 = vsub.f32 %v412_v12, %v413_v13  ;;  %v420_v20 = vsub.f32 %v419_v16, %v2610_v0  ;;  %v1745_v31 = vld [vmem:[%s2661_s14 + $0x2] sm:$0x1]  ;;  %v1746_v37 = vld [vmem:[%s2661_s14 + $0x3] sm:$0x1] }
  0x83   : > { %v424_v24 = vsub.f32 %v423_v19, %v2612_v1  ;;  %v531_v35 = vmax.f32 %v527_v29, 0.0  ;;  %v2669_v36 = vunpack.c.l.bf16 %v533_v26  ;;  %v2672_v38 = vunpack.c.l.bf16 %v1744_v30  ;;  %v1747_v41 = vld [vmem:[%s2661_s14 + $0x4] sm:$0x1]  ;;  %v1748_v45 = vld [vmem:[%s2661_s14 + $0x5] sm:$0x1]  ;;  %s3026_s9 = scalar_lea.vmem [#allocation8], %s1729_s23 }
  0x84   : > { %v415_v22 = vmul.f32 %v411_v17, %v411_v17  ;;  %v416_v23 = vmul.f32 %v414_v18, %v414_v18  ;;  %1970 = vrcp.f32 %v2645_v15  ;;  %v421_v25 = vsub.f32 %v420_v20, %v2630_v8  ;;  %v1749_v51 = vld [vmem:[%s2661_s14 + $0x6] sm:$0x1]  ;;  %s1877_s16 = sshll.u32 %s2333_s21, 5  ;;  %s1524_s28 = sshll.u32 %s3026_s9, 4  ;;  %s3219_s28 = int_to_ptr.vmem [resolvable:$true] %s1524_s28 }
  0x85   : > { %1972 = vrcp.f32 %v2643_v14  ;;  %v425_v28 = vsub.f32 %v424_v24, %v2614_v2  ;;  %v2674_v39 = vunpack.c.l.bf16 %v1745_v31  ;;  %v2677_v42 = vmin.f32 %v531_v35, 15.99  ;;  %s3217_s26 = scalar_lea.hbm %s3534_s4, %s1877_s16  ;;  %s1505_s20 = scalar_lea.sflag [#allocation4], %s2595_s29 }
  0x86   : > { %v417_v27 = vadd.f32 %v416_v23, %v415_v22  ;;  %v422_v32 = vmul.f32 %v421_v25, %v421_v25  ;;  %v538_v43 = vmax.f32 %v2669_v36, %v2672_v38  ;;  %v2681_v44 = vunpack.c.l.bf16 %v1746_v37  ;;  %s2223_s7 = scalar_lea.vmem %s3219_s28, 32  ;;  %p3571_p10 = scmp.ne.s32.totalorder %s3552_s6, 0 }
  0x87   : > { %v426_v34 = vmul.f32 %v425_v28, %v425_v28  ;;  %v398_v48 = vmax.f32 %v2612_v1, %v2620_v4  ;;  %v2691_v50 = vunpack.c.l.bf16 %v1747_v41  ;;  %v390_v53 = vsub.f32 %v2633_v9, %v2617_v3  ;;  %v1752_v28 = vld [vmem:[%s2661_s14 + $0x9] sm:$0x1]  ;;  %p2224_p0 = scmp.ne.s32.totalorder %s3219_s28, %s2223_s7  ;;  %s2353_s11 = smov [#allocation8]  }
  0x88   : > { %v418_v33 = vadd.f32 1e-07, %v417_v27  ;;  %v542_v49 = vmax.f32 %v538_v43, %v2674_v39  ;;  %v393_v54 = vmin.f32 %v2630_v8, %v2633_v9  ;;  %v397_v55 = vmin.f32 %v2614_v2, %v2624_v5  ;;  %v1750_v5 = vld [vmem:[%s2661_s14 + $0x7] sm:$0x1]  ;;  %v1751_v27 = vld [vmem:[%s2661_s14 + $0x8] sm:$0x1] }
  0x89   : > { %v427_v40 = vadd.f32 %v426_v34, %v422_v32  ;;  %v2700_v56 = vunpack.c.l.bf16 %v1748_v45  ;;  %v603_v60 = vand.u32 2147483647, %v2677_v42  ;;  %v1760_v61 = vadd.f32 -1.0, %v2677_v42  ;;  %p2225_p8 = pnand %p2224_p0, %p3571_p10  ;;  %s2227_s12 = sshll.u32 %s2353_s11, 4  ;;  %s2228_s12 = int_to_ptr.vmem [resolvable:$false] %s2227_s12 }
  0x8a   : > { %1974 = vrcp.f32 %v418_v33  ;;  %v546_v59 = vmax.f32 %v542_v49, %v2681_v44  ;;  %v2707_v0 = vunpack.c.l.bf16 %v1749_v51  ;;  %v1761_v1 = vadd.f32 -2.0, %v2677_v42  ;;  %s2229_s27 = scalar_lea.vmem %s2228_s12, 64  ;;  %p2230_p12 = scmp.lt.s32.totalorder %s3219_s28, %s2228_s12 }
  0x8b   : > { %v428_v62 = vmul.f32 0.25, %v427_v40  ;;  %v613_v6 = vand.u32 2147483647, %v1760_v61  ;;  %v1762_v7 = vadd.f32 -3.0, %v2677_v42  ;;  %v395_v8 = vsub.f32 %v393_v54, %v394_v47  ;;  %v1755_v61 = vld [vmem:[%s2661_s14 + $0xc] sm:$0x1]  ;;  %p2226_p9 = pneg %p2225_p8  ;;  %p2231_p1 = scmp.lt.s32.totalorder %s2229_s27, %s2223_s7 }
  0x8c   : > { %v550_v2 = vmax.f32 %v546_v59, %v2691_v50  ;;  %v604_v11 = vsub.f32 1.0, %v603_v60  ;;  %v623_v12 = vand.u32 2147483647, %v1761_v1  ;;  %v399_v13 = vsub.f32 %v397_v55, %v398_v48  ;;  %v1754_v55 = vld [vmem:[%s2661_s14 + $0xb] sm:$0x1] }
  0x8d   : > { %v614_v18 = vsub.f32 1.0, %v613_v6  ;;  %v402_v20 = vmul.f32 %v2643_v14, %v387_v46  ;;  %v2715_v23 = vunpack.c.l.bf16 %v1750_v5  ;;  %v633_v29 = vand.u32 2147483647, %v1762_v7  ;;  %p2232_p6 = por %p2231_p1, %p2230_p12 }
  0x8e   : > { %v1971_v52 = vpop.eup %1970  ;;  %v554_v17 = vmax.f32 %v550_v2, %v2700_v56  ;;  %v396_v30 = vmax.f32 %v395_v8, 0.0  ;;  %v605_v32 = vmax.f32 %v604_v11, 0.0  ;;  %v624_v33 = vsub.f32 1.0, %v623_v12  ;;  %v1756_v2 = vld [vmem:[%s2661_s14 + $0xd] sm:$0x1] }
  0x8f   : > { %v1973_v57 = vpop.eup %1972  ;;  %v430_v58 = vmul.f32 %v1971_v52, %v2645_v15  ;;  %v400_v34 = vmax.f32 %v399_v13, 0.0  ;;  %v615_v37 = vmax.f32 %v614_v18, 0.0  ;;  %v2734_v43 = vunpack.c.l.bf16 %v1751_v27  ;;  %v1757_v12 = vld [vmem:[%s2661_s14 + $0xe] sm:$0x1]  ;;  %v1758_v13 = vld [vmem:[%s2661_s14 + $0xf] sm:$0x1]  ;;  %p2233_p13 = pnand %p2232_p6, %p2226_p9 }
  0x90   : > { %v471_v63 = vmul.f32 %v1973_v57, %v2643_v14  ;;  %v558_v26 = vmax.f32 %v554_v17, %v2707_v0  ;;  %v403_v14 = vmul.f32 %v2645_v15, %v390_v53  ;;  %v2736_v45 = vunpack.c.l.bf16 %v1752_v28 }
  0x91   : > { %v431_v3 = vsub.f32 2.0, %v430_v58  ;;  %v634_v15 = vsub.f32 1.0, %v633_v29  ;;  %v1763_v48 = vadd.f32 -4.0, %v2677_v42  ;;  %v606_v51 = vmul.f32 %v605_v32, %v2669_v36 }
  0x92   : > { %v472_v10 = vsub.f32 2.0, %v471_v63  ;;  %v562_v41 = vmax.f32 %v558_v26, %v2715_v23  ;;  %v2756_v60 = vmul.f32 %v400_v34, %v396_v30  ;;  %v2759_v63 = vadd.f32 %v403_v14, %v402_v20 }
  0x93   : > { %v432_v16 = vmul.f32 %v1971_v52, %v431_v3  ;;  %v625_v52 = vmax.f32 %v624_v33, 0.0  ;;  %v2762_v3 = vunpack.c.l.bf16 %v1754_v55  ;;  %v635_v7 = vmax.f32 %v634_v15, 0.0 }
  0x94   : > { %v1975_v19 = vpop.eup %1974  ;;  %v473_v22 = vmul.f32 %v1973_v57, %v472_v10  ;;  %v616_v57 = vmul.f32 %v615_v37, %v2672_v38  ;;  %v566_v58 = vmax.f32 %v562_v41, %v2734_v43  ;;  %v1764_v8 = vadd.f32 -5.0, %v2677_v42 }
  0x95   : > { %v2717_v24 = vmul.f32 %v432_v16, %v390_v53  ;;  %v2719_v25 = vmul.f32 %v1975_v19, %v428_v62  ;;  %v643_v62 = vand.u32 2147483647, %v1763_v48  ;;  %v626_v6 = vmul.f32 %v625_v52, %v2674_v39  ;;  %v1759_v16 = vld [vmem:[%s2661_s14 + $0x10] sm:$0x1] }
  0x96   : > { %v2724_v31 = vmul.f32 %v473_v22, %v387_v46  ;;  %v1753_v46 = vld [vmem:[%s2661_s14 + $0xa] sm:$0x1]  ;;  %v570_v1 = vmax.f32 %v566_v58, %v2736_v45  ;;  %v617_v5 = vadd.f32 %v616_v57, %v606_v51  ;;  %v2768_v11 = vunpack.c.l.bf16 %v1755_v61 }
  0x97   : > { %v2728_v35 = vand.u32 2147483647, %v2717_v24  ;;  %v2754_v59 = vunpack.c.l.bf16 %v1753_v46  ;;  %v644_v17 = vsub.f32 1.0, %v643_v62  ;;  %v405_v18 = vsub.f32 %v2759_v63, %v2756_v60 }
  0x98   : > { %v2731_v40 = vand.u32 2147483647, %v2724_v31  ;;  %v2776_v20 = vunpack.c.l.bf16 %v1756_v2  ;;  %v2778_v22 = vunpack.c.l.bf16 %v1757_v12  ;;  %v627_v26 = vadd.f32 %v626_v6, %v617_v5 }
  0x99   : > { %vm437_vm0 = vcmp.gt.f32.partialorder %v2728_v35, 2.4142137  ;;  %v448_v47 = vadd.f32 1.0, %v2728_v35  ;;  %v574_v10 = vmax.f32 %v570_v1, %v2754_v59  ;;  %v636_v27 = vmul.f32 %v635_v7, %v2681_v44 }
  0x9a   : > { %v441_v49 = vsel %vm437_vm0, %v2728_v35, 1.0  ;;  %vm478_vm1 = vcmp.gt.f32.partialorder %v2731_v40, 2.4142137  ;;  %v489_v54 = vadd.f32 1.0, %v2731_v40  ;;  %v653_v28 = vand.u32 2147483647, %v1764_v8 }
  0x9b   : > { %1976 = vrcp.f32 %v441_v49  ;;  %v482_v53 = vsel %vm478_vm1, %v2731_v40, 1.0  ;;  %v578_v19 = vmax.f32 %v574_v10, %v2762_v3  ;;  %v2782_v30 = vunpack.c.l.bf16 %v1758_v13 }
  0x9c   : > { %1978 = vrcp.f32 %v448_v47  ;;  %v2784_v32 = vunpack.c.l.bf16 %v1759_v16  ;;  %v1765_v33 = vadd.f32 -6.0, %v2677_v42  ;;  %vm438_vm2 = vcmp.gt.f32.partialorder %v2728_v35, 0.41421357 }
  0x9d   : > { %1980 = vrcp.f32 %v482_v53  ;;  %v582_v29 = vmax.f32 %v578_v19, %v2768_v11  ;;  %v1737_v14 = vadd.f32 -1.0, %v2728_v35  ;;  %v645_v37 = vmax.f32 %v644_v17, 0.0 }
  0x9e   : > { %1982 = vrcp.f32 %v489_v54  ;;  %v1766_v41 = vadd.f32 -7.0, %v2677_v42  ;;  %vm479_vm3 = vcmp.gt.f32.partialorder %v2731_v40, 0.41421357  ;;  %v1740_v48 = vadd.f32 -1.0, %v2731_v40 }
  0x9f   : > { %v586_v51 = vmax.f32 %v582_v29, %v2776_v20  ;;  %v637_v57 = vadd.f32 %v636_v27, %v627_v26  ;;  %v654_v58 = vsub.f32 1.0, %v653_v28  ;;  %v2794_v61 = vadd.f32 -8.0, %v2677_v42 }
  0xa0   : > { %v663_v6 = vand.u32 2147483647, %v1765_v33  ;;  %vm2350_vm4 = vmmov 1   ;;  %v646_v8 = vmul.f32 %v645_v37, %v2691_v50  ;;  %v2802_v16 = vadd.f32 -9.0, %v2677_v42 }
  0xa1   : > { %v590_v5 = vmax.f32 %v586_v51, %v2778_v22  ;;  %vm439_vm5 = vmxor %vm437_vm0, %vm2350_vm4  ;;  %v655_v19 = vmax.f32 %v654_v58, 0.0  ;;  %v683_v26 = vand.u32 2147483647, %v2794_v61  ;;  %v1769_v63 = vadd.f32 -10.0, %v2677_v42 }
  0xa2   : > { %vm480_vm6 = vmxor %vm478_vm1, %vm2350_vm4  ;;  %v664_v33 = vsub.f32 1.0, %v663_v6  ;;  %vm434_vm9 = vcmp.lt.f32.partialorder %v2717_v24, 0.0  ;;  %vm475_vm10 = vcmp.lt.f32.partialorder %v2724_v31, 0.0  ;;  %v1776_v31 = vld [vmem:[%s2661_s14 + $0x11] sm:$0x1] }
  0xa3   : > { %v594_v13 = vmax.f32 %v590_v5, %v2782_v30  ;;  %vm2809_vm7 = vmand %vm438_vm2, %vm439_vm5 }
  0xa4   : > { %vm2818_vm8 = vmand %vm479_vm3, %vm480_vm6 }
  0xa5   : > { %v1977_v34 = vpop.eup %1976  ;;  %v2814_v29 = vmax.f32 %v594_v13, %v2784_v32  ;;  %v693_v13 = vand.u32 2147483647, %v2802_v16 }
  0xa6   : > { %v1979_v46 = vpop.eup %1978  ;;  %v443_v15 = vmul.f32 %v1977_v34, %v441_v49 }
  0xa7   : > { %v1981_v52 = vpop.eup %1980  ;;  %v450_v55 = vmul.f32 %v1979_v46, %v448_v47  ;;  %v673_v47 = vand.u32 2147483647, %v1766_v41  ;;  %v647_v41 = vadd.f32 %v646_v8, %v637_v57  ;;  %v618_v58 = vsub.f32 %v2674_v39, %v2814_v29 }
  0xa8   : > { %v1983_v62 = vpop.eup %1982  ;;  %v444_v1 = vsub.f32 2.0, %v443_v15  ;;  %v484_v2 = vmul.f32 %v1981_v52, %v482_v53  ;;  %v628_v61 = vsub.f32 %v2681_v44, %v2814_v29  ;;  %v656_v44 = vmul.f32 %v655_v19, %v2700_v56 }
  0xa9   : > { %v451_v49 = vsub.f32 2.0, %v450_v55  ;;  %v491_v7 = vmul.f32 %v1983_v62, %v489_v54  ;;  %v599_v55 = vsub.f32 %v2669_v36, %v2814_v29  ;;  %v648_v6 = vsub.f32 %v2700_v56, %v2814_v29 }
  0xaa   : > { %v445_v10 = vmul.f32 %v1977_v34, %v444_v1  ;;  %v485_v12 = vsub.f32 2.0, %v484_v2  ;;  %v619_v2 = vmul.f32 1.442695, %v618_v58  ;;  %v629_v5 = vmul.f32 1.442695, %v628_v61 }
  0xab   : > { %v452_v53 = vmul.f32 %v1979_v46, %v451_v49  ;;  %v492_v17 = vsub.f32 2.0, %v491_v7  ;;  %v674_v46 = vsub.f32 1.0, %v673_v47  ;;  %v600_v1 = vmul.f32 1.442695, %v599_v55 }
  0xac   : > { %v446_v27 = vsub.f32 0.0, %v445_v10  ;;  %v486_v28 = vmul.f32 %v1981_v52, %v485_v12  ;;  %v608_v52 = vsub.f32 %v2672_v38, %v2814_v29  ;;  %v665_v49 = vmax.f32 %v664_v33, 0.0 }
  0xad   : > { %v453_v34 = vmul.f32 %v1737_v14, %v452_v53  ;;  %v493_v37 = vmul.f32 %v1983_v62, %v492_v17  ;;  %v638_v62 = vsub.f32 %v2691_v50, %v2814_v29  ;;  %1984 = vpow2.f32 %v600_v1 }
  0xae   : > { %v487_v51 = vsub.f32 0.0, %v486_v28  ;;  %v609_v38 = vmul.f32 1.442695, %v608_v52  ;;  %v406_v10 = vadd.f32 1e-07, %v405_v18  ;;  %v658_v12 = vsub.f32 %v2707_v0, %v2814_v29 }
  0xaf   : > { %v454_v14 = vsel %vm2809_vm7, %v453_v34, %v2728_v35  ;;  %v494_v57 = vmul.f32 %v1740_v48, %v493_v37  ;;  %v639_v47 = vmul.f32 1.442695, %v638_v62  ;;  %v649_v56 = vmul.f32 1.442695, %v648_v6 }
  0xb0   : > { %v2837_v36 = vsel %vm437_vm0, %v446_v27, %v454_v14  ;;  %1986 = vpow2.f32 %v609_v38  ;;  %v657_v19 = vadd.f32 %v656_v44, %v647_v41  ;;  %v666_v27 = vmul.f32 %v665_v49, %v2707_v0 }
  0xb1   : > { %v458_v39 = vmul.f32 %v2837_v36, %v2837_v36  ;;  %v495_v48 = vsel %vm2818_vm8, %v494_v57, %v2731_v40  ;;  %1988 = vpow2.f32 %v619_v2  ;;  %v675_v28 = vmax.f32 %v674_v46, 0.0 }
  0xb2   : > { %v2847_v50 = vsel %vm478_vm1, %v487_v51, %v495_v48  ;;  %1990 = vpow2.f32 %v629_v5  ;;  %v684_v33 = vsub.f32 1.0, %v683_v26  ;;  %v668_v18 = vsub.f32 %v2715_v23, %v2814_v29 }
  0xb3   : > { %v459_v7 = vmul.f32 0.080537446, %v458_v39  ;;  %v499_v8 = vmul.f32 %v2847_v50, %v2847_v50  ;;  %1992 = vpow2.f32 %v639_v47  ;;  %v659_v55 = vmul.f32 1.442695, %v658_v12 }
  0xb4   : > { %1994 = vpow2.f32 %v649_v56  ;;  %v667_v52 = vadd.f32 %v666_v27, %v657_v19  ;;  %v676_v41 = vmul.f32 %v675_v28, %v2715_v23  ;;  %v685_v0 = vmax.f32 %v684_v33, 0.0 }
  0xb5   : > { %v1738_v53 = vadd.f32 -0.13877685, %v459_v7  ;;  %v500_v17 = vmul.f32 0.080537446, %v499_v8  ;;  %v694_v46 = vsub.f32 1.0, %v693_v13  ;;  %1996 = vrcp.f32 %v406_v10 }
  0xb6   : > { %v703_v14 = vand.u32 2147483647, %v1769_v63  ;;  %v2351_v61 = vmov 1.0   ;;  %v2352_v1 = vmov 0.0   ;;  %v678_v23 = vsub.f32 %v2734_v43, %v2814_v29 }
  0xb7   : > { %v461_v34 = vmul.f32 %v1738_v53, %v458_v39  ;;  %v1741_v37 = vadd.f32 -0.13877685, %v500_v17  ;;  %v1985_v57 = vpop.eup %1984  ;;  %v435_v62 = vsel %vm434_vm9, -1.0, %v2351_v61  ;;  %v456_v38 = vsel %vm2809_vm7, 0.7853982, %v2352_v1 }
  0xb8   : > { %v497_v2 = vsel %vm2818_vm8, 0.7853982, %v2352_v1  ;;  %1998 = vpow2.f32 %v659_v55  ;;  %v669_v6 = vmul.f32 1.442695, %v668_v18  ;;  %v677_v47 = vadd.f32 %v676_v41, %v667_v52 }
  0xb9   : > { %v462_v16 = vadd.f32 0.19977711, %v461_v34  ;;  %v502_v51 = vmul.f32 %v1741_v37, %v499_v8  ;;  %v686_v24 = vmul.f32 %v685_v0, %v2734_v43  ;;  %v695_v10 = vmax.f32 %v694_v46, 0.0 }
  0xba   : > { %v1987_v48 = vpop.eup %1986  ;;  %v704_v53 = vsub.f32 1.0, %v703_v14  ;;  %v1770_v15 = vadd.f32 -11.0, %v2677_v42  ;;  %v457_v17 = vsel %vm437_vm0, 1.5707964, %v456_v38  ;;  %v688_v19 = vsub.f32 %v2736_v45, %v2814_v29 }
  0xbb   : > { %v463_v26 = vmul.f32 %v462_v16, %v458_v39  ;;  %v503_v58 = vadd.f32 0.19977711, %v502_v51  ;;  %v1989_v49 = vpop.eup %1988  ;;  %v611_v7 = vadd.f32 %v1987_v48, %v1985_v57  ;;  %2000 = vpow2.f32 %v669_v6 }
  0xbc   : > { %v1991_v12 = vpop.eup %1990  ;;  %v679_v33 = vmul.f32 1.442695, %v678_v23  ;;  %v687_v37 = vadd.f32 %v686_v24, %v677_v47  ;;  %v696_v35 = vmul.f32 %v695_v10, %v2736_v45  ;;  %v705_v51 = vmax.f32 %v704_v53, 0.0  ;;  %v1777_v47 = vld [vmem:[%s2661_s14 + $0x12] sm:$0x1] }
  0xbd   : > { %v1739_v5 = vadd.f32 -0.3333295, %v463_v26  ;;  %v504_v44 = vmul.f32 %v503_v58, %v499_v8  ;;  %v621_v56 = vadd.f32 %v1989_v49, %v611_v7  ;;  %v1993_v27 = vpop.eup %1992  ;;  %v713_v55 = vand.u32 2147483647, %v1770_v15 }
  0xbe   : > { %v1995_v63 = vpop.eup %1994  ;;  %v689_v41 = vmul.f32 1.442695, %v688_v19  ;;  %v1771_v0 = vadd.f32 -12.0, %v2677_v42  ;;  %2002 = vpow2.f32 %v679_v33  ;;  %v708_v45 = vsub.f32 %v2762_v3, %v2814_v29 }
  0xbf   : > { %v465_v54 = vmul.f32 %v1739_v5, %v458_v39  ;;  %v1742_v13 = vadd.f32 -0.3333295, %v504_v44  ;;  %v498_v39 = vsel %vm478_vm1, 1.5707964, %v497_v2  ;;  %v631_v34 = vadd.f32 %v1991_v12, %v621_v56  ;;  %v1997_v46 = vpop.eup %1996  ;;  %v2897_v2 = vld [vmem:[%s3532_s2 + $0x2] sm:$0x3] }
  0xc0   : > { %v476_v58 = vsel %vm475_vm10, -1.0, %v2351_v61  ;;  %v697_v23 = vadd.f32 %v696_v35, %v687_v37  ;;  %v706_v5 = vmul.f32 %v705_v51, %v2754_v59  ;;  %v723_v44 = vand.u32 2147483647, %v1771_v0 }
  0xc1   : > { %v466_v28 = vmul.f32 %v465_v54, %v2837_v36  ;;  %v506_v43 = vmul.f32 %v1742_v13, %v499_v8  ;;  %v641_v52 = vadd.f32 %v1993_v27, %v631_v34  ;;  %v698_v8 = vsub.f32 %v2754_v59, %v2814_v29  ;;  %v1778_v13 = vld [vmem:[%s2661_s14 + $0x13] sm:$0x1] }
  0xc2   : > { %v1999_v57 = vpop.eup %1998  ;;  %2004 = vpow2.f32 %v689_v41  ;;  %v709_v6 = vmul.f32 1.442695, %v708_v45  ;;  %v728_v7 = vsub.f32 %v2776_v20, %v2814_v29  ;;  %v2909_v59 = vmul.f32 %v1997_v46, %v2756_v60  ;;  %v1781_v41 = vld [vmem:[%s2661_s14 + $0x16] sm:$0x1] }
  0xc3   : > { %v467_v18 = vadd.f32 %v466_v28, %v457_v17  ;;  %v507_v16 = vmul.f32 %v506_v43, %v2847_v50  ;;  %v651_v14 = vadd.f32 %v1995_v63, %v641_v52  ;;  %v699_v48 = vmul.f32 1.442695, %v698_v8  ;;  %v1779_v17 = vld [vmem:[%s2661_s14 + $0x14] sm:$0x1] }
  0xc4   : > { %v2911_v54 = vunpack.c.l.bf16 %v1776_v31  ;;  %v707_v53 = vadd.f32 %v706_v5, %v697_v23  ;;  %v724_v15 = vsub.f32 1.0, %v723_v44  ;;  %v2916_v27 = vunpack.c.l.bf16 %v1777_v47 }
  0xc5   : > { %v468_v40 = vadd.f32 %v467_v18, %v2837_v36  ;;  %v508_v26 = vadd.f32 %v507_v16, %v498_v39  ;;  %v714_v36 = vsub.f32 1.0, %v713_v55  ;;  %v661_v49 = vadd.f32 %v1999_v57, %v651_v14  ;;  %v2001_v24 = vpop.eup %2000  ;;  %v1780_v39 = vld [vmem:[%s2661_s14 + $0x15] sm:$0x1] }
  0xc6   : > { %2006 = vpow2.f32 %v699_v48  ;;  %v729_v28 = vmul.f32 1.442695, %v728_v7  ;;  %v2918_v33 = vunpack.c.l.bf16 %v1778_v13  ;;  %v781_v63 = vmax.f32 %v2911_v54, %v2916_v27  ;;  %v1786_v13 = vld [vmem:[%s2661_s14 + $0x1b] sm:$0x1] }
  0xc7   : > { %v469_v1 = vmul.f32 %v468_v40, %v435_v62  ;;  %v509_v38 = vadd.f32 %v508_v26, %v2847_v50  ;;  %v718_v50 = vsub.f32 %v2768_v11, %v2814_v29  ;;  %v528_v62 = vsub.f32 %v2897_v2, %v2620_v4  ;;  %v1782_v26 = vld [vmem:[%s2661_s14 + $0x17] sm:$0x1] }
  0xc8   : > { %v715_v12 = vmax.f32 %v714_v36, 0.0  ;;  %v1772_v4 = vadd.f32 -13.0, %v2677_v42  ;;  %2008 = vpow2.f32 %v709_v6  ;;  %v671_v60 = vadd.f32 %v2001_v24, %v661_v49  ;;  %v2003_v34 = vpop.eup %2002  ;;  %v1784_v6 = vld [vmem:[%s2661_s14 + $0x19] sm:$0x1] }
  0xc9   : > { %v510_v61 = vmul.f32 %v509_v38, %v476_v58  ;;  %v719_v19 = vmul.f32 1.442695, %v718_v50  ;;  %v773_v43 = vmax.f32 %v528_v62, 0.0  ;;  %v2926_v18 = vunpack.c.l.bf16 %v1779_v17  ;;  %v1783_v38 = vld [vmem:[%s2661_s14 + $0x18] sm:$0x1] }
  0xca   : > { %v716_v35 = vmul.f32 %v715_v12, %v2762_v3  ;;  %v725_v16 = vmax.f32 %v724_v15, 0.0  ;;  %v733_v51 = vand.u32 2147483647, %v1772_v4  ;;  %v738_v55 = vsub.f32 %v2778_v22, %v2814_v29  ;;  %v1785_v12 = vld [vmem:[%s2661_s14 + $0x1a] sm:$0x1] }
  0xcb   : > { %v511_v10 = vsub.f32 %v469_v1, %v510_v61  ;;  %v2931_v52 = vadd.f32 -14.0, %v2677_v42  ;;  %2010 = vpow2.f32 %v719_v19  ;;  %v785_v3 = vmax.f32 %v781_v63, %v2918_v33 }
  0xcc   : > { %v2937_v0 = vunpack.c.l.bf16 %v1780_v39  ;;  %v681_v46 = vadd.f32 %v2003_v34, %v671_v60  ;;  %2012 = vpow2.f32 %v729_v28  ;;  %v2939_v40 = vmin.f32 %v773_v43, 15.99  ;;  %v2005_v45 = vpop.eup %2004 }
  0xcd   : > { %v512_v56 = vmul.f32 %v511_v10, %v511_v10  ;;  %v2942_v14 = vadd.f32 %v716_v35, %v707_v53  ;;  %v789_v57 = vmax.f32 %v785_v3, %v2926_v18  ;;  %v2945_v1 = vunpack.c.l.bf16 %v1781_v41 }
  0xce   : > { %v2949_v36 = vmul.f32 %v725_v16, %v2768_v11  ;;  %v2951_v23 = vsub.f32 1.0, %v733_v51  ;;  %v739_v48 = vmul.f32 1.442695, %v738_v55  ;;  %v743_v5 = vand.u32 2147483647, %v2931_v52 }
  0xcf   : > { %v2921_v37 = vmul.f32 0.40528473, %v512_v56  ;;  %v748_v44 = vsub.f32 %v2782_v30, %v2814_v29  ;;  %v793_v31 = vmax.f32 %v789_v57, %v2937_v0  ;;  %v2957_v61 = vunpack.c.l.bf16 %v1782_v26 }
  0xd0   : > { %v2007_v50 = vpop.eup %2006  ;;  %v691_v62 = vadd.f32 %v2005_v45, %v681_v46  ;;  %v846_v11 = vand.u32 2147483647, %v2939_v40  ;;  %v1793_v49 = vadd.f32 -1.0, %v2939_v40  ;;  %v1794_v7 = vadd.f32 -2.0, %v2939_v40  ;;  %v1787_v45 = vld [vmem:[%s2661_s14 + $0x1c] sm:$0x1] }
  0xd1   : > { %v514_v8 = vsub.f32 %v2921_v37, %v2909_v59  ;;  %v797_v24 = vmax.f32 %v793_v31, %v2945_v1  ;;  %v2964_v10 = vunpack.c.l.bf16 %v1783_v38  ;;  %v1795_v53 = vadd.f32 -3.0, %v2939_v40  ;;  %v1788_v31 = vld [vmem:[%s2661_s14 + $0x1d] sm:$0x1] }
  0xd2   : > { %v2009_v47 = vpop.eup %2008  ;;  %v1796_v15 = vadd.f32 -4.0, %v2939_v40  ;;  %v2970_v4 = vunpack.c.l.bf16 %v1784_v6  ;;  %v847_v17 = vsub.f32 1.0, %v846_v11  ;;  %v856_v56 = vand.u32 2147483647, %v1793_v49 }
  0xd3   : > { %v515_v58 = vadd.f32 1.0000001, %v514_v8  ;;  %v866_v19 = vand.u32 2147483647, %v1794_v7  ;;  %v801_v60 = vmax.f32 %v797_v24, %v2957_v61  ;;  %v876_v28 = vand.u32 2147483647, %v1795_v53 }
  0xd4   : > { %v886_v43 = vand.u32 2147483647, %v1796_v15  ;;  %v1797_v39 = vadd.f32 -5.0, %v2939_v40  ;;  %v735_v34 = vmax.f32 %v2951_v23, 0.0  ;;  %v848_v35 = vmax.f32 %v847_v17, 0.0 }
  0xd5   : > { %2014 = vrcp.f32 %v515_v58  ;;  %v857_v63 = vsub.f32 1.0, %v856_v56  ;;  %v867_v16 = vsub.f32 1.0, %v866_v19  ;;  %v2011_v51 = vpop.eup %2010  ;;  %v701_v55 = vadd.f32 %v2007_v50, %v691_v62  ;;  %v1789_v19 = vld [vmem:[%s2661_s14 + $0x1e] sm:$0x1] }
  0xd6   : > { %v805_v41 = vmax.f32 %v801_v60, %v2964_v10  ;;  %v2976_v8 = vunpack.c.l.bf16 %v1785_v12  ;;  %v877_v3 = vsub.f32 1.0, %v876_v28  ;;  %v2978_v46 = vpop.eup %2012  ;;  %v2980_v26 = vunpack.c.l.bf16 %v1786_v13 }
  0xd7   : > { %v849_v58 = vmul.f32 %v848_v35, %v2911_v54  ;;  %v858_v57 = vmax.f32 %v857_v63, 0.0  ;;  %v868_v38 = vmax.f32 %v867_v16, 0.0  ;;  %v887_v50 = vsub.f32 1.0, %v886_v43  ;;  %v1790_v63 = vld [vmem:[%s2661_s14 + $0x1f] sm:$0x1] }
  0xd8   : > { %v809_v23 = vmax.f32 %v805_v41, %v2970_v4  ;;  %v878_v6 = vmax.f32 %v877_v3, 0.0  ;;  %v896_v62 = vand.u32 2147483647, %v1797_v39  ;;  %2016 = vpow2.f32 %v739_v48 }
  0xd9   : > { %v859_v11 = vmul.f32 %v858_v57, %v2916_v27  ;;  %v869_v49 = vmul.f32 %v868_v38, %v2918_v33  ;;  %v1798_v7 = vadd.f32 -6.0, %v2939_v40  ;;  %v749_v12 = vmul.f32 1.442695, %v748_v44 }
  0xda   : > { %v758_v13 = vsub.f32 %v2784_v32, %v2814_v29  ;;  %v813_v53 = vmax.f32 %v809_v23, %v2976_v8  ;;  %v2992_v15 = vunpack.c.l.bf16 %v1787_v45  ;;  %v711_v48 = vadd.f32 %v2009_v47, %v701_v55  ;;  %v1791_v23 = vld [vmem:[%s2661_s14 + $0x20] sm:$0x1] }
  0xdb   : > { %v2995_v56 = vunpack.c.l.bf16 %v1788_v31  ;;  %v860_v60 = vadd.f32 %v859_v11, %v849_v58  ;;  %v879_v43 = vmul.f32 %v878_v6, %v2926_v18  ;;  %v888_v44 = vmax.f32 %v887_v50, 0.0 }
  0xdc   : > { %v817_v28 = vmax.f32 %v813_v53, %v2980_v26  ;;  %v897_v39 = vsub.f32 1.0, %v896_v62  ;;  %v906_v41 = vand.u32 2147483647, %v1798_v7  ;;  %v1799_v47 = vadd.f32 -7.0, %v2939_v40  ;;  %v1792_v62 = vld [vmem:[%s2661_s14 + $0x21] sm:$0x1] }
  0xdd   : > { %v870_v16 = vadd.f32 %v869_v49, %v860_v60  ;;  %v727_v55 = vadd.f32 %v2949_v36, %v2942_v14  ;;  %2018 = vpow2.f32 %v749_v12  ;;  %v3007_v45 = vunpack.c.l.bf16 %v1789_v19 }
  0xde   : > { %v821_v3 = vmax.f32 %v817_v28, %v2992_v15  ;;  %v721_v57 = vadd.f32 %v2011_v51, %v711_v48  ;;  %v759_v38 = vmul.f32 1.442695, %v758_v13  ;;  %v3013_v6 = vunpack.c.l.bf16 %v1790_v63 }
  0xdf   : > { %v2015_v24 = vpop.eup %2014  ;;  %v889_v50 = vmul.f32 %v888_v44, %v2937_v0  ;;  %v898_v14 = vmax.f32 %v897_v39, 0.0  ;;  %v880_v11 = vadd.f32 %v879_v43, %v870_v16  ;;  %v907_v49 = vsub.f32 1.0, %v906_v41 }
  0xe0   : > { %v517_v17 = vmul.f32 %v2015_v24, %v2921_v37  ;;  %v825_v31 = vmax.f32 %v821_v3, %v2995_v56  ;;  %v916_v7 = vand.u32 2147483647, %v1799_v47  ;;  %v744_v51 = vsub.f32 1.0, %v743_v5 }
  0xe1   : > { %v3022_v12 = vunpack.c.l.bf16 %v1791_v23  ;;  %2020 = vpow2.f32 %v759_v38  ;;  %v3033_v5 = vunpack.c.l.bf16 %v1792_v62  ;;  %v890_v48 = vadd.f32 %v889_v50, %v880_v11 }
  0xe2   : > { %v520_v35 = vmul.f32 %v517_v17, %v2921_v37  ;;  %v1800_v37 = vadd.f32 -8.0, %v2939_v40  ;;  %v829_v24 = vmax.f32 %v825_v31, %v3007_v45  ;;  %v2017_v13 = vpop.eup %2016  ;;  %v1801_v17 = vadd.f32 -9.0, %v2939_v40 }
  0xe3   : > { %v908_v19 = vmax.f32 %v907_v49, 0.0  ;;  %v917_v60 = vsub.f32 1.0, %v916_v7  ;;  %v1802_v28 = vadd.f32 -10.0, %v2939_v40  ;;  %v529_v43 = vsub.f32 %v2633_v9, %v2655_v21  ;;  %v1813_v9 = vld [vmem:[%s2661_s14 + $0x26] sm:$0x1] }
  0xe4   : > { %v521_v58 = vadd.f32 %v520_v35, %v2719_v25  ;;  %v736_v25 = vmul.f32 %v735_v34, %v2776_v20  ;;  %v926_v53 = vand.u32 2147483647, %v1800_v37  ;;  %v731_v20 = vadd.f32 %v2978_v46, %v721_v57 }
  0xe5   : > { %v833_v52 = vmax.f32 %v829_v24, %v3013_v6  ;;  %v899_v34 = vmul.f32 %v898_v14, %v2945_v1  ;;  %v745_v35 = vmax.f32 %v744_v51, 0.0  ;;  %v936_v46 = vand.u32 2147483647, %v1801_v17 }
  0xe6   : > { %v522_v36 = vsub.f32 %v2909_v59, %v521_v58  ;;  %v1774_v59 = vadd.f32 -15.0, %v2677_v42  ;;  %v737_v39 = vadd.f32 %v736_v25, %v727_v55  ;;  %v927_v63 = vsub.f32 1.0, %v926_v53 }
  0xe7   : > { %v837_v44 = vmax.f32 %v833_v52, %v3022_v12  ;;  %v2019_v16 = vpop.eup %2018  ;;  %v741_v41 = vadd.f32 %v2017_v13, %v731_v20  ;;  %v1775_v3 = vadd.f32 -16.0, %v2677_v42  ;;  %v900_v57 = vadd.f32 %v899_v34, %v890_v48 }
  0xe8   : > { %523 = vst [vmem:[%s3026_s9] sm:$0x3] %v522_v36  ;;  %v753_v47 = vand.u32 2147483647, %v1774_v59  ;;  %v909_v38 = vmul.f32 %v908_v19, %v2957_v61  ;;  %v918_v23 = vmax.f32 %v917_v60, 0.0  ;;  %v946_v37 = vand.u32 2147483647, %v1802_v28 }
  0xe9   : > { %v3042_v58 = vmax.f32 %v837_v44, %v3033_v5  ;;  %v928_v36 = vmax.f32 %v927_v63, 0.0  ;;  %v937_v62 = vsub.f32 1.0, %v936_v46  ;;  %v1803_v11 = vadd.f32 -11.0, %v2939_v40 }
  0xea   : > { %v746_v49 = vmul.f32 %v745_v35, %v2778_v22  ;;  %v910_v24 = vadd.f32 %v909_v38, %v900_v57  ;;  %v751_v13 = vadd.f32 %v2019_v16, %v741_v41  ;;  %v754_v59 = vsub.f32 1.0, %v753_v47 }
  0xeb   : > { %v842_v31 = vsub.f32 %v2911_v54, %v3042_v58  ;;  %v851_v55 = vsub.f32 %v2916_v27, %v3042_v58  ;;  %v861_v50 = vsub.f32 %v2918_v33, %v3042_v58  ;;  %v871_v42 = vsub.f32 %v2926_v18, %v3042_v58  ;;  %v2021_v51 = vpop.eup %2020 }
  0xec   : > { %v881_v14 = vsub.f32 %v2937_v0, %v3042_v58  ;;  %v891_v33 = vsub.f32 %v2945_v1, %v3042_v58  ;;  %v919_v18 = vmul.f32 %v918_v23, %v2964_v10  ;;  %v1804_v0 = vadd.f32 -12.0, %v2939_v40 }
  0xed   : > { %v843_v7 = vmul.f32 1.442695, %v842_v31  ;;  %v852_v54 = vmul.f32 1.442695, %v851_v55  ;;  %v862_v25 = vmul.f32 1.442695, %v861_v50  ;;  %v901_v22 = vsub.f32 %v2957_v61, %v3042_v58 }
  0xee   : > { %v872_v27 = vmul.f32 1.442695, %v871_v42  ;;  %v882_v53 = vmul.f32 1.442695, %v881_v14  ;;  %v947_v17 = vsub.f32 1.0, %v946_v37  ;;  %v929_v20 = vmul.f32 %v928_v36, %v2970_v4 }
  0xef   : > { %2022 = vpow2.f32 %v843_v7  ;;  %v938_v52 = vmax.f32 %v937_v62, 0.0  ;;  %v956_v34 = vand.u32 2147483647, %v1803_v11  ;;  %v892_v1 = vmul.f32 1.442695, %v891_v33 }
  0xf0   : > { %2024 = vpow2.f32 %v852_v54  ;;  %v911_v48 = vsub.f32 %v2964_v10, %v3042_v58  ;;  %v920_v19 = vadd.f32 %v919_v18, %v910_v24  ;;  %v3066_v60 = vadd.f32 %v746_v49, %v737_v39  ;;  %v1809_v62 = vld [vmem:[%s2661_s14 + $0x22] sm:$0x1]  ;;  %v1810_v54 = vld [vmem:[%s2661_s14 + $0x23] sm:$0x1] }
  0xf1   : > { %2026 = vpow2.f32 %v862_v25  ;;  %v761_v28 = vadd.f32 %v2021_v51, %v751_v13  ;;  %v763_v44 = vand.u32 2147483647, %v1775_v3  ;;  %v966_v35 = vand.u32 2147483647, %v1804_v0  ;;  %v1811_v25 = vld [vmem:[%s2661_s14 + $0x24] sm:$0x1] }
  0xf2   : > { %2028 = vpow2.f32 %v872_v27  ;;  %v755_v63 = vmax.f32 %v754_v59, 0.0  ;;  %v902_v61 = vmul.f32 1.442695, %v901_v22  ;;  %v921_v46 = vsub.f32 %v2970_v4, %v3042_v58 }
  0xf3   : > { %2030 = vpow2.f32 %v882_v53  ;;  %v939_v16 = vmul.f32 %v938_v52, %v2976_v8  ;;  %v948_v41 = vmax.f32 %v947_v17, 0.0  ;;  %v957_v47 = vsub.f32 1.0, %v956_v34  ;;  %v1812_v53 = vld [vmem:[%s2661_s14 + $0x25] sm:$0x1] }
  0xf4   : > { %v3072_v57 = vadd.f32 -13.0, %v2939_v40  ;;  %2032 = vpow2.f32 %v892_v1  ;;  %v912_v10 = vmul.f32 1.442695, %v911_v48  ;;  %v930_v39 = vadd.f32 %v929_v20, %v920_v19 }
  0xf5   : > { %v931_v3 = vsub.f32 %v2976_v8, %v3042_v58  ;;  %v3076_v38 = vsub.f32 1.0, %v763_v44  ;;  %2034 = vlog2.f32 %v761_v28  ;;  %v967_v23 = vsub.f32 1.0, %v966_v35 }
  0xf6   : > { %v3079_v4 = vadd.f32 -14.0, %v2939_v40  ;;  %v3082_v37 = vmul.f32 %v755_v63, %v2782_v30  ;;  %2036 = vpow2.f32 %v902_v61  ;;  %v922_v31 = vmul.f32 1.442695, %v921_v46  ;;  %v1814_v46 = vld [vmem:[%s2661_s14 + $0x27] sm:$0x1] }
  0xf7   : > { %v941_v55 = vsub.f32 %v2980_v26, %v3042_v58  ;;  %v949_v8 = vmul.f32 %v948_v41, %v2980_v26  ;;  %v958_v42 = vmax.f32 %v957_v47, 0.0  ;;  %v976_v14 = vand.u32 2147483647, %v3072_v57 }
  0xf8   : > { %v3089_v36 = vadd.f32 -15.0, %v2939_v40  ;;  %2038 = vpow2.f32 %v912_v10  ;;  %v932_v30 = vmul.f32 1.442695, %v931_v3  ;;  %v940_v49 = vadd.f32 %v939_v16, %v930_v39 }
  0xf9   : > { %v2023_v50 = vpop.eup %2022  ;;  %v951_v7 = vsub.f32 %v2992_v15, %v3042_v58  ;;  %v961_v26 = vsub.f32 %v2995_v56, %v3042_v58  ;;  %v968_v33 = vmax.f32 %v967_v23, 0.0  ;;  %v986_v24 = vand.u32 2147483647, %v3079_v4 }
  0xfa   : > { %v2025_v11 = vpop.eup %2024  ;;  %2040 = vpow2.f32 %v922_v31  ;;  %v942_v13 = vmul.f32 1.442695, %v941_v55  ;;  %v1016_v59 = vmax.f32 %v529_v43, 0.0  ;;  %v3102_v0 = vunpack.c.l.bf16 %v1809_v62 }
  0xfb   : > { %v2027_v51 = vpop.eup %2026  ;;  %v854_v27 = vadd.f32 %v2025_v11, %v2023_v50  ;;  %v959_v17 = vmul.f32 %v958_v42, %v2992_v15  ;;  %v3106_v20 = vunpack.c.l.bf16 %v1810_v54  ;;  %v3108_v52 = vunpack.c.l.bf16 %v1811_v25  ;;  %v1815_v50 = vld [vmem:[%s2661_s14 + $0x28] sm:$0x1]  ;;  %v1816_v11 = vld [vmem:[%s2661_s14 + $0x29] sm:$0x1] }
  0xfc   : > { %v2029_v18 = vpop.eup %2028  ;;  %2042 = vpow2.f32 %v932_v30  ;;  %v950_v1 = vadd.f32 %v949_v8, %v940_v49  ;;  %v952_v48 = vmul.f32 1.442695, %v951_v7  ;;  %v971_v19 = vsub.f32 %v3007_v45, %v3042_v58 }
  0xfd   : > { %v864_v22 = vadd.f32 %v2027_v51, %v854_v27  ;;  %v2031_v34 = vpop.eup %2030  ;;  %v996_v43 = vand.u32 2147483647, %v3089_v36  ;;  %v1024_v28 = vmax.f32 %v3102_v0, %v3106_v20  ;;  %v3116_v15 = vunpack.c.l.bf16 %v1812_v53 }
  0xfe   : > { %v2033_v44 = vpop.eup %2032  ;;  %2044 = vpow2.f32 %v942_v13  ;;  %v962_v35 = vmul.f32 1.442695, %v961_v26  ;;  %v981_v63 = vsub.f32 %v3013_v6, %v3042_v58  ;;  %v3120_v61 = vmin.f32 %v1016_v59, 15.99  ;;  %v1817_v26 = vld [vmem:[%s2661_s14 + $0x2a] sm:$0x1] }
  0xff   : > { %v874_v21 = vadd.f32 %v2029_v18, %v864_v22  ;;  %v3123_v16 = vpop.eup %2034  ;;  %v969_v47 = vmul.f32 %v968_v33, %v2995_v56  ;;  %v1028_v10 = vmax.f32 %v1024_v28, %v3108_v52  ;;  %v3127_v39 = vunpack.c.l.bf16 %v1813_v9  ;;  %v1818_v9 = vld [vmem:[%s2661_s14 + $0x2b] sm:$0x1] }
 0x100   : > { %v2037_v3 = vpop.eup %2036  ;;  %2046 = vpow2.f32 %v952_v48  ;;  %v960_v23 = vadd.f32 %v959_v17, %v950_v1  ;;  %v972_v31 = vmul.f32 1.442695, %v971_v19  ;;  %v991_v55 = vsub.f32 %v3022_v12, %v3042_v58 }
 0x101   : > { %v884_v41 = vadd.f32 %v2031_v34, %v874_v21  ;;  %v1001_v42 = vsub.f32 %v3033_v5, %v3042_v58  ;;  %v1032_v62 = vmax.f32 %v1028_v10, %v3116_v15  ;;  %v3135_v56 = vunpack.c.l.bf16 %v1814_v46 }
 0x102   : > { %v2039_v30 = vpop.eup %2038  ;;  %2048 = vpow2.f32 %v962_v35  ;;  %v982_v49 = vmul.f32 1.442695, %v981_v63  ;;  %v1089_v7 = vand.u32 2147483647, %v3120_v61  ;;  %v1826_v54 = vadd.f32 -1.0, %v3120_v61 }
 0x103   : > { %v894_v8 = vadd.f32 %v2033_v44, %v884_v41  ;;  %v1036_v51 = vmax.f32 %v1032_v62, %v3127_v39  ;;  %v3141_v27 = vunpack.c.l.bf16 %v1815_v50  ;;  %v1827_v33 = vadd.f32 -2.0, %v3120_v61  ;;  %v1820_v62 = vld [vmem:[%s2661_s14 + $0x2d] sm:$0x1] }
 0x104   : > { %v2041_v18 = vpop.eup %2040  ;;  %2050 = vpow2.f32 %v972_v31  ;;  %v977_v13 = vsub.f32 1.0, %v976_v14  ;;  %v992_v59 = vmul.f32 1.442695, %v991_v55  ;;  %v1099_v53 = vand.u32 2147483647, %v1826_v54 }
 0x105   : > { %v904_v25 = vadd.f32 %v2037_v3, %v894_v8  ;;  %v1002_v17 = vmul.f32 1.442695, %v1001_v42  ;;  %v1040_v34 = vmax.f32 %v1036_v51, %v3135_v56  ;;  %v3148_v1 = vunpack.c.l.bf16 %v1816_v11  ;;  %v1819_v14 = vld [vmem:[%s2661_s14 + $0x2c] sm:$0x1] }
 0x106   : > { %v2043_v48 = vpop.eup %2042  ;;  %2052 = vpow2.f32 %v982_v49  ;;  %v3150_v19 = vunpack.c.l.bf16 %v1817_v26  ;;  %v1090_v21 = vsub.f32 1.0, %v1089_v7  ;;  %v1828_v28 = vadd.f32 -3.0, %v3120_v61 }
 0x107   : > { %v914_v22 = vadd.f32 %v2039_v30, %v904_v25  ;;  %v1044_v57 = vmax.f32 %v1040_v34, %v3141_v27  ;;  %v1100_v35 = vsub.f32 1.0, %v1099_v53  ;;  %v1109_v63 = vand.u32 2147483647, %v1827_v33  ;;  %v1822_v34 = vld [vmem:[%s2661_s14 + $0x2f] sm:$0x1] }
 0x108   : > { %v2045_v46 = vpop.eup %2044  ;;  %v970_v41 = vadd.f32 %v969_v47, %v960_v23  ;;  %v978_v10 = vmax.f32 %v977_v13, 0.0  ;;  %v987_v3 = vsub.f32 1.0, %v986_v24  ;;  %2054 = vpow2.f32 %v992_v59  ;;  %v1821_v24 = vld [vmem:[%s2661_s14 + $0x2e] sm:$0x1] }
 0x109   : > { %v924_v44 = vadd.f32 %v2041_v18, %v914_v22  ;;  %2056 = vpow2.f32 %v1002_v17  ;;  %v1048_v55 = vmax.f32 %v1044_v57, %v3148_v1  ;;  %v3159_v50 = vunpack.c.l.bf16 %v1818_v9 }
 0x10a   : > { %v2047_v8 = vpop.eup %2046  ;;  %v3161_v42 = vunpack.c.l.bf16 %v1819_v14  ;;  %v1091_v11 = vmax.f32 %v1090_v21, 0.0  ;;  %v1119_v30 = vand.u32 2147483647, %v1828_v28  ;;  %v1829_v47 = vadd.f32 -4.0, %v3120_v61  ;;  %v1823_v21 = vld [vmem:[%s2661_s14 + $0x30] sm:$0x1] }
 0x10b   : > { %v934_v31 = vadd.f32 %v2043_v48, %v924_v44  ;;  %v1052_v4 = vmax.f32 %v1048_v55, %v3150_v19  ;;  %v1101_v49 = vmax.f32 %v1100_v35, 0.0  ;;  %v1110_v7 = vsub.f32 1.0, %v1109_v63 }
 0x10c   : > { %v2049_v54 = vpop.eup %2048  ;;  %v988_v25 = vmax.f32 %v987_v3, 0.0  ;;  %v997_v51 = vsub.f32 1.0, %v996_v43  ;;  %v1808_v26 = vadd.f32 -16.0, %v2939_v40  ;;  %v1830_v33 = vadd.f32 -5.0, %v3120_v61 }
 0x10d   : > { %v944_v23 = vadd.f32 %v2045_v46, %v934_v31  ;;  %v979_v13 = vmul.f32 %v978_v10, %v3007_v45  ;;  %v1056_v59 = vmax.f32 %v1052_v4, %v3159_v50  ;;  %v3173_v53 = vunpack.c.l.bf16 %v1820_v62 }
 0x10e   : > { %v2051_v22 = vpop.eup %2050  ;;  %v3175_v17 = vunpack.c.l.bf16 %v1821_v24  ;;  %v1092_v48 = vmul.f32 %v1091_v11, %v3102_v0  ;;  %v1120_v36 = vsub.f32 1.0, %v1119_v30  ;;  %v1129_v9 = vand.u32 2147483647, %v1829_v47  ;;  %v1824_v11 = vld [vmem:[%s2661_s14 + $0x31] sm:$0x1] }
 0x10f   : > { %v954_v18 = vadd.f32 %v2047_v8, %v944_v23  ;;  %v1060_v40 = vmax.f32 %v1056_v59, %v3161_v42  ;;  %v1102_v28 = vmul.f32 %v1101_v49, %v3106_v20  ;;  %v1111_v45 = vmax.f32 %v1110_v7, 0.0  ;;  %v1825_v24 = vld [vmem:[%s2661_s14 + $0x32] sm:$0x1] }
 0x110   : > { %v2053_v44 = vpop.eup %2052  ;;  %v989_v57 = vmul.f32 %v988_v25, %v3013_v6  ;;  %v1006_v14 = vand.u32 2147483647, %v1808_v26  ;;  %v1139_v35 = vand.u32 2147483647, %v1830_v33  ;;  %v1831_v63 = vadd.f32 -6.0, %v3120_v61 }
 0x111   : > { %v964_v43 = vadd.f32 %v2049_v54, %v954_v18  ;;  %v998_v10 = vmax.f32 %v997_v51, 0.0  ;;  %v1064_v3 = vmax.f32 %v1060_v40, %v3173_v53  ;;  %v3185_v31 = vunpack.c.l.bf16 %v1822_v34 }
 0x112   : > { %v2055_v55 = vpop.eup %2054  ;;  %v980_v8 = vadd.f32 %v979_v13, %v970_v41  ;;  %v3187_v62 = vunpack.c.l.bf16 %v1823_v21  ;;  %v1121_v30 = vmax.f32 %v1120_v36, 0.0  ;;  %v3190_v47 = vsub.f32 1.0, %v1129_v9 }
 0x113   : > { %v974_v46 = vadd.f32 %v2051_v22, %v964_v43  ;;  %v2057_v6 = vpop.eup %2056  ;;  %v1068_v4 = vmax.f32 %v1064_v3, %v3175_v17  ;;  %v1103_v49 = vadd.f32 %v1102_v28, %v1092_v48  ;;  %v1112_v7 = vmul.f32 %v1111_v45, %v3108_v52 }
 0x114   : > { %v765_v54 = vmax.f32 %v3076_v38, 0.0  ;;  %v3196_v25 = vsub.f32 1.0, %v1006_v14  ;;  %v3198_v41 = vsub.f32 1.0, %v1139_v35  ;;  %v1149_v51 = vand.u32 2147483647, %v1831_v63 }
 0x115   : > { %v984_v23 = vadd.f32 %v2053_v44, %v974_v46  ;;  %v999_v33 = vmul.f32 %v998_v10, %v3022_v12  ;;  %v1072_v18 = vmax.f32 %v1068_v4, %v3185_v31  ;;  %v3202_v13 = vunpack.c.l.bf16 %v1824_v11 }
 0x116   : > { %v990_v59 = vadd.f32 %v989_v57, %v980_v8  ;;  %v3206_v22 = vunpack.c.l.bf16 %v1825_v24  ;;  %v1131_v38 = vmax.f32 %v3190_v47, 0.0  ;;  %v1832_v34 = vadd.f32 -7.0, %v3120_v61 }
 0x117   : > { %v994_v26 = vadd.f32 %v2055_v55, %v984_v23  ;;  %v1076_v36 = vmax.f32 %v1072_v18, %v3187_v62  ;;  %v1113_v9 = vadd.f32 %v1112_v7, %v1103_v49  ;;  %v1122_v12 = vmul.f32 %v1121_v30, %v3116_v15 }
 0x118   : > { %v1008_v43 = vmax.f32 %v3196_v25, 0.0  ;;  %v1141_v40 = vmax.f32 %v3198_v41, 0.0  ;;  %v3223_v21 = vsub.f32 1.0, %v1149_v51  ;;  %v3226_v28 = vadd.f32 -8.0, %v3120_v61 }
 0x119   : > { %v1004_v48 = vadd.f32 %v2057_v6, %v994_v26 }
 0x11a   : > { %2236 = shalt.err (!%p2233_p13)
}
 0x11b   : > { %s2237_s24 = scalar_lea.hbm %s3217_s26, 32  ;;  %s2241_s10 = scalar_lea.hbm %s3534_s4, 64 }
 0x11c   : > { %p2238_p11 = scmp.ne.s32.totalorder %s3217_s26, %s2237_s24  ;;  %p2242_p7 = scmp.lt.u32.totalorder %s3217_s26, %s3534_s4 }
 0x11d   : > { %p2243_p4 = scmp.lt.u32.totalorder %s2241_s10, %s2237_s24  ;;  %p2245_p0 = scmp.lt.u32.totalorder %s2237_s24, %s3217_s26 }
 0x11e   : > { %p2239_p2 = pnand %p2238_p11, %p3571_p10 }
 0x11f   : > { %p2244_p3 = por %p2243_p4, %p2242_p7 }
 0x120   : > { %p2240_p5 = pneg %p2239_p2 }
 0x121   : > { %p2246_p8 = por %p2245_p0, %p2244_p3 }
 0x123   : > { %p2247_p9 = pnand %p2246_p8, %p2240_p5 }
 0x125   : > { %2250 = shalt.err (!%p2247_p9)
}
 0x126   : > { %1892 = dma.vmem_to_hbm [thread:$0]  (%p3571_p10), %s3219_s28, 32, %s3217_s26, %s1505_s20   ;;  %v757_v45 = vadd.f32 %v3082_v37, %v3066_v60  ;;  %v766_v44 = vmul.f32 %v765_v54, %v2784_v32  ;;  %2058 = vlog2.f32 %v1004_v48  ;;  %v1080_v57 = vmax.f32 %v1076_v36, %v3202_v13 }
 0x127   : > { %v769_v14 = vmul.f32 0.6931472, %v3123_v16  ;;  %v1159_v35 = vand.u32 2147483647, %v1832_v34  ;;  %v1834_v63 = vadd.f32 -9.0, %v3120_v61  ;;  %v1835_v46 = vadd.f32 -10.0, %v3120_v61  ;;  %s3481_s15 = scalar_lea.hbm %s3535_s5, %s1877_s16 }
 0x128   : > { %v1000_v10 = vadd.f32 %v999_v33, %v990_v59  ;;  %v3258_v3 = vmax.f32 %v1080_v57, %v3206_v22  ;;  %v1123_v55 = vadd.f32 %v1122_v12, %v1113_v9  ;;  %v1132_v8 = vmul.f32 %v1131_v38, %v3127_v39  ;;  %s1510_s26 = scalar_lea.sflag [#allocation10], %s2595_s29 }
 0x129   : > { %v1009_v60 = vmul.f32 %v1008_v43, %v3033_v5  ;;  %v1142_v32 = vmul.f32 %v1141_v40, %v3135_v56  ;;  %v1151_v37 = vmax.f32 %v3223_v21, 0.0  ;;  %v1169_v16 = vand.u32 2147483647, %v3226_v28 }
 0x12a   : > { %v1085_v11 = vsub.f32 %v3102_v0, %v3258_v3  ;;  %v1094_v30 = vsub.f32 %v3106_v20, %v3258_v3  ;;  %v1104_v47 = vsub.f32 %v3108_v52, %v3258_v3  ;;  %v1114_v6 = vsub.f32 %v3116_v15, %v3258_v3 }
 0x12b   : > { %v1124_v5 = vsub.f32 %v3127_v39, %v3258_v3  ;;  %v1160_v23 = vsub.f32 1.0, %v1159_v35  ;;  %v1179_v4 = vand.u32 2147483647, %v1834_v63  ;;  %v1189_v24 = vand.u32 2147483647, %v1835_v46 }
 0x12c   : > { %v1086_v49 = vmul.f32 1.442695, %v1085_v11  ;;  %v1095_v7 = vmul.f32 1.442695, %v1094_v30  ;;  %v1105_v54 = vmul.f32 1.442695, %v1104_v47  ;;  %v1133_v25 = vadd.f32 %v1132_v8, %v1123_v55 }
 0x12d   : > { %v767_v0 = vadd.f32 %v766_v44, %v757_v45  ;;  %v770_v41 = vadd.f32 %v769_v14, %v2814_v29  ;;  %v1115_v20 = vmul.f32 1.442695, %v1114_v6  ;;  %v1134_v52 = vsub.f32 %v3135_v56, %v3258_v3  ;;  %v1842_v30 = vld [vmem:[%s2661_s14 + $0x33] sm:$0x1] }
 0x12e   : > { %v1010_v51 = vadd.f32 %v1009_v60, %v1000_v10  ;;  %2060 = vpow2.f32 %v1086_v49  ;;  %v1152_v15 = vmul.f32 %v1151_v37, %v3141_v27  ;;  %v1170_v26 = vsub.f32 1.0, %v1169_v16  ;;  %v2132_v60 = vld [vmem:[%s2604_s17 + $0x6] sm:$0x3]  ;;  %s368_s17 = scalar_lea.vmem [#allocation9], %s1729_s23  ;;  %s2354_s23 = smov [#allocation9]  }
 0x12f   : > { %2062 = vpow2.f32 %v1095_v7  ;;  %v1125_v39 = vmul.f32 1.442695, %v1124_v5  ;;  %v1144_v33 = vsub.f32 %v3141_v27, %v3258_v3  ;;  %v1180_v18 = vsub.f32 1.0, %v1179_v4  ;;  %v1843_v4 = vld [vmem:[%s2661_s14 + $0x34] sm:$0x1]  ;;  %s2255_s7 = sshll.u32 %s2354_s23, 4  ;;  %s2256_s7 = int_to_ptr.vmem [resolvable:$false] %s2255_s7 }
 0x130   : > { %v2059_v59 = vpop.eup %2058  ;;  %2064 = vpow2.f32 %v1105_v54  ;;  %v1143_v38 = vadd.f32 %v1142_v32, %v1133_v25  ;;  %v1161_v34 = vmax.f32 %v1160_v23, 0.0  ;;  %v1190_v29 = vsub.f32 1.0, %v1189_v24  ;;  %s2257_s21 = scalar_lea.vmem %s2256_s7, 64 }
 0x131   : > { %v1012_v48 = vmul.f32 0.6931472, %v2059_v59  ;;  %2066 = vpow2.f32 %v1115_v20  ;;  %v1135_v36 = vmul.f32 1.442695, %v1134_v52  ;;  %v1154_v56 = vsub.f32 %v3148_v1, %v3258_v3  ;;  %v1846_v59 = vld [vmem:[%s2661_s14 + $0x37] sm:$0x1] }
 0x132   : > { %v771_v9 = vsub.f32 %v770_v41, %v767_v0  ;;  %v1171_v12 = vmax.f32 %v1170_v26, 0.0  ;;  %v1836_v43 = vadd.f32 -11.0, %v3120_v61  ;;  %2068 = vpow2.f32 %v1125_v39  ;;  %v1845_v41 = vld [vmem:[%s2661_s14 + $0x36] sm:$0x1] }
 0x133   : > { %v1013_v40 = vadd.f32 %v1012_v48, %v3042_v58  ;;  %v1145_v27 = vmul.f32 1.442695, %v1144_v33  ;;  %v1164_v21 = vsub.f32 %v3150_v19, %v3258_v3  ;;  %v1153_v28 = vadd.f32 %v1152_v15, %v1143_v38 }
 0x134   : > { %v1162_v45 = vmul.f32 %v1161_v34, %v3148_v1  ;;  %v1181_v44 = vmax.f32 %v1180_v18, 0.0  ;;  %v1191_v57 = vmax.f32 %v1190_v29, 0.0  ;;  %2070 = vpow2.f32 %v1135_v36 }
 0x135   : > { %v1014_v14 = vsub.f32 %v1013_v40, %v1010_v51  ;;  %v1155_v35 = vmul.f32 1.442695, %v1154_v56  ;;  %v1174_v63 = vsub.f32 %v3159_v50, %v3258_v3  ;;  %v1199_v46 = vand.u32 2147483647, %v1836_v43  ;;  %v1847_v43 = vld [vmem:[%s2661_s14 + $0x38] sm:$0x1] }
 0x136   : > { %v1837_v58 = vadd.f32 -12.0, %v3120_v61  ;;  %2072 = vpow2.f32 %v1145_v27  ;;  %v1165_v55 = vmul.f32 1.442695, %v1164_v21  ;;  %v1184_v1 = vsub.f32 %v3161_v42, %v3258_v3 }
 0x137   : > { %v3291_v10 = vadd.f32 %v1014_v14, %v771_v9  ;;  %v530_v32 = vsub.f32 %v2132_v60, %v2897_v2  ;;  %v1163_v37 = vadd.f32 %v1162_v45, %v1153_v28  ;;  %v1172_v16 = vmul.f32 %v1171_v12, %v3150_v19  ;;  %v1844_v19 = vld [vmem:[%s2661_s14 + $0x35] sm:$0x1] }
 0x138   : > { %v2061_v8 = vpop.eup %2060  ;;  %v1182_v11 = vmul.f32 %v1181_v44, %v3159_v50  ;;  %2074 = vpow2.f32 %v1155_v35  ;;  %v1175_v6 = vmul.f32 1.442695, %v1174_v63  ;;  %v1192_v5 = vmul.f32 %v1191_v57, %v3161_v42  ;;  %v1848_v35 = vld [vmem:[%s2661_s14 + $0x39] sm:$0x1] }
 0x139   : > { %v2063_v47 = vpop.eup %2062  ;;  %v1194_v23 = vsub.f32 %v3173_v53, %v3258_v3  ;;  %v1200_v2 = vsub.f32 1.0, %v1199_v46  ;;  %v1209_v7 = vand.u32 2147483647, %v1837_v58  ;;  %v3305_v54 = vadd.f32 -13.0, %v3120_v61 }
 0x13a   : > { %v2065_v24 = vpop.eup %2064  ;;  %v1097_v49 = vadd.f32 %v2063_v47, %v2061_v8  ;;  %2076 = vpow2.f32 %v1165_v55  ;;  %v1185_v25 = vmul.f32 1.442695, %v1184_v1  ;;  %v1204_v0 = vsub.f32 %v3175_v17, %v3258_v3 }
 0x13b   : > { %v2067_v50 = vpop.eup %2066  ;;  %v3310_v42 = vunpack.c.l.bf16 %v1842_v30  ;;  %v1173_v52 = vadd.f32 %v1172_v16, %v1163_v37  ;;  %v3314_v51 = vadd.f32 -14.0, %v3120_v61  ;;  %v3316_v15 = vunpack.c.l.bf16 %v1843_v4  ;;  %v1849_v37 = vld [vmem:[%s2661_s14 + $0x3a] sm:$0x1] }
 0x13c   : > { %v1107_v20 = vadd.f32 %v2065_v24, %v1097_v49  ;;  %v2069_v26 = vpop.eup %2068  ;;  %2078 = vpow2.f32 %v1175_v6  ;;  %v1195_v39 = vmul.f32 1.442695, %v1194_v23  ;;  %v1214_v33 = vsub.f32 %v3185_v31, %v3258_v3  ;;  %v1850_v24 = vld [vmem:[%s2661_s14 + $0x3b] sm:$0x1] }
 0x13d   : > { %v3320_v18 = vunpack.c.l.bf16 %v1844_v19  ;;  %v1201_v34 = vmax.f32 %v1200_v2, 0.0  ;;  %v1267_v29 = vmax.f32 %v3310_v42, %v3316_v15  ;;  %v3325_v48 = vunpack.c.l.bf16 %v1845_v41 }
 0x13e   : > { %v1117_v38 = vadd.f32 %v2067_v50, %v1107_v20  ;;  %v2071_v36 = vpop.eup %2070  ;;  %2080 = vpow2.f32 %v1185_v25  ;;  %v1205_v56 = vmul.f32 1.442695, %v1204_v0  ;;  %v1210_v9 = vsub.f32 1.0, %v1209_v7  ;;  %v1851_v0 = vld [vmem:[%s2661_s14 + $0x3c] sm:$0x1] }
 0x13f   : > { %v1224_v12 = vsub.f32 %v3187_v62, %v3258_v3  ;;  %v1259_v27 = vmax.f32 %v530_v32, 0.0  ;;  %v1271_v21 = vmax.f32 %v1267_v29, %v3320_v18  ;;  %v3331_v28 = vunpack.c.l.bf16 %v1846_v59 }
 0x140   : > { %v1127_v40 = vadd.f32 %v2069_v26, %v1117_v38  ;;  %v2073_v45 = vpop.eup %2072  ;;  %v1183_v44 = vadd.f32 %v1182_v11, %v1173_v52  ;;  %2082 = vpow2.f32 %v1195_v39  ;;  %v1215_v57 = vmul.f32 1.442695, %v1214_v33  ;;  %v1852_v52 = vld [vmem:[%s2661_s14 + $0x3d] sm:$0x1] }
 0x141   : > { %v1234_v14 = vsub.f32 %v3202_v13, %v3258_v3  ;;  %v1219_v46 = vand.u32 2147483647, %v3305_v54  ;;  %v1275_v58 = vmax.f32 %v1271_v21, %v3325_v48  ;;  %v3338_v55 = vunpack.c.l.bf16 %v1847_v43  ;;  %v1853_v43 = vld [vmem:[%s2661_s14 + $0x3e] sm:$0x1]  ;;  %v1854_v21 = vld [vmem:[%s2661_s14 + $0x3f] sm:$0x1] }
 0x142   : > { %v1137_v63 = vadd.f32 %v2071_v36, %v1127_v40  ;;  %v2075_v1 = vpop.eup %2074  ;;  %v1202_v8 = vmul.f32 %v1201_v34, %v3173_v53  ;;  %2084 = vpow2.f32 %v1205_v56  ;;  %v1225_v60 = vmul.f32 1.442695, %v1224_v12 }
 0x143   : > { %v1244_v32 = vsub.f32 %v3206_v22, %v3258_v3  ;;  %v3344_v11 = vmin.f32 %v1259_v27, 15.99  ;;  %v1279_v30 = vmax.f32 %v1275_v58, %v3331_v28  ;;  %v3347_v47 = vunpack.c.l.bf16 %v1848_v35 }
 0x144   : > { %v1147_v16 = vadd.f32 %v2073_v45, %v1137_v63  ;;  %v2077_v6 = vpop.eup %2076  ;;  %v1193_v23 = vadd.f32 %v1192_v5, %v1183_v44  ;;  %v1211_v4 = vmax.f32 %v1210_v9, 0.0  ;;  %2086 = vpow2.f32 %v1215_v57 }
 0x145   : > { %v1235_v53 = vmul.f32 1.442695, %v1234_v14  ;;  %v1229_v2 = vand.u32 2147483647, %v3314_v51  ;;  %v1283_v7 = vmax.f32 %v1279_v30, %v3338_v55  ;;  %v3352_v54 = vunpack.c.l.bf16 %v1849_v37 }
 0x146   : > { %v1157_v49 = vadd.f32 %v2075_v1, %v1147_v16  ;;  %v2079_v19 = vpop.eup %2078  ;;  %v1220_v50 = vsub.f32 1.0, %v1219_v46  ;;  %2088 = vpow2.f32 %v1225_v60  ;;  %v1245_v25 = vmul.f32 1.442695, %v1244_v32  ;;  %v1855_v16 = vld [vmem:[%s2661_s14 + $0x40] sm:$0x1] }
 0x147   : > { %v1287_v5 = vmax.f32 %v1283_v7, %v3347_v47  ;;  %v3356_v20 = vunpack.c.l.bf16 %v1850_v24  ;;  %v1859_v26 = vadd.f32 -1.0, %v3344_v11  ;;  %v1203_v51 = vadd.f32 %v1202_v8, %v1193_v23 }
 0x148   : > { %v1167_v41 = vadd.f32 %v2077_v6, %v1157_v49  ;;  %v2081_v39 = vpop.eup %2080  ;;  %v1212_v33 = vmul.f32 %v1211_v4, %v3175_v17  ;;  %2090 = vpow2.f32 %v1235_v53  ;;  %v1840_v59 = vadd.f32 -15.0, %v3120_v61 }
 0x149   : > { %v1230_v34 = vsub.f32 1.0, %v1229_v2  ;;  %v1291_v29 = vmax.f32 %v1287_v5, %v3352_v54  ;;  %v3363_v36 = vunpack.c.l.bf16 %v1851_v0  ;;  %v1221_v9 = vmax.f32 %v1220_v50, 0.0 }
 0x14a   : > { %v1177_v38 = vadd.f32 %v2079_v19, %v1167_v41  ;;  %v2083_v56 = vpop.eup %2082  ;;  %2092 = vpow2.f32 %v1245_v25  ;;  %v3365_v12 = vunpack.c.l.bf16 %v1852_v52  ;;  %v1332_v40 = vand.u32 2147483647, %v3344_v11 }
 0x14b   : > { %v1295_v17 = vmax.f32 %v1291_v29, %v3356_v20  ;;  %v1342_v45 = vand.u32 2147483647, %v1859_v26  ;;  %v1860_v44 = vadd.f32 -2.0, %v3344_v11  ;;  %v1213_v14 = vadd.f32 %v1212_v33, %v1203_v51  ;;  %v1857_v26 = vld [vmem:[%s2661_s14 + $0x42] sm:$0x1] }
 0x14c   : > { %v1187_v27 = vadd.f32 %v2081_v39, %v1177_v38  ;;  %v2085_v57 = vpop.eup %2084  ;;  %v1239_v35 = vand.u32 2147483647, %v1840_v59  ;;  %v1841_v63 = vadd.f32 -16.0, %v3120_v61  ;;  %v1231_v58 = vmax.f32 %v1230_v34, 0.0  ;;  %v1856_v61 = vld [vmem:[%s2661_s14 + $0x41] sm:$0x1] }
 0x14d   : > { %v1299_v1 = vmax.f32 %v1295_v17, %v3363_v36  ;;  %v3374_v8 = vunpack.c.l.bf16 %v1853_v43  ;;  %v1222_v32 = vmul.f32 %v1221_v9, %v3185_v31  ;;  %v3377_v37 = vunpack.c.l.bf16 %v1854_v21  ;;  %v1858_v38 = vld [vmem:[%s2661_s14 + $0x43] sm:$0x1]  ;;  %s1538_s14 = sshll.u32 %s368_s17, 4  ;;  %s3483_s14 = int_to_ptr.vmem [resolvable:$true] %s1538_s14 }
 0x14e   : > { %v1197_v46 = vadd.f32 %v2083_v56, %v1187_v27  ;;  %v2087_v60 = vpop.eup %2086  ;;  %v1333_v30 = vsub.f32 1.0, %v1332_v40  ;;  %v1861_v6 = vadd.f32 -3.0, %v3344_v11  ;;  %v1343_v53 = vsub.f32 1.0, %v1342_v45  ;;  %s2251_s20 = scalar_lea.vmem %s3483_s14, 32  ;;  %p2258_p13 = scmp.lt.s32.totalorder %s3483_s14, %s2256_s7 }
 0x14f   : > { %v1303_v4 = vmax.f32 %v1299_v1, %v3365_v12  ;;  %v1352_v24 = vand.u32 2147483647, %v1860_v44  ;;  %v1240_v2 = vsub.f32 1.0, %v1239_v35  ;;  %v1249_v7 = vand.u32 2147483647, %v1841_v63  ;;  %p2252_p12 = scmp.ne.s32.totalorder %s3483_s14, %s2251_s20  ;;  %p2259_p11 = scmp.lt.s32.totalorder %s2257_s21, %s2251_s20 }
 0x150   : > { %v1207_v23 = vadd.f32 %v2085_v57, %v1197_v46  ;;  %v2089_v49 = vpop.eup %2088  ;;  %v1862_v19 = vadd.f32 -4.0, %v3344_v11  ;;  %v1232_v50 = vmul.f32 %v1231_v58, %v3187_v62  ;;  %v3386_v0 = vunpack.c.l.bf16 %v1855_v16 }
 0x151   : > { %v1307_v25 = vmax.f32 %v1303_v4, %v3374_v8  ;;  %v1223_v5 = vadd.f32 %v1222_v32, %v1213_v14  ;;  %v3388_v52 = vunpack.c.l.bf16 %v1856_v61  ;;  %v1334_v39 = vmax.f32 %v1333_v30, 0.0  ;;  %p2253_p1 = pnand %p2252_p12, %p3571_p10  ;;  %p2260_p2 = por %p2259_p11, %p2258_p13 }
 0x152   : > { %v1217_v31 = vadd.f32 %v2087_v60, %v1207_v23  ;;  %v2091_v41 = vpop.eup %2090  ;;  %v1362_v51 = vand.u32 2147483647, %v1861_v6  ;;  %v1344_v34 = vmax.f32 %v1343_v53, 0.0  ;;  %v1353_v29 = vsub.f32 1.0, %v1352_v24 }
 0x153   : > { %v1311_v59 = vmax.f32 %v1307_v25, %v3377_v37  ;;  %v1241_v9 = vmax.f32 %v1240_v2, 0.0  ;;  %v1250_v62 = vsub.f32 1.0, %v1249_v7  ;;  %v1372_v43 = vand.u32 2147483647, %v1862_v19  ;;  %p2254_p6 = pneg %p2253_p1 }
 0x154   : > { %v1227_v33 = vadd.f32 %v2089_v49, %v1217_v31  ;;  %v2093_v56 = vpop.eup %2092  ;;  %v1863_v40 = vadd.f32 -5.0, %v3344_v11  ;;  %v3395_v21 = vunpack.c.l.bf16 %v1857_v26  ;;  %v1233_v45 = vadd.f32 %v1232_v50, %v1223_v5 }
 0x155   : > { %v1315_v17 = vmax.f32 %v1311_v59, %v3386_v0  ;;  %v3397_v44 = vunpack.c.l.bf16 %v1858_v38  ;;  %v1335_v57 = vmul.f32 %v1334_v39, %v3310_v42  ;;  %v1363_v14 = vsub.f32 1.0, %v1362_v51  ;;  %p2261_p5 = pnand %p2260_p2, %p2254_p6 }
 0x156   : > { %v1237_v27 = vadd.f32 %v2091_v41, %v1227_v33  ;;  %v1345_v46 = vmul.f32 %v1344_v34, %v3316_v15  ;;  %v1354_v58 = vmax.f32 %v1353_v29, 0.0  ;;  %v1242_v1 = vmul.f32 %v1241_v9, %v3202_v13 }
 0x157   : > { %v1319_v63 = vmax.f32 %v1315_v17, %v3388_v52  ;;  %v1251_v60 = vmax.f32 %v1250_v62, 0.0  ;;  %v1373_v32 = vsub.f32 1.0, %v1372_v43  ;;  %v1382_v16 = vand.u32 2147483647, %v1863_v40 }
 0x158   : > { %v1247_v35 = vadd.f32 %v2093_v56, %v1237_v27  ;;  %v1364_v6 = vmax.f32 %v1363_v14, 0.0  ;;  %v1864_v23 = vadd.f32 -6.0, %v3344_v11  ;;  %v1346_v61 = vadd.f32 %v1345_v46, %v1335_v57 }
 0x159   : > { %v1323_v30 = vmax.f32 %v1319_v63, %v3395_v21  ;;  %v1355_v53 = vmul.f32 %v1354_v58, %v3320_v18  ;;  %v1243_v24 = vadd.f32 %v1242_v1, %v1233_v45  ;;  %v1252_v49 = vmul.f32 %v1251_v60, %v3206_v22 }
 0x15a   : > { %2094 = vlog2.f32 %v1247_v35  ;;  %v1374_v2 = vmax.f32 %v1373_v32, 0.0  ;;  %v1383_v13 = vsub.f32 1.0, %v1382_v16  ;;  %v1365_v25 = vmul.f32 %v1364_v6, %v3325_v48 }
 0x15b   : > { %v3406_v4 = vmax.f32 %v1323_v30, %v3397_v44  ;;  %v1392_v22 = vand.u32 2147483647, %v1864_v23  ;;  %v1865_v5 = vadd.f32 -7.0, %v3344_v11  ;;  %v1356_v51 = vadd.f32 %v1355_v53, %v1346_v61 }
 0x15c   : > { %v1375_v59 = vmul.f32 %v1374_v2, %v3331_v28  ;;  %v1384_v38 = vmax.f32 %v1383_v13, 0.0  ;;  %v1866_v29 = vadd.f32 -8.0, %v3344_v11  ;;  %v1867_v45 = vadd.f32 -9.0, %v3344_v11 }
 0x15d   : > { %v1328_v7 = vsub.f32 %v3310_v42, %v3406_v4  ;;  %v1337_v19 = vsub.f32 %v3316_v15, %v3406_v4  ;;  %v1347_v31 = vsub.f32 %v3320_v18, %v3406_v4  ;;  %v1357_v50 = vsub.f32 %v3325_v48, %v3406_v4 }
 0x15e   : > { %v1367_v41 = vsub.f32 %v3331_v28, %v3406_v4  ;;  %v1377_v15 = vsub.f32 %v3338_v55, %v3406_v4  ;;  %v1253_v18 = vadd.f32 %v1252_v49, %v1243_v24  ;;  %v1387_v34 = vsub.f32 %v3347_v47, %v3406_v4 }
 0x15f   : > { %v1329_v26 = vmul.f32 1.442695, %v1328_v7  ;;  %v1338_v39 = vmul.f32 1.442695, %v1337_v19  ;;  %v1348_v42 = vmul.f32 1.442695, %v1347_v31  ;;  %v1366_v9 = vadd.f32 %v1365_v25, %v1356_v51 }
 0x160   : > { %v1358_v33 = vmul.f32 1.442695, %v1357_v50  ;;  %v1368_v48 = vmul.f32 1.442695, %v1367_v41  ;;  %v1393_v62 = vsub.f32 1.0, %v1392_v22  ;;  %v1397_v17 = vsub.f32 %v3352_v54, %v3406_v4 }
 0x161   : > { %2096 = vpow2.f32 %v1329_v26  ;;  %v1402_v43 = vand.u32 2147483647, %v1865_v5  ;;  %v1378_v27 = vmul.f32 1.442695, %v1377_v15  ;;  %v1385_v28 = vmul.f32 %v1384_v38, %v3338_v55 }
 0x162   : > { %2098 = vpow2.f32 %v1338_v39  ;;  %v1388_v14 = vmul.f32 1.442695, %v1387_v34  ;;  %v1407_v35 = vsub.f32 %v3356_v20, %v3406_v4  ;;  %v1376_v63 = vadd.f32 %v1375_v59, %v1366_v9 }
 0x163   : > { %2100 = vpow2.f32 %v1348_v42  ;;  %v1394_v46 = vmax.f32 %v1393_v62, 0.0  ;;  %v1403_v58 = vsub.f32 1.0, %v1402_v43  ;;  %v1412_v1 = vand.u32 2147483647, %v1866_v29 }
 0x164   : > { %v2095_v56 = vpop.eup %2094  ;;  %2102 = vpow2.f32 %v1358_v33  ;;  %v1398_v32 = vmul.f32 1.442695, %v1397_v17  ;;  %v1417_v16 = vsub.f32 %v3363_v36, %v3406_v4  ;;  %v1422_v55 = vand.u32 2147483647, %v1867_v45 }
 0x165   : > { %v1255_v40 = vmul.f32 0.6931472, %v2095_v56  ;;  %2104 = vpow2.f32 %v1368_v48  ;;  %v1868_v30 = vadd.f32 -10.0, %v3344_v11  ;;  %v1408_v6 = vmul.f32 1.442695, %v1407_v35 }
 0x166   : > { %2106 = vpow2.f32 %v1378_v27  ;;  %v1427_v23 = vsub.f32 %v3365_v12, %v3406_v4  ;;  %v1395_v53 = vmul.f32 %v1394_v46, %v3347_v47  ;;  %v1404_v24 = vmax.f32 %v1403_v58, 0.0 }
 0x167   : > { %v1256_v57 = vadd.f32 %v1255_v40, %v3258_v3  ;;  %2108 = vpow2.f32 %v1388_v14  ;;  %v1413_v49 = vsub.f32 1.0, %v1412_v1  ;;  %v1386_v13 = vadd.f32 %v1385_v28, %v1376_v63 }
 0x168   : > { %2110 = vpow2.f32 %v1398_v32  ;;  %v1418_v7 = vmul.f32 1.442695, %v1417_v16  ;;  %v1437_v19 = vsub.f32 %v3374_v8, %v3406_v4  ;;  %v1432_v50 = vand.u32 2147483647, %v1868_v30 }
 0x169   : > { %v1257_v60 = vsub.f32 %v1256_v57, %v1253_v18  ;;  %2112 = vpow2.f32 %v1408_v6  ;;  %v1423_v41 = vsub.f32 1.0, %v1422_v55  ;;  %v1428_v22 = vmul.f32 1.442695, %v1427_v23 }
 0x16a   : > { %v1447_v5 = vsub.f32 %v3377_v37, %v3406_v4  ;;  %v1405_v26 = vmul.f32 %v1404_v24, %v3352_v54  ;;  %v1414_v39 = vmax.f32 %v1413_v49, 0.0  ;;  %v1869_v42 = vadd.f32 -11.0, %v3344_v11 }
 0x16b   : > { %v3439_v3 = vadd.f32 %v1257_v60, %v3291_v10  ;;  %v2097_v61 = vpop.eup %2096  ;;  %v1396_v33 = vadd.f32 %v1395_v53, %v1386_v13  ;;  %2114 = vpow2.f32 %v1418_v7  ;;  %v1438_v15 = vmul.f32 1.442695, %v1437_v19 }
 0x16c   : > { %v2099_v2 = vpop.eup %2098  ;;  %v1457_v18 = vsub.f32 %v3386_v0, %v3406_v4  ;;  %v1433_v38 = vsub.f32 1.0, %v1432_v50  ;;  %v1424_v34 = vmax.f32 %v1423_v41, 0.0  ;;  %2116 = vpow2.f32 %v1428_v22 }
 0x16d   : > { %v2101_v31 = vpop.eup %2100  ;;  %v1340_v10 = vadd.f32 %v2099_v2, %v2097_v61  ;;  %v1448_v29 = vmul.f32 1.442695, %v1447_v5  ;;  %v1467_v56 = vsub.f32 %v3388_v52, %v3406_v4  ;;  %v1415_v9 = vmul.f32 %v1414_v39, %v3356_v20 }
 0x16e   : > { %v2103_v25 = vpop.eup %2102  ;;  %v1442_v62 = vand.u32 2147483647, %v1869_v42  ;;  %v1870_v43 = vadd.f32 -12.0, %v3344_v11  ;;  %v1406_v27 = vadd.f32 %v1405_v26, %v1396_v33  ;;  %2118 = vpow2.f32 %v1438_v15 }
 0x16f   : > { %v1350_v47 = vadd.f32 %v2101_v31, %v1340_v10  ;;  %v2105_v51 = vpop.eup %2104  ;;  %v1458_v17 = vmul.f32 1.442695, %v1457_v18  ;;  %v1477_v28 = vsub.f32 %v3395_v21, %v3406_v4  ;;  %v1434_v14 = vmax.f32 %v1433_v38, 0.0 }
 0x170   : > { %v2107_v48 = vpop.eup %2106  ;;  %2120 = vpow2.f32 %v1448_v29  ;;  %v1468_v35 = vmul.f32 1.442695, %v1467_v56  ;;  %v1487_v63 = vsub.f32 %v3397_v44, %v3406_v4  ;;  %v1425_v20 = vmul.f32 %v1424_v34, %v3363_v36 }
 0x171   : > { %v1360_v59 = vadd.f32 %v2103_v25, %v1350_v47  ;;  %v2109_v40 = vpop.eup %2108  ;;  %v1443_v58 = vsub.f32 1.0, %v1442_v62  ;;  %v1871_v1 = vadd.f32 -13.0, %v3344_v11  ;;  %v1416_v32 = vadd.f32 %v1415_v9, %v1406_v27 }
 0x172   : > { %v2111_v57 = vpop.eup %2110  ;;  %v1452_v16 = vand.u32 2147483647, %v1870_v43  ;;  %2122 = vpow2.f32 %v1458_v17  ;;  %v1478_v55 = vmul.f32 1.442695, %v1477_v28  ;;  %v1488_v23 = vmul.f32 1.442695, %v1487_v63 }
 0x173   : > { %v1370_v54 = vadd.f32 %v2105_v51, %v1360_v59  ;;  %v2113_v60 = vpop.eup %2112  ;;  %2124 = vpow2.f32 %v1468_v35  ;;  %v1435_v53 = vmul.f32 %v1434_v14, %v3365_v12  ;;  %v1462_v24 = vand.u32 2147483647, %v1871_v1 }
 0x174   : > { %v1872_v49 = vadd.f32 -14.0, %v3344_v11  ;;  %v1426_v36 = vadd.f32 %v1425_v20, %v1416_v32  ;;  %v1444_v13 = vmax.f32 %v1443_v58, 0.0  ;;  %v1453_v7 = vsub.f32 1.0, %v1452_v16 }
 0x175   : > { %v1380_v45 = vadd.f32 %v2107_v48, %v1370_v54  ;;  %v2115_v6 = vpop.eup %2114  ;;  %2126 = vpow2.f32 %v1478_v55  ;;  %v1873_v25 = vadd.f32 -15.0, %v3344_v11  ;;  %v1463_v47 = vsub.f32 1.0, %v1462_v24 }
 0x176   : > { %v2117_v2 = vpop.eup %2116  ;;  %2128 = vpow2.f32 %v1488_v23  ;;  %v1472_v50 = vand.u32 2147483647, %v1872_v49  ;;  %v1436_v22 = vadd.f32 %v1435_v53, %v1426_v36  ;;  %v1445_v5 = vmul.f32 %v1444_v13, %v3374_v8 }
 0x177   : > { %v1390_v46 = vadd.f32 %v2109_v40, %v1380_v45  ;;  %v1454_v12 = vmax.f32 %v1453_v7, 0.0  ;;  %v1482_v33 = vand.u32 2147483647, %v1873_v25  ;;  %v1464_v38 = vmax.f32 %v1463_v47, 0.0 }
 0x178   : > { %v2119_v31 = vpop.eup %2118  ;;  %v1473_v51 = vsub.f32 1.0, %v1472_v50  ;;  %v1446_v18 = vadd.f32 %v1445_v5, %v1436_v22  ;;  %v1874_v48 = vadd.f32 -16.0, %v3344_v11 }
 0x179   : > { %v1400_v30 = vadd.f32 %v2111_v57, %v1390_v46  ;;  %v1455_v59 = vmul.f32 %v1454_v12, %v3377_v37  ;;  %v1483_v54 = vsub.f32 1.0, %v1482_v33  ;;  %v1465_v62 = vmul.f32 %v1464_v38, %v3386_v0 }
 0x17a   : > { %v2121_v41 = vpop.eup %2120  ;;  %v1474_v43 = vmax.f32 %v1473_v51, 0.0  ;;  %v1492_v40 = vand.u32 2147483647, %v1874_v48 }
 0x17b   : > { %v1410_v61 = vadd.f32 %v2113_v60, %v1400_v30  ;;  %v1456_v8 = vadd.f32 %v1455_v59, %v1446_v18  ;;  %v1484_v37 = vmax.f32 %v1483_v54, 0.0 }
 0x17c   : > { %v2123_v39 = vpop.eup %2122  ;;  %v1475_v45 = vmul.f32 %v1474_v43, %v3388_v52  ;;  %v1493_v57 = vsub.f32 1.0, %v1492_v40 }
 0x17d   : > { %v1420_v19 = vadd.f32 %v2115_v6, %v1410_v61  ;;  %v2125_v15 = vpop.eup %2124  ;;  %v1466_v28 = vadd.f32 %v1465_v62, %v1456_v8  ;;  %v1485_v14 = vmul.f32 %v1484_v37, %v3395_v21 }
 0x17e   : > { %v1494_v35 = vmax.f32 %v1493_v57, 0.0 }
 0x17f   : > { %v1430_v10 = vadd.f32 %v2117_v2, %v1420_v19  ;;  %v2127_v29 = vpop.eup %2126  ;;  %v1476_v11 = vadd.f32 %v1475_v45, %v1466_v28 }
 0x180   : > { %v2129_v9 = vpop.eup %2128  ;;  %v1495_v0 = vmul.f32 %v1494_v35, %v3397_v44 }
 0x181   : > { %v1440_v26 = vadd.f32 %v2119_v31, %v1430_v10  ;;  %v1486_v63 = vadd.f32 %v1485_v14, %v1476_v11 }
 0x183   : > { %v1450_v42 = vadd.f32 %v2121_v41, %v1440_v26  ;;  %v1496_v20 = vadd.f32 %v1495_v0, %v1486_v63 }
 0x185   : > { %v1460_v34 = vadd.f32 %v2123_v39, %v1450_v42 }
 0x187   : > { %v1470_v56 = vadd.f32 %v2125_v15, %v1460_v34 }
 0x189   : > { %v1480_v27 = vadd.f32 %v2127_v29, %v1470_v56 }
 0x18b   : > { %v1490_v17 = vadd.f32 %v2129_v9, %v1480_v27 }
 0x18d   : > { %2130 = vlog2.f32 %v1490_v17 }
 0x197   : > { %v2131_v46 = vpop.eup %2130 }
 0x198   : > { %v1498_v58 = vmul.f32 0.6931472, %v2131_v46 }
 0x19a   : > { %v1499_v1 = vadd.f32 %v1498_v58, %v3406_v4 }
 0x19c   : > { %v1500_v60 = vsub.f32 %v1499_v1, %v1496_v20 }
 0x19e   : > { %v1501_v52 = vadd.f32 %v1500_v60, %v3439_v3 }
 0x1a0   : > { %v1502_v32 = vmul.f32 0.25, %v1501_v52 }
 0x1a2   : > { %1503 = vst [vmem:[%s368_s17] sm:$0x3] %v1502_v32 }
 0x1a3   : > { %2264 = shalt.err (!%p2261_p5)
}
 0x1a4   : > { %s2265_s29 = scalar_lea.hbm %s3481_s15, 32  ;;  %s2269_s12 = scalar_lea.hbm %s3535_s5, 64 }
 0x1a5   : > { %p2266_p7 = scmp.ne.s32.totalorder %s3481_s15, %s2265_s29  ;;  %p2270_p0 = scmp.lt.u32.totalorder %s3481_s15, %s3535_s5 }
 0x1a6   : > { %p2271_p8 = scmp.lt.u32.totalorder %s2269_s12, %s2265_s29  ;;  %p2273_p12 = scmp.lt.u32.totalorder %s2265_s29, %s3481_s15 }
 0x1a7   : > { %p2267_p4 = pnand %p2266_p7, %p3571_p10 }
 0x1a8   : > { %p2272_p9 = por %p2271_p8, %p2270_p0 }
 0x1a9   : > { %p2268_p3 = pneg %p2267_p4 }
 0x1aa   : > { %p2274_p1 = por %p2273_p12, %p2272_p9 }
 0x1ac   : > { %p2275_p6 = pnand %p2274_p1, %p2268_p3 }
 0x1ae   : > { %2278 = shalt.err (!%p2275_p6)
}
 0x1af   : > { %1893 = dma.vmem_to_hbm [thread:$0]  (%p3571_p10), %s3483_s14, 32, %s3481_s15, %s1510_s26  }
 0x1b0 PF: > { %s3572_s30 = sld [smem:[#allocation16_spill]]  ;;  %s1550_s1 = sand.u32 1, %s2321_s18  }
 0x1b1   : > { %p3573_p13 = scmp.ne.s32.totalorder %s3554_s8, 0  ;;  %s1551_s10 = scalar_lea.sflag [#allocation4], %s1550_s1 }
 0x1b6   : > { %p3574_p11 = scmp.ge.s32.totalorder %s3572_s30, 2 }
 0x1b8   : > { %p1907_p2 = pnand %p3574_p11, %p3573_p13 }
 0x1ba   : > { %2312 = dma.done.wait (!%p1907_p2), %s1551_s10, 32  }
 0x1bb   : > { %2314 = vsyncadd (!%p1907_p2), %s1551_s10, 4294967264  ;;  %s1560_s25 = scalar_lea.sflag [#allocation10], %s1550_s1 }
 0x1bc   : > { %2316 = dma.done.wait (!%p1907_p2), %s1560_s25, 32  }
 0x1bd   : > { %2318 = vsyncadd (!%p1907_p2), %s1560_s25, 4294967264  ;;  %s28_s23 = sadd.s32 1, %s3572_s30   ;;  %s3575_s6 = sld [smem:[#allocation15_spill]] }
 0x1be   : > { %p25_p5 = scmp.ge.s32.totalorder %s28_s23, 4   ;;  %s3576_s20 = sld [smem:[#allocation18_spill]] }
 0x1bf   : > { %s3577_s9 = sld [smem:[#allocation17_spill]]  ;;  %s3578_s18 = smov %s2325_s19 }
 0x1c0   : > { %s3580_s21 = smov %s2337_s22  ;;  %27 = sbr.rel (!%p25_p5) target bundleno = 12 (0xc), region = 199 }
 0x1c3   : > { %s3579_s19 = smov %s3575_s6 }
 0x1c5   : > { %s3581_s22 = smov %s3577_s9 }
 0x1c7   :  { %1565 = vsyncpa [#allocation3], 1 }
 0x1c8   :  { %1567 = vsyncpa [#allocation3 + $0x1], 1 }
 0x1c9   :  { %1568 = vsyncpa [#allocation6], 1 }
 0x1ca   :  { %1570 = vsyncpa [#allocation6 + $0x1], 1 }
 0x1cb   :  { %1571 = vsyncpa [#allocation4], 1 }
 0x1cc   :  { %1573 = vsyncpa [#allocation4 + $0x1], 1 }
 0x1cd   :  { %1574 = vsyncpa [#allocation10], 1 }
 0x1ce   :  { %1576 = vsyncpa [#allocation10 + $0x1], 1 }

</bundles_post_ra>
